<compile_context>
chip_gen: v5e
topology: v5e:2x2
jax: 0.10.0
libtpu: 0.0.40
codegen_flags: <defaults>
</compile_context>

<pallas_src>
import jax
import jax.numpy as jnp
from jax.experimental import pallas as pl
from jax.experimental.pallas import tpu as pltpu

# ---- small config (module defaults shrunk for a small runnable test) ----
IN_CHANS = 3
STEM = 16           # stem_size (default 32)
B1_OUT = 24
B2_OUT = 40
NUM_FEATURES = 64   # conv_head features (default 1280)
NUM_CLASSES = 10    # default 1000
HIDDEN_D = 64       # dwt_sa hidden_d (matches module)

PREF_TM = 1024      # preferred row tile; at these channel widths << VMEM on all gens


def _detect_vmem_limit():
    """Generation-aware scoped VMEM: ~3/4 of physical, clamped to [32, 96] MiB
    (v5e/v6e 128 MiB -> 96 MiB, v7x 64 MiB -> 48 MiB). Safe fallback if the
    hardware query is unavailable."""
    try:
        cap = int(pltpu.get_tpu_info().vmem_capacity_bytes)
    except Exception:
        cap = 64 * 1024 * 1024
    return max(32 * 1024 * 1024, min((cap * 3) // 4, 96 * 1024 * 1024))


VMEM_LIMIT = _detect_vmem_limit()


def _cparams(*sem):
    return pltpu.CompilerParams(dimension_semantics=sem,
                                vmem_limit_bytes=VMEM_LIMIT)


def _round_up(n, m):
    return ((n + m - 1) // m) * m


def _choose_tm(M, pref=PREF_TM):
    """Row tile TM (multiple of 8, divides padded Mp). Targets >= 2 grid steps so
    the 'parallel' axis can shard across both v7x TensorCores; caps at `pref`."""
    if M <= 8:
        return 8, 8
    tm = min(pref, max(8, _round_up((M + 1) // 2, 8)))
    return tm, _round_up(M, tm)


def _pad_rows(x, Mp):
    M = x.shape[0]
    if Mp == M:
        return x
    return jnp.pad(x, [(0, Mp - M)] + [(0, 0)] * (x.ndim - 1))


# ----------------------------- Pallas kernels -----------------------------

def stem_sa_kernel(p_ref, sw_ref, sb_ref, w1_ref, b1_ref, w2_ref, b2_ref,
                   llw_ref, o_ref, ll_ref):
    """Fused conv_stem(3x3,s2)+BN+ReLU, DWT level-1 SA head, SA scale, LL emit.

    The Haar combine AND the polyphase extraction are folded into w1 / llw in
    patch space, so everything here is MXU dots + a tiny VPU/EUP epilogue."""
    p = p_ref[...]                                              # (TM, 9*Cin)
    # DWT-SA head: 1x1 -> ReLU -> 1x1(width 1 as mul+lane-reduce) -> sigmoid
    h = jnp.dot(p, w1_ref[...], preferred_element_type=jnp.float32) + b1_ref[...]
    h = jnp.maximum(h, 0.0)
    sa = jax.nn.sigmoid(jnp.sum(h * w2_ref[...], axis=-1, keepdims=True)
                        + b2_ref[...])
    # conv_stem + folded BN + ReLU, scaled by sa (kept in vregs, never hits HBM)
    z = jnp.dot(p, sw_ref[...], preferred_element_type=jnp.float32) + sb_ref[...]
    o_ref[...] = jnp.maximum(z, 0.0) * sa
    # LL band for the next DWT level (constant extraction matrix on the MXU)
    ll_ref[...] = jnp.dot(p, llw_ref[...], preferred_element_type=jnp.float32)


def make_block_sa_kernel(emit_ll, fuse_head):
    """Fused dw3x3(s2, block-diag MXU matmul)+BN+ReLU + pw1x1 + DWT-SA scale
    [+ LL emit] [+ conv_head+bn2+ReLU]."""
    def kernel(p_ref, dwm_ref, bt_ref, pw_ref, pb_ref,
               poly_ref, w1_ref, b1_ref, w2_ref, b2_ref, *rest):
        i = 0
        if emit_ll:
            llw_ref = rest[i]; i += 1
        if fuse_head:
            hw_ref = rest[i]; hb_ref = rest[i + 1]; i += 2
        o_ref = rest[i]; i += 1
        if emit_ll:
            ll_ref = rest[i]

        # DWT-SA head on the polyphase stack of the previous LL band
        poly = poly_ref[...]                                    # (TM, 4*Cll)
        h = jnp.dot(poly, w1_ref[...],
                    preferred_element_type=jnp.float32) + b1_ref[...]
        h = jnp.maximum(h, 0.0)
        sa = jax.nn.sigmoid(jnp.sum(h * w2_ref[...], axis=-1, keepdims=True)
                            + b2_ref[...])

        # depthwise 3x3 as one MXU matmul (BN gamma folded into dwm) + beta + ReLU
        y = jnp.dot(p_ref[...], dwm_ref[...],
                    preferred_element_type=jnp.float32) + bt_ref[...]
        y = jnp.maximum(y, 0.0)
        # pointwise 1x1 + SA scale
        z = (jnp.dot(y, pw_ref[...], preferred_element_type=jnp.float32)
             + pb_ref[...]) * sa
        if fuse_head:
            z = jnp.dot(z, hw_ref[...],
                        preferred_element_type=jnp.float32) + hb_ref[...]
            z = jnp.maximum(z, 0.0)
        o_ref[...] = z
        if emit_ll:
            ll_ref[...] = jnp.dot(poly, llw_ref[...],
                                  preferred_element_type=jnp.float32)
    return kernel


def make_pool_fc_kernel(hw_real):
    """Gridded global-average-pool reduction + classifier matmul."""
    inv = 1.0 / float(hw_real)

    def kernel(x_ref, w_ref, b_ref, o_ref, acc_ref):
        @pl.when(pl.program_id(0) == 0)
        def _():
            acc_ref[...] = jnp.zeros_like(acc_ref)

        acc_ref[...] += jnp.sum(x_ref[...], axis=1)             # (N, F) partials

        @pl.when(pl.program_id(0) == pl.num_programs(0) - 1)
        def _():
            pooled = acc_ref[...] * inv
            o_ref[...] = jnp.dot(pooled, w_ref[...],
                                 preferred_element_type=jnp.float32) + b_ref[...]
    return kernel


# ------------------------- XLA-side data movement -------------------------

def _shifted_taps(x, ksize=3, stride=2, pad=1):
    """9 stride-2 tap slabs of a padded 3x3 conv (pure data movement in XLA)."""
    N, H, W, C = x.shape
    xp = jnp.pad(x, ((0, 0), (pad, pad), (pad, pad), (0, 0)))
    Ho = (H + 2 * pad - ksize) // stride + 1
    Wo = (W + 2 * pad - ksize) // stride + 1
    taps = []
    for dy in range(ksize):
        for dx in range(ksize):
            taps.append(xp[:, dy:dy + stride * Ho:stride,
                           dx:dx + stride * Wo:stride, :])
    return taps, Ho, Wo


def extract_patches_concat(x):
    """(N,H,W,C) -> (N,Ho,Wo,9C) pixel-major patches (conv-as-matmul)."""
    taps, Ho, Wo = _shifted_taps(x)
    return jnp.concatenate(taps, axis=-1), Ho, Wo


def polyphase_concat(x):
    """(N,H,W,C) -> (N*H/2*W/2, 4C) polyphase stack [a|b|c|d]."""
    a = x[:, 0::2, 0::2, :]
    b = x[:, 0::2, 1::2, :]
    c = x[:, 1::2, 0::2, :]
    d = x[:, 1::2, 1::2, :]
    N, H2, W2, C = a.shape
    return jnp.concatenate([a, b, c, d], axis=-1).reshape(N * H2 * W2, 4 * C)


# ----------------------------- kernel wrappers -----------------------------

def stem_block_sa(x, fp, tm=PREF_TM):
    """conv_stem + bn1 + ReLU + DWT level-1 SA scaling, all in one kernel."""
    N, H, W, Cin = x.shape
    patches, Ho, Wo = extract_patches_concat(x)                 # (N,Ho,Wo,9Cin)
    M = N * Ho * Wo
    K = 9 * Cin
    TM, Mp = _choose_tm(M, tm)
    patches = _pad_rows(patches.reshape(M, K), Mp)
    sp = fp["sa1"]
    Cout = fp["stem_w"].shape[1]

    o, ll = pl.pallas_call(
        stem_sa_kernel,
        out_shape=(jax.ShapeDtypeStruct((Mp, Cout), jnp.float32),
                   jax.ShapeDtypeStruct((Mp, Cin), jnp.float32)),
        grid_spec=pltpu.PrefetchScalarGridSpec(
            num_scalar_prefetch=0, grid=(Mp // TM,),
            in_specs=[
                pl.BlockSpec((TM, K), lambda i: (i, 0)),
                pl.BlockSpec((K, Cout), lambda i: (0, 0)),
                pl.BlockSpec((1, Cout), lambda i: (0, 0)),
                pl.BlockSpec((K, HIDDEN_D), lambda i: (0, 0)),
                pl.BlockSpec((1, HIDDEN_D), lambda i: (0, 0)),
                pl.BlockSpec((1, HIDDEN_D), lambda i: (0, 0)),
                pl.BlockSpec((1, 1), lambda i: (0, 0)),
                pl.BlockSpec((K, Cin), lambda i: (0, 0)),
            ],
            out_specs=[pl.BlockSpec((TM, Cout), lambda i: (i, 0)),
                       pl.BlockSpec((TM, Cin), lambda i: (i, 0))],
        ),
        compiler_params=_cparams("parallel"),
    )(patches, fp["stem_w"], fp["stem_b"],
      sp["w1"], sp["b1"], sp["w2"], sp["b2"], sp["llw"])

    o = o[:M].reshape(N, Ho, Wo, Cout)
    ll = ll[:M].reshape(N, Ho, Wo, Cin)
    return o, ll


def dwsep_block_sa(x, ll_prev, bp, sp, *, emit_ll, head=None, tm=PREF_TM):
    """Fused depthwise-separable stage + DWT-SA for one stride level.

    x:       (N,H,W,C)  activations to convolve (stride-2 dw 3x3 -> pw 1x1)
    ll_prev: (N,H,W,Cll) LL band of the previous DWT level (same spatial grid)
    """
    N, H, W, C = x.shape
    patches, Ho, Wo = extract_patches_concat(x)                 # (N,Ho,Wo,9C)
    M = N * Ho * Wo
    K = 9 * C
    LLC = ll_prev.shape[-1]
    Cmid = bp["dw_mat"].shape[1]
    Cout = bp["pw_w"].shape[1]
    out_width = head["w"].shape[1] if head is not None else Cout

    TM, Mp = _choose_tm(M, tm)
    patches = _pad_rows(patches.reshape(M, K), Mp)
    poly = _pad_rows(polyphase_concat(ll_prev), Mp)             # (Mp, 4*LLC)

    arrays = [patches, bp["dw_mat"], bp["dw_b"], bp["pw_w"], bp["pw_b"],
              poly, sp["w1"], sp["b1"], sp["w2"], sp["b2"]]
    in_specs = [
        pl.BlockSpec((TM, K), lambda i: (i, 0)),
        pl.BlockSpec((K, Cmid), lambda i: (0, 0)),
        pl.BlockSpec((1, Cmid), lambda i: (0, 0)),
        pl.BlockSpec((Cmid, Cout), lambda i: (0, 0)),
        pl.BlockSpec((1, Cout), lambda i: (0, 0)),
        pl.BlockSpec((TM, 4 * LLC), lambda i: (i, 0)),
        pl.BlockSpec((4 * LLC, HIDDEN_D), lambda i: (0, 0)),
        pl.BlockSpec((1, HIDDEN_D), lambda i: (0, 0)),
        pl.BlockSpec((1, HIDDEN_D), lambda i: (0, 0)),
        pl.BlockSpec((1, 1), lambda i: (0, 0)),
    ]
    if emit_ll:
        arrays.append(sp["llw"])
        in_specs.append(pl.BlockSpec((4 * LLC, LLC), lambda i: (0, 0)))
    if head is not None:
        arrays += [head["w"], head["b"]]
        in_specs += [pl.BlockSpec((Cout, out_width), lambda i: (0, 0)),
                     pl.BlockSpec((1, out_width), lambda i: (0, 0))]

    out_shapes = [jax.ShapeDtypeStruct((Mp, out_width), jnp.float32)]
    out_specs = [pl.BlockSpec((TM, out_width), lambda i: (i, 0))]
    if emit_ll:
        out_shapes.append(jax.ShapeDtypeStruct((Mp, LLC), jnp.float32))
        out_specs.append(pl.BlockSpec((TM, LLC), lambda i: (i, 0)))
    multi = len(out_shapes) > 1

    outs = pl.pallas_call(
        make_block_sa_kernel(emit_ll, head is not None),
        out_shape=tuple(out_shapes) if multi else out_shapes[0],
        grid_spec=pltpu.PrefetchScalarGridSpec(
            num_scalar_prefetch=0, grid=(Mp // TM,),
            in_specs=in_specs,
            out_specs=out_specs if multi else out_specs[0],
        ),
        compiler_params=_cparams("parallel"),
    )(*arrays)

    if multi:
        o, ll = outs
        ll = ll[:M].reshape(N, Ho, Wo, LLC)
    else:
        o, ll = outs, None
    o = o[:M].reshape(N, Ho, Wo, out_width)
    return o, ll


def pool_fc(feat, wc, bc):
    """Global average pool over HW (gridded reduction) + classifier matmul."""
    N, HW, F = feat.shape
    NC = wc.shape[1]
    THW = 256 if HW >= 256 else _round_up(HW, 8)
    HWp = _round_up(HW, THW)
    if HWp != HW:
        feat = jnp.pad(feat, ((0, 0), (0, HWp - HW), (0, 0)))   # zeros: sums unchanged
    return pl.pallas_call(
        make_pool_fc_kernel(HW),
        out_shape=jax.ShapeDtypeStruct((N, NC), jnp.float32),
        grid_spec=pltpu.PrefetchScalarGridSpec(
            num_scalar_prefetch=0, grid=(HWp // THW,),
            in_specs=[
                pl.BlockSpec((N, THW, F), lambda j: (0, j, 0)),
                pl.BlockSpec((F, NC), lambda j: (0, 0)),
                pl.BlockSpec((1, NC), lambda j: (0, 0)),
            ],
            out_specs=pl.BlockSpec((N, NC), lambda j: (0, 0)),
            scratch_shapes=[pltpu.VMEM((N, F), jnp.float32)],
        ),
        compiler_params=_cparams("arbitrary"),
    )(feat, wc, bc)


# ----------------------------- forward pass -----------------------------

def forward(x_nchw, fp):
    x = jnp.transpose(x_nchw, (0, 2, 3, 1)).astype(jnp.float32)   # NCHW -> NHWC

    # conv_stem + bn1 + ReLU + (DWT level-1 SA) * x, LL1 emitted      (H/2, W/2)
    x1, ll1 = stem_block_sa(x, fp)
    # block1: dw3x3 s2 + BN + ReLU + pw1x1, scaled by DWT level-2 SA   (H/4, W/4)
    x2, ll2 = dwsep_block_sa(x1, ll1, fp["b1"], fp["sa2"], emit_ll=True)
    # block2 + DWT level-3 SA (no LL) + conv_head + bn2 + ReLU         (H/8, W/8)
    x3, _ = dwsep_block_sa(x2, ll2, fp["b2"], fp["sa3"], emit_ll=False,
                           head=dict(w=fp["head_w"], b=fp["head_b"]))

    N, Hh, Wh, F = x3.shape
    feat = x3.reshape(N, Hh * Wh, F)
    # global avg pool + classifier (drop_rate = 0.0 -> dropout is a no-op)
    return pool_fc(feat, fp["cls_w"], fp["cls_b"])


# ----------------------------- parameter folding -----------------------------

def fold_haar_w1(w1):
    """Fold the Haar subband combine into the first 1x1 weight.

    w1 rows are [w_ll; w_lh; w_hl; w_hh]; the result consumes the raw polyphase
    stack [a|b|c|d] directly (ll=(a+b+c+d)/2, lh=(a-b+c-d)/2, hl=(a+b-c-d)/2,
    hh=(a-b-c+d)/2)."""
    C = w1.shape[0] // 4
    wll, wlh, whl, whh = w1[:C], w1[C:2 * C], w1[2 * C:3 * C], w1[3 * C:]
    wa = 0.5 * (wll + wlh + whl + whh)
    wb = 0.5 * (wll - wlh + whl - whh)
    wc = 0.5 * (wll + wlh - whl - whh)
    wd = 0.5 * (wll - wlh - whl + whh)
    return jnp.concatenate([wa, wb, wc, wd], axis=0)


def ll_matrix(c):
    """(4c, c) constant: poly @ ll_matrix == LL band."""
    return 0.5 * jnp.concatenate([jnp.eye(c, dtype=jnp.float32)] * 4, axis=0)


def embed_poly_in_patches(wpoly, cin):
    """Lift a (4*cin, X) poly-space matrix into stride-2 3x3 patch space (9*cin, X).

    The DWT polyphase components a,b,c,d of the input sit at patch taps 4,5,7,8."""
    X = wpoly.shape[1]
    wp = jnp.zeros((9 * cin, X), jnp.float32)
    for k, t in enumerate((4, 5, 7, 8)):
        wp = wp.at[t * cin:(t + 1) * cin].set(wpoly[k * cin:(k + 1) * cin])
    return wp


def build_dw_mat(dw, g):
    """Depthwise (9, C) tap weights -> block-diagonal (9C, C) matmul weight,
    with BN gamma folded into the columns."""
    K, C = dw.shape
    blocks = [jnp.diag(dw[t]) for t in range(K)]
    return jnp.concatenate(blocks, axis=0) * g[None, :]


def fold_params(p):
    f = {}
    # SA level 1: Haar fold + embed into stem patch space
    w1p = fold_haar_w1(p["sa1"]["w1"])
    f["sa1"] = dict(w1=embed_poly_in_patches(w1p, IN_CHANS),
                    b1=p["sa1"]["b1"], w2=p["sa1"]["w2"], b2=p["sa1"]["b2"],
                    llw=embed_poly_in_patches(ll_matrix(IN_CHANS), IN_CHANS))
    # SA levels 2/3: Haar fold only (consume the polyphase stack of prev LL)
    for name in ("sa2", "sa3"):
        f[name] = dict(w1=fold_haar_w1(p[name]["w1"]),
                       b1=p[name]["b1"], w2=p[name]["w2"], b2=p[name]["b2"],
                       llw=ll_matrix(IN_CHANS))
    f["stem_w"] = p["stem_w"]
    f["stem_b"] = p["stem_b"]

    def fold_block(b):
        return dict(dw_mat=build_dw_mat(b["dw_w"], b["dw_g"][0]),
                    dw_b=b["dw_b"], pw_w=b["pw_w"], pw_b=b["pw_b"])

    f["b1"] = fold_block(p["b1"])
    f["b2"] = fold_block(p["b2"])
    f["head_w"] = p["head_w"]; f["head_b"] = p["head_b"]
    f["cls_w"] = p["cls_w"]; f["cls_b"] = p["cls_b"]
    return f


def init_params(key):
    ks = iter(jax.random.split(key, 40))

    def w(shape, scale=0.1):
        return scale * jax.random.normal(next(ks), shape, jnp.float32)

    p = {}
    for name in ("sa1", "sa2", "sa3"):
        p[name] = dict(w1=w((4 * IN_CHANS, HIDDEN_D)), b1=w((1, HIDDEN_D)),
                       w2=w((1, HIDDEN_D)),            # stored transposed (1, HIDDEN)
                       b2=w((1, 1)))
    # conv_stem weight (3x3x3 -> STEM) with BN1 folded into (w, b)
    p["stem_w"] = w((9 * IN_CHANS, STEM))
    p["stem_b"] = w((1, STEM))

    def block_params(cin, cout):
        return dict(dw_w=w((9, cin)),                  # per-tap depthwise weights
                    dw_g=1.0 + w((1, cin)), dw_b=w((1, cin)),
                    pw_w=w((cin, cout)), pw_b=w((1, cout)))

    p["b1"] = block_params(STEM, B1_OUT)
    p["b2"] = block_params(B1_OUT, B2_OUT)
    # conv_head (1x1) with BN2 folded
    p["head_w"] = w((B2_OUT, NUM_FEATURES))
    p["head_b"] = w((1, NUM_FEATURES))
    # classifier
    p["cls_w"] = w((NUM_FEATURES, NUM_CLASSES))
    p["cls_b"] = w((1, NUM_CLASSES))
    return p


if __name__ == "__main__":
    key = jax.random.PRNGKey(0)
    pkey, xkey = jax.random.split(key)
    params = fold_params(init_params(pkey))
    x = jax.random.normal(xkey, (2, IN_CHANS, 32, 32), jnp.float32)   # NCHW like PyTorch
    logits = jax.jit(forward)(x, params)
    logits = jax.block_until_ready(logits)
    assert logits.shape == (2, NUM_CLASSES)
    assert bool(jnp.all(jnp.isfinite(logits)))
    print("KERNEL_OK")
</pallas_src>

<mosaic_0001>
module attributes {stable_mosaic.version = 11 : i64} {
  func.func @stem_sa_kernel(%arg0: i32, %arg1: memref<256x27xf32, #tpu.memory_space<vmem>>, %arg2: memref<27x16xf32, #tpu.memory_space<vmem>>, %arg3: memref<1x16xf32, #tpu.memory_space<vmem>>, %arg4: memref<27x64xf32, #tpu.memory_space<vmem>>, %arg5: memref<1x64xf32, #tpu.memory_space<vmem>>, %arg6: memref<1x64xf32, #tpu.memory_space<vmem>>, %arg7: memref<1x1xf32, #tpu.memory_space<vmem>>, %arg8: memref<27x3xf32, #tpu.memory_space<vmem>>, %arg9: memref<256x16xf32, #tpu.memory_space<vmem>>, %arg10: memref<256x3xf32, #tpu.memory_space<vmem>>) attributes {dimension_semantics = [#tpu.dimension_semantics<parallel>], iteration_bounds = array<i64: 2>, scalar_prefetch = 0 : i64, scratch_operands = 0 : i64, tpu.core_type = #tpu.core_type<tc>, window_params = [{transform_indices = @transform_0, window_bounds = array<i64: 256, 27>}, {pipeline_mode = #tpu.pipeline_mode<synchronous>, transform_indices = @transform_1, window_bounds = array<i64: 27, 16>}, {pipeline_mode = #tpu.pipeline_mode<synchronous>, transform_indices = @transform_2, window_bounds = array<i64: 1, 16>}, {pipeline_mode = #tpu.pipeline_mode<synchronous>, transform_indices = @transform_3, window_bounds = array<i64: 27, 64>}, {pipeline_mode = #tpu.pipeline_mode<synchronous>, transform_indices = @transform_4, window_bounds = array<i64: 1, 64>}, {pipeline_mode = #tpu.pipeline_mode<synchronous>, transform_indices = @transform_5, window_bounds = array<i64: 1, 64>}, {pipeline_mode = #tpu.pipeline_mode<synchronous>, transform_indices = @transform_6, window_bounds = array<i64: 1, 1>}, {pipeline_mode = #tpu.pipeline_mode<synchronous>, transform_indices = @transform_7, window_bounds = array<i64: 27, 3>}, {transform_indices = @transform_8, window_bounds = array<i64: 256, 16>}, {transform_indices = @transform_9, window_bounds = array<i64: 256, 3>}]} {
    %c0 = arith.constant 0 : index
    %c0_0 = arith.constant 0 : index
    %0 = vector.load %arg1[%c0, %c0_0] : memref<256x27xf32, #tpu.memory_space<vmem>>, vector<256x27xf32>
    %c0_1 = arith.constant 0 : index
    %c0_2 = arith.constant 0 : index
    %1 = vector.load %arg4[%c0_1, %c0_2] : memref<27x64xf32, #tpu.memory_space<vmem>>, vector<27x64xf32>
    %cst = arith.constant dense<0.000000e+00> : vector<256x64xf32>
    %2 = tpu.matmul %0, %1, %cst {dimension_numbers = #tpu.dot_dimension_numbers<[1], [0], [0], [1], [0, 0, 1, 1], [], []>} : vector<256x27xf32>, vector<27x64xf32>, vector<256x64xf32> -> vector<256x64xf32>
    %c0_3 = arith.constant 0 : index
    %c0_4 = arith.constant 0 : index
    %3 = vector.load %arg5[%c0_3, %c0_4] : memref<1x64xf32, #tpu.memory_space<vmem>>, vector<1x64xf32>
    %4 = vector.broadcast %3 : vector<1x64xf32> to vector<256x64xf32>
    %5 = arith.addf %2, %4 : vector<256x64xf32>
    %cst_5 = arith.constant 0.000000e+00 : f32
    %6 = vector.broadcast %cst_5 : f32 to vector<256x64xf32>
    %7 = arith.maximumf %5, %6 : vector<256x64xf32>
    %c0_6 = arith.constant 0 : index
    %c0_7 = arith.constant 0 : index
    %8 = vector.load %arg6[%c0_6, %c0_7] : memref<1x64xf32, #tpu.memory_space<vmem>>, vector<1x64xf32>
    %9 = vector.broadcast %8 : vector<1x64xf32> to vector<256x64xf32>
    %10 = arith.mulf %7, %9 : vector<256x64xf32>
    %cst_8 = arith.constant dense<0.000000e+00> : vector<256xf32>
    %11 = vector.multi_reduction <add>, %10, %cst_8 [1] : vector<256x64xf32> to vector<256xf32>
    %12 = vector.shape_cast %11 : vector<256xf32> to vector<256x1xf32>
    %c0_9 = arith.constant 0 : index
    %c0_10 = arith.constant 0 : index
    %13 = vector.load %arg7[%c0_9, %c0_10] : memref<1x1xf32, #tpu.memory_space<vmem>>, vector<1x1xf32>
    %14 = vector.broadcast %13 : vector<1x1xf32> to vector<256x1xf32>
    %15 = arith.addf %12, %14 : vector<256x1xf32>
    %16 = arith.negf %15 : vector<256x1xf32>
    %17 = math.exp %16 : vector<256x1xf32>
    %cst_11 = arith.constant 1.000000e+00 : f32
    %18 = vector.broadcast %cst_11 : f32 to vector<256x1xf32>
    %19 = arith.addf %18, %17 : vector<256x1xf32>
    %20 = arith.divf %18, %19 : vector<256x1xf32>
    %c0_12 = arith.constant 0 : index
    %c0_13 = arith.constant 0 : index
    %21 = vector.load %arg2[%c0_12, %c0_13] : memref<27x16xf32, #tpu.memory_space<vmem>>, vector<27x16xf32>
    %cst_14 = arith.constant dense<0.000000e+00> : vector<256x16xf32>
    %22 = tpu.matmul %0, %21, %cst_14 {dimension_numbers = #tpu.dot_dimension_numbers<[1], [0], [0], [1], [0, 0, 1, 1], [], []>} : vector<256x27xf32>, vector<27x16xf32>, vector<256x16xf32> -> vector<256x16xf32>
    %c0_15 = arith.constant 0 : index
    %c0_16 = arith.constant 0 : index
    %23 = vector.load %arg3[%c0_15, %c0_16] : memref<1x16xf32, #tpu.memory_space<vmem>>, vector<1x16xf32>
    %24 = vector.broadcast %23 : vector<1x16xf32> to vector<256x16xf32>
    %25 = arith.addf %22, %24 : vector<256x16xf32>
    %cst_17 = arith.constant 0.000000e+00 : f32
    %26 = vector.broadcast %cst_17 : f32 to vector<256x16xf32>
    %27 = arith.maximumf %25, %26 : vector<256x16xf32>
    %28 = vector.broadcast %20 : vector<256x1xf32> to vector<256x16xf32>
    %29 = arith.mulf %27, %28 : vector<256x16xf32>
    %c0_18 = arith.constant 0 : index
    %c0_19 = arith.constant 0 : index
    %30 = vector.load %arg9[%c0_18, %c0_19] : memref<256x16xf32, #tpu.memory_space<vmem>>, vector<256x16xf32>
    tpu.vector_store %arg9[%c0_18, %c0_19], %29 {strides = array<i32>} : memref<256x16xf32, #tpu.memory_space<vmem>>, vector<256x16xf32>,
    %c0_20 = arith.constant 0 : index
    %c0_21 = arith.constant 0 : index
    %31 = vector.load %arg8[%c0_20, %c0_21] : memref<27x3xf32, #tpu.memory_space<vmem>>, vector<27x3xf32>
    %cst_22 = arith.constant dense<0.000000e+00> : vector<256x3xf32>
    %32 = tpu.matmul %0, %31, %cst_22 {dimension_numbers = #tpu.dot_dimension_numbers<[1], [0], [0], [1], [0, 0, 1, 1], [], []>} : vector<256x27xf32>, vector<27x3xf32>, vector<256x3xf32> -> vector<256x3xf32>
    %c0_23 = arith.constant 0 : index
    %c0_24 = arith.constant 0 : index
    %33 = vector.load %arg10[%c0_23, %c0_24] : memref<256x3xf32, #tpu.memory_space<vmem>>, vector<256x3xf32>
    tpu.vector_store %arg10[%c0_23, %c0_24], %32 {strides = array<i32>} : memref<256x3xf32, #tpu.memory_space<vmem>>, vector<256x3xf32>,
    return
  }
  func.func @transform_0(%arg0: i32) -> (i32, i32) {
    %c0_i32 = arith.constant 0 : i32
    %c0_i32_0 = arith.constant 0 : i32
    return %arg0, %c0_i32 : i32, i32
  }
  func.func @transform_1(%arg0: i32) -> (i32, i32) {
    %c0_i32 = arith.constant 0 : i32
    %c0_i32_0 = arith.constant 0 : i32
    %c0_i32_1 = arith.constant 0 : i32
    return %c0_i32, %c0_i32_0 : i32, i32
  }
  func.func @transform_2(%arg0: i32) -> (i32, i32) {
    %c0_i32 = arith.constant 0 : i32
    %c0_i32_0 = arith.constant 0 : i32
    %c0_i32_1 = arith.constant 0 : i32
    return %c0_i32, %c0_i32_0 : i32, i32
  }
  func.func @transform_3(%arg0: i32) -> (i32, i32) {
    %c0_i32 = arith.constant 0 : i32
    %c0_i32_0 = arith.constant 0 : i32
    %c0_i32_1 = arith.constant 0 : i32
    return %c0_i32, %c0_i32_0 : i32, i32
  }
  func.func @transform_4(%arg0: i32) -> (i32, i32) {
    %c0_i32 = arith.constant 0 : i32
    %c0_i32_0 = arith.constant 0 : i32
    %c0_i32_1 = arith.constant 0 : i32
    return %c0_i32, %c0_i32_0 : i32, i32
  }
  func.func @transform_5(%arg0: i32) -> (i32, i32) {
    %c0_i32 = arith.constant 0 : i32
    %c0_i32_0 = arith.constant 0 : i32
    %c0_i32_1 = arith.constant 0 : i32
    return %c0_i32, %c0_i32_0 : i32, i32
  }
  func.func @transform_6(%arg0: i32) -> (i32, i32) {
    %c0_i32 = arith.constant 0 : i32
    %c0_i32_0 = arith.constant 0 : i32
    %c0_i32_1 = arith.constant 0 : i32
    return %c0_i32, %c0_i32_0 : i32, i32
  }
  func.func @transform_7(%arg0: i32) -> (i32, i32) {
    %c0_i32 = arith.constant 0 : i32
    %c0_i32_0 = arith.constant 0 : i32
    %c0_i32_1 = arith.constant 0 : i32
    return %c0_i32, %c0_i32_0 : i32, i32
  }
  func.func @transform_8(%arg0: i32) -> (i32, i32) {
    %c0_i32 = arith.constant 0 : i32
    %c0_i32_0 = arith.constant 0 : i32
    return %arg0, %c0_i32 : i32, i32
  }
  func.func @transform_9(%arg0: i32) -> (i32, i32) {
    %c0_i32 = arith.constant 0 : i32
    %c0_i32_0 = arith.constant 0 : i32
    return %arg0, %c0_i32 : i32, i32
  }
}

module attributes {stable_mosaic.version = 11 : i64} {
  func.func @kernel(%arg0: i32, %arg1: memref<64x144xf32, #tpu.memory_space<vmem>>, %arg2: memref<144x16xf32, #tpu.memory_space<vmem>>, %arg3: memref<1x16xf32, #tpu.memory_space<vmem>>, %arg4: memref<16x24xf32, #tpu.memory_space<vmem>>, %arg5: memref<1x24xf32, #tpu.memory_space<vmem>>, %arg6: memref<64x12xf32, #tpu.memory_space<vmem>>, %arg7: memref<12x64xf32, #tpu.memory_space<vmem>>, %arg8: memref<1x64xf32, #tpu.memory_space<vmem>>, %arg9: memref<1x64xf32, #tpu.memory_space<vmem>>, %arg10: memref<1x1xf32, #tpu.memory_space<vmem>>, %arg11: memref<12x3xf32, #tpu.memory_space<vmem>>, %arg12: memref<64x24xf32, #tpu.memory_space<vmem>>, %arg13: memref<64x3xf32, #tpu.memory_space<vmem>>) attributes {dimension_semantics = [#tpu.dimension_semantics<parallel>], iteration_bounds = array<i64: 2>, scalar_prefetch = 0 : i64, scratch_operands = 0 : i64, tpu.core_type = #tpu.core_type<tc>, window_params = [{transform_indices = @transform_0, window_bounds = array<i64: 64, 144>}, {pipeline_mode = #tpu.pipeline_mode<synchronous>, transform_indices = @transform_1, window_bounds = array<i64: 144, 16>}, {pipeline_mode = #tpu.pipeline_mode<synchronous>, transform_indices = @transform_2, window_bounds = array<i64: 1, 16>}, {pipeline_mode = #tpu.pipeline_mode<synchronous>, transform_indices = @transform_3, window_bounds = array<i64: 16, 24>}, {pipeline_mode = #tpu.pipeline_mode<synchronous>, transform_indices = @transform_4, window_bounds = array<i64: 1, 24>}, {transform_indices = @transform_5, window_bounds = array<i64: 64, 12>}, {pipeline_mode = #tpu.pipeline_mode<synchronous>, transform_indices = @transform_6, window_bounds = array<i64: 12, 64>}, {pipeline_mode = #tpu.pipeline_mode<synchronous>, transform_indices = @transform_7, window_bounds = array<i64: 1, 64>}, {pipeline_mode = #tpu.pipeline_mode<synchronous>, transform_indices = @transform_8, window_bounds = array<i64: 1, 64>}, {pipeline_mode = #tpu.pipeline_mode<synchronous>, transform_indices = @transform_9, window_bounds = array<i64: 1, 1>}, {pipeline_mode = #tpu.pipeline_mode<synchronous>, transform_indices = @transform_10, window_bounds = array<i64: 12, 3>}, {transform_indices = @transform_11, window_bounds = array<i64: 64, 24>}, {transform_indices = @transform_12, window_bounds = array<i64: 64, 3>}]} {
    %c0 = arith.constant 0 : index
    %c0_0 = arith.constant 0 : index
    %0 = vector.load %arg6[%c0, %c0_0] : memref<64x12xf32, #tpu.memory_space<vmem>>, vector<64x12xf32>
    %c0_1 = arith.constant 0 : index
    %c0_2 = arith.constant 0 : index
    %1 = vector.load %arg7[%c0_1, %c0_2] : memref<12x64xf32, #tpu.memory_space<vmem>>, vector<12x64xf32>
    %cst = arith.constant dense<0.000000e+00> : vector<64x64xf32>
    %2 = tpu.matmul %0, %1, %cst {dimension_numbers = #tpu.dot_dimension_numbers<[1], [0], [0], [1], [0, 0, 1, 1], [], []>} : vector<64x12xf32>, vector<12x64xf32>, vector<64x64xf32> -> vector<64x64xf32>
    %c0_3 = arith.constant 0 : index
    %c0_4 = arith.constant 0 : index
    %3 = vector.load %arg8[%c0_3, %c0_4] : memref<1x64xf32, #tpu.memory_space<vmem>>, vector<1x64xf32>
    %4 = vector.broadcast %3 : vector<1x64xf32> to vector<64x64xf32>
    %5 = arith.addf %2, %4 : vector<64x64xf32>
    %cst_5 = arith.constant 0.000000e+00 : f32
    %6 = vector.broadcast %cst_5 : f32 to vector<64x64xf32>
    %7 = arith.maximumf %5, %6 : vector<64x64xf32>
    %c0_6 = arith.constant 0 : index
    %c0_7 = arith.constant 0 : index
    %8 = vector.load %arg9[%c0_6, %c0_7] : memref<1x64xf32, #tpu.memory_space<vmem>>, vector<1x64xf32>
    %9 = vector.broadcast %8 : vector<1x64xf32> to vector<64x64xf32>
    %10 = arith.mulf %7, %9 : vector<64x64xf32>
    %cst_8 = arith.constant dense<0.000000e+00> : vector<64xf32>
    %11 = vector.multi_reduction <add>, %10, %cst_8 [1] : vector<64x64xf32> to vector<64xf32>
    %12 = vector.shape_cast %11 : vector<64xf32> to vector<64x1xf32>
    %c0_9 = arith.constant 0 : index
    %c0_10 = arith.constant 0 : index
    %13 = vector.load %arg10[%c0_9, %c0_10] : memref<1x1xf32, #tpu.memory_space<vmem>>, vector<1x1xf32>
    %14 = vector.broadcast %13 : vector<1x1xf32> to vector<64x1xf32>
    %15 = arith.addf %12, %14 : vector<64x1xf32>
    %16 = arith.negf %15 : vector<64x1xf32>
    %17 = math.exp %16 : vector<64x1xf32>
    %cst_11 = arith.constant 1.000000e+00 : f32
    %18 = vector.broadcast %cst_11 : f32 to vector<64x1xf32>
    %19 = arith.addf %18, %17 : vector<64x1xf32>
    %20 = arith.divf %18, %19 : vector<64x1xf32>
    %c0_12 = arith.constant 0 : index
    %c0_13 = arith.constant 0 : index
    %21 = vector.load %arg1[%c0_12, %c0_13] : memref<64x144xf32, #tpu.memory_space<vmem>>, vector<64x144xf32>
    %c0_14 = arith.constant 0 : index
    %c0_15 = arith.constant 0 : index
    %22 = vector.load %arg2[%c0_14, %c0_15] : memref<144x16xf32, #tpu.memory_space<vmem>>, vector<144x16xf32>
    %cst_16 = arith.constant dense<0.000000e+00> : vector<64x16xf32>
    %23 = tpu.matmul %21, %22, %cst_16 {dimension_numbers = #tpu.dot_dimension_numbers<[1], [0], [0], [1], [0, 0, 1, 1], [], []>} : vector<64x144xf32>, vector<144x16xf32>, vector<64x16xf32> -> vector<64x16xf32>
    %c0_17 = arith.constant 0 : index
    %c0_18 = arith.constant 0 : index
    %24 = vector.load %arg3[%c0_17, %c0_18] : memref<1x16xf32, #tpu.memory_space<vmem>>, vector<1x16xf32>
    %25 = vector.broadcast %24 : vector<1x16xf32> to vector<64x16xf32>
    %26 = arith.addf %23, %25 : vector<64x16xf32>
    %cst_19 = arith.constant 0.000000e+00 : f32
    %27 = vector.broadcast %cst_19 : f32 to vector<64x16xf32>
    %28 = arith.maximumf %26, %27 : vector<64x16xf32>
    %c0_20 = arith.constant 0 : index
    %c0_21 = arith.constant 0 : index
    %29 = vector.load %arg4[%c0_20, %c0_21] : memref<16x24xf32, #tpu.memory_space<vmem>>, vector<16x24xf32>
    %cst_22 = arith.constant dense<0.000000e+00> : vector<64x24xf32>
    %30 = tpu.matmul %28, %29, %cst_22 {dimension_numbers = #tpu.dot_dimension_numbers<[1], [0], [0], [1], [0, 0, 1, 1], [], []>} : vector<64x16xf32>, vector<16x24xf32>, vector<64x24xf32> -> vector<64x24xf32>
    %c0_23 = arith.constant 0 : index
    %c0_24 = arith.constant 0 : index
    %31 = vector.load %arg5[%c0_23, %c0_24] : memref<1x24xf32, #tpu.memory_space<vmem>>, vector<1x24xf32>
    %32 = vector.broadcast %31 : vector<1x24xf32> to vector<64x24xf32>
    %33 = arith.addf %30, %32 : vector<64x24xf32>
    %34 = vector.broadcast %20 : vector<64x1xf32> to vector<64x24xf32>
    %35 = arith.mulf %33, %34 : vector<64x24xf32>
    %c0_25 = arith.constant 0 : index
    %c0_26 = arith.constant 0 : index
    %36 = vector.load %arg12[%c0_25, %c0_26] : memref<64x24xf32, #tpu.memory_space<vmem>>, vector<64x24xf32>
    tpu.vector_store %arg12[%c0_25, %c0_26], %35 {strides = array<i32>} : memref<64x24xf32, #tpu.memory_space<vmem>>, vector<64x24xf32>,
    %c0_27 = arith.constant 0 : index
    %c0_28 = arith.constant 0 : index
    %37 = vector.load %arg11[%c0_27, %c0_28] : memref<12x3xf32, #tpu.memory_space<vmem>>, vector<12x3xf32>
    %cst_29 = arith.constant dense<0.000000e+00> : vector<64x3xf32>
    %38 = tpu.matmul %0, %37, %cst_29 {dimension_numbers = #tpu.dot_dimension_numbers<[1], [0], [0], [1], [0, 0, 1, 1], [], []>} : vector<64x12xf32>, vector<12x3xf32>, vector<64x3xf32> -> vector<64x3xf32>
    %c0_30 = arith.constant 0 : index
    %c0_31 = arith.constant 0 : index
    %39 = vector.load %arg13[%c0_30, %c0_31] : memref<64x3xf32, #tpu.memory_space<vmem>>, vector<64x3xf32>
    tpu.vector_store %arg13[%c0_30, %c0_31], %38 {strides = array<i32>} : memref<64x3xf32, #tpu.memory_space<vmem>>, vector<64x3xf32>,
    return
  }
  func.func @transform_0(%arg0: i32) -> (i32, i32) {
    %c0_i32 = arith.constant 0 : i32
    %c0_i32_0 = arith.constant 0 : i32
    return %arg0, %c0_i32 : i32, i32
  }
  func.func @transform_1(%arg0: i32) -> (i32, i32) {
    %c0_i32 = arith.constant 0 : i32
    %c0_i32_0 = arith.constant 0 : i32
    %c0_i32_1 = arith.constant 0 : i32
    return %c0_i32, %c0_i32_0 : i32, i32
  }
  func.func @transform_2(%arg0: i32) -> (i32, i32) {
    %c0_i32 = arith.constant 0 : i32
    %c0_i32_0 = arith.constant 0 : i32
    %c0_i32_1 = arith.constant 0 : i32
    return %c0_i32, %c0_i32_0 : i32, i32
  }
  func.func @transform_3(%arg0: i32) -> (i32, i32) {
    %c0_i32 = arith.constant 0 : i32
    %c0_i32_0 = arith.constant 0 : i32
    %c0_i32_1 = arith.constant 0 : i32
    return %c0_i32, %c0_i32_0 : i32, i32
  }
  func.func @transform_4(%arg0: i32) -> (i32, i32) {
    %c0_i32 = arith.constant 0 : i32
    %c0_i32_0 = arith.constant 0 : i32
    %c0_i32_1 = arith.constant 0 : i32
    return %c0_i32, %c0_i32_0 : i32, i32
  }
  func.func @transform_5(%arg0: i32) -> (i32, i32) {
    %c0_i32 = arith.constant 0 : i32
    %c0_i32_0 = arith.constant 0 : i32
    return %arg0, %c0_i32 : i32, i32
  }
  func.func @transform_6(%arg0: i32) -> (i32, i32) {
    %c0_i32 = arith.constant 0 : i32
    %c0_i32_0 = arith.constant 0 : i32
    %c0_i32_1 = arith.constant 0 : i32
    return %c0_i32, %c0_i32_0 : i32, i32
  }
  func.func @transform_7(%arg0: i32) -> (i32, i32) {
    %c0_i32 = arith.constant 0 : i32
    %c0_i32_0 = arith.constant 0 : i32
    %c0_i32_1 = arith.constant 0 : i32
    return %c0_i32, %c0_i32_0 : i32, i32
  }
  func.func @transform_8(%arg0: i32) -> (i32, i32) {
    %c0_i32 = arith.constant 0 : i32
    %c0_i32_0 = arith.constant 0 : i32
    %c0_i32_1 = arith.constant 0 : i32
    return %c0_i32, %c0_i32_0 : i32, i32
  }
  func.func @transform_9(%arg0: i32) -> (i32, i32) {
    %c0_i32 = arith.constant 0 : i32
    %c0_i32_0 = arith.constant 0 : i32
    %c0_i32_1 = arith.constant 0 : i32
    return %c0_i32, %c0_i32_0 : i32, i32
  }
  func.func @transform_10(%arg0: i32) -> (i32, i32) {
    %c0_i32 = arith.constant 0 : i32
    %c0_i32_0 = arith.constant 0 : i32
    %c0_i32_1 = arith.constant 0 : i32
    return %c0_i32, %c0_i32_0 : i32, i32
  }
  func.func @transform_11(%arg0: i32) -> (i32, i32) {
    %c0_i32 = arith.constant 0 : i32
    %c0_i32_0 = arith.constant 0 : i32
    return %arg0, %c0_i32 : i32, i32
  }
  func.func @transform_12(%arg0: i32) -> (i32, i32) {
    %c0_i32 = arith.constant 0 : i32
    %c0_i32_0 = arith.constant 0 : i32
    return %arg0, %c0_i32 : i32, i32
  }
}

module attributes {stable_mosaic.version = 11 : i64} {
  func.func @kernel(%arg0: i32, %arg1: memref<16x216xf32, #tpu.memory_space<vmem>>, %arg2: memref<216x24xf32, #tpu.memory_space<vmem>>, %arg3: memref<1x24xf32, #tpu.memory_space<vmem>>, %arg4: memref<24x40xf32, #tpu.memory_space<vmem>>, %arg5: memref<1x40xf32, #tpu.memory_space<vmem>>, %arg6: memref<16x12xf32, #tpu.memory_space<vmem>>, %arg7: memref<12x64xf32, #tpu.memory_space<vmem>>, %arg8: memref<1x64xf32, #tpu.memory_space<vmem>>, %arg9: memref<1x64xf32, #tpu.memory_space<vmem>>, %arg10: memref<1x1xf32, #tpu.memory_space<vmem>>, %arg11: memref<40x64xf32, #tpu.memory_space<vmem>>, %arg12: memref<1x64xf32, #tpu.memory_space<vmem>>, %arg13: memref<16x64xf32, #tpu.memory_space<vmem>>) attributes {dimension_semantics = [#tpu.dimension_semantics<parallel>], iteration_bounds = array<i64: 2>, scalar_prefetch = 0 : i64, scratch_operands = 0 : i64, tpu.core_type = #tpu.core_type<tc>, window_params = [{transform_indices = @transform_0, window_bounds = array<i64: 16, 216>}, {pipeline_mode = #tpu.pipeline_mode<synchronous>, transform_indices = @transform_1, window_bounds = array<i64: 216, 24>}, {pipeline_mode = #tpu.pipeline_mode<synchronous>, transform_indices = @transform_2, window_bounds = array<i64: 1, 24>}, {pipeline_mode = #tpu.pipeline_mode<synchronous>, transform_indices = @transform_3, window_bounds = array<i64: 24, 40>}, {pipeline_mode = #tpu.pipeline_mode<synchronous>, transform_indices = @transform_4, window_bounds = array<i64: 1, 40>}, {transform_indices = @transform_5, window_bounds = array<i64: 16, 12>}, {pipeline_mode = #tpu.pipeline_mode<synchronous>, transform_indices = @transform_6, window_bounds = array<i64: 12, 64>}, {pipeline_mode = #tpu.pipeline_mode<synchronous>, transform_indices = @transform_7, window_bounds = array<i64: 1, 64>}, {pipeline_mode = #tpu.pipeline_mode<synchronous>, transform_indices = @transform_8, window_bounds = array<i64: 1, 64>}, {pipeline_mode = #tpu.pipeline_mode<synchronous>, transform_indices = @transform_9, window_bounds = array<i64: 1, 1>}, {pipeline_mode = #tpu.pipeline_mode<synchronous>, transform_indices = @transform_10, window_bounds = array<i64: 40, 64>}, {pipeline_mode = #tpu.pipeline_mode<synchronous>, transform_indices = @transform_11, window_bounds = array<i64: 1, 64>}, {transform_indices = @transform_12, window_bounds = array<i64: 16, 64>}]} {
    %c0 = arith.constant 0 : index
    %c0_0 = arith.constant 0 : index
    %0 = vector.load %arg6[%c0, %c0_0] : memref<16x12xf32, #tpu.memory_space<vmem>>, vector<16x12xf32>
    %c0_1 = arith.constant 0 : index
    %c0_2 = arith.constant 0 : index
    %1 = vector.load %arg7[%c0_1, %c0_2] : memref<12x64xf32, #tpu.memory_space<vmem>>, vector<12x64xf32>
    %cst = arith.constant dense<0.000000e+00> : vector<16x64xf32>
    %2 = tpu.matmul %0, %1, %cst {dimension_numbers = #tpu.dot_dimension_numbers<[1], [0], [0], [1], [0, 0, 1, 1], [], []>} : vector<16x12xf32>, vector<12x64xf32>, vector<16x64xf32> -> vector<16x64xf32>
    %c0_3 = arith.constant 0 : index
    %c0_4 = arith.constant 0 : index
    %3 = vector.load %arg8[%c0_3, %c0_4] : memref<1x64xf32, #tpu.memory_space<vmem>>, vector<1x64xf32>
    %4 = vector.broadcast %3 : vector<1x64xf32> to vector<16x64xf32>
    %5 = arith.addf %2, %4 : vector<16x64xf32>
    %cst_5 = arith.constant 0.000000e+00 : f32
    %6 = vector.broadcast %cst_5 : f32 to vector<16x64xf32>
    %7 = arith.maximumf %5, %6 : vector<16x64xf32>
    %c0_6 = arith.constant 0 : index
    %c0_7 = arith.constant 0 : index
    %8 = vector.load %arg9[%c0_6, %c0_7] : memref<1x64xf32, #tpu.memory_space<vmem>>, vector<1x64xf32>
    %9 = vector.broadcast %8 : vector<1x64xf32> to vector<16x64xf32>
    %10 = arith.mulf %7, %9 : vector<16x64xf32>
    %cst_8 = arith.constant dense<0.000000e+00> : vector<16xf32>
    %11 = vector.multi_reduction <add>, %10, %cst_8 [1] : vector<16x64xf32> to vector<16xf32>
    %12 = vector.shape_cast %11 : vector<16xf32> to vector<16x1xf32>
    %c0_9 = arith.constant 0 : index
    %c0_10 = arith.constant 0 : index
    %13 = vector.load %arg10[%c0_9, %c0_10] : memref<1x1xf32, #tpu.memory_space<vmem>>, vector<1x1xf32>
    %14 = vector.broadcast %13 : vector<1x1xf32> to vector<16x1xf32>
    %15 = arith.addf %12, %14 : vector<16x1xf32>
    %16 = arith.negf %15 : vector<16x1xf32>
    %17 = math.exp %16 : vector<16x1xf32>
    %cst_11 = arith.constant 1.000000e+00 : f32
    %18 = vector.broadcast %cst_11 : f32 to vector<16x1xf32>
    %19 = arith.addf %18, %17 : vector<16x1xf32>
    %20 = arith.divf %18, %19 : vector<16x1xf32>
    %c0_12 = arith.constant 0 : index
    %c0_13 = arith.constant 0 : index
    %21 = vector.load %arg1[%c0_12, %c0_13] : memref<16x216xf32, #tpu.memory_space<vmem>>, vector<16x216xf32>
    %c0_14 = arith.constant 0 : index
    %c0_15 = arith.constant 0 : index
    %22 = vector.load %arg2[%c0_14, %c0_15] : memref<216x24xf32, #tpu.memory_space<vmem>>, vector<216x24xf32>
    %cst_16 = arith.constant dense<0.000000e+00> : vector<16x24xf32>
    %23 = tpu.matmul %21, %22, %cst_16 {dimension_numbers = #tpu.dot_dimension_numbers<[1], [0], [0], [1], [0, 0, 1, 1], [], []>} : vector<16x216xf32>, vector<216x24xf32>, vector<16x24xf32> -> vector<16x24xf32>
    %c0_17 = arith.constant 0 : index
    %c0_18 = arith.constant 0 : index
    %24 = vector.load %arg3[%c0_17, %c0_18] : memref<1x24xf32, #tpu.memory_space<vmem>>, vector<1x24xf32>
    %25 = vector.broadcast %24 : vector<1x24xf32> to vector<16x24xf32>
    %26 = arith.addf %23, %25 : vector<16x24xf32>
    %cst_19 = arith.constant 0.000000e+00 : f32
    %27 = vector.broadcast %cst_19 : f32 to vector<16x24xf32>
    %28 = arith.maximumf %26, %27 : vector<16x24xf32>
    %c0_20 = arith.constant 0 : index
    %c0_21 = arith.constant 0 : index
    %29 = vector.load %arg4[%c0_20, %c0_21] : memref<24x40xf32, #tpu.memory_space<vmem>>, vector<24x40xf32>
    %cst_22 = arith.constant dense<0.000000e+00> : vector<16x40xf32>
    %30 = tpu.matmul %28, %29, %cst_22 {dimension_numbers = #tpu.dot_dimension_numbers<[1], [0], [0], [1], [0, 0, 1, 1], [], []>} : vector<16x24xf32>, vector<24x40xf32>, vector<16x40xf32> -> vector<16x40xf32>
    %c0_23 = arith.constant 0 : index
    %c0_24 = arith.constant 0 : index
    %31 = vector.load %arg5[%c0_23, %c0_24] : memref<1x40xf32, #tpu.memory_space<vmem>>, vector<1x40xf32>
    %32 = vector.broadcast %31 : vector<1x40xf32> to vector<16x40xf32>
    %33 = arith.addf %30, %32 : vector<16x40xf32>
    %34 = vector.broadcast %20 : vector<16x1xf32> to vector<16x40xf32>
    %35 = arith.mulf %33, %34 : vector<16x40xf32>
    %c0_25 = arith.constant 0 : index
    %c0_26 = arith.constant 0 : index
    %36 = vector.load %arg11[%c0_25, %c0_26] : memref<40x64xf32, #tpu.memory_space<vmem>>, vector<40x64xf32>
    %cst_27 = arith.constant dense<0.000000e+00> : vector<16x64xf32>
    %37 = tpu.matmul %35, %36, %cst_27 {dimension_numbers = #tpu.dot_dimension_numbers<[1], [0], [0], [1], [0, 0, 1, 1], [], []>} : vector<16x40xf32>, vector<40x64xf32>, vector<16x64xf32> -> vector<16x64xf32>
    %c0_28 = arith.constant 0 : index
    %c0_29 = arith.constant 0 : index
    %38 = vector.load %arg12[%c0_28, %c0_29] : memref<1x64xf32, #tpu.memory_space<vmem>>, vector<1x64xf32>
    %39 = vector.broadcast %38 : vector<1x64xf32> to vector<16x64xf32>
    %40 = arith.addf %37, %39 : vector<16x64xf32>
    %cst_30 = arith.constant 0.000000e+00 : f32
    %41 = vector.broadcast %cst_30 : f32 to vector<16x64xf32>
    %42 = arith.maximumf %40, %41 : vector<16x64xf32>
    %c0_31 = arith.constant 0 : index
    %c0_32 = arith.constant 0 : index
    %43 = vector.load %arg13[%c0_31, %c0_32] : memref<16x64xf32, #tpu.memory_space<vmem>>, vector<16x64xf32>
    tpu.vector_store %arg13[%c0_31, %c0_32], %42 {strides = array<i32>} : memref<16x64xf32, #tpu.memory_space<vmem>>, vector<16x64xf32>,
    return
  }
  func.func @transform_0(%arg0: i32) -> (i32, i32) {
    %c0_i32 = arith.constant 0 : i32
    %c0_i32_0 = arith.constant 0 : i32
    return %arg0, %c0_i32 : i32, i32
  }
  func.func @transform_1(%arg0: i32) -> (i32, i32) {
    %c0_i32 = arith.constant 0 : i32
    %c0_i32_0 = arith.constant 0 : i32
    %c0_i32_1 = arith.constant 0 : i32
    return %c0_i32, %c0_i32_0 : i32, i32
  }
  func.func @transform_2(%arg0: i32) -> (i32, i32) {
    %c0_i32 = arith.constant 0 : i32
    %c0_i32_0 = arith.constant 0 : i32
    %c0_i32_1 = arith.constant 0 : i32
    return %c0_i32, %c0_i32_0 : i32, i32
  }
  func.func @transform_3(%arg0: i32) -> (i32, i32) {
    %c0_i32 = arith.constant 0 : i32
    %c0_i32_0 = arith.constant 0 : i32
    %c0_i32_1 = arith.constant 0 : i32
    return %c0_i32, %c0_i32_0 : i32, i32
  }
  func.func @transform_4(%arg0: i32) -> (i32, i32) {
    %c0_i32 = arith.constant 0 : i32
    %c0_i32_0 = arith.constant 0 : i32
    %c0_i32_1 = arith.constant 0 : i32
    return %c0_i32, %c0_i32_0 : i32, i32
  }
  func.func @transform_5(%arg0: i32) -> (i32, i32) {
    %c0_i32 = arith.constant 0 : i32
    %c0_i32_0 = arith.constant 0 : i32
    return %arg0, %c0_i32 : i32, i32
  }
  func.func @transform_6(%arg0: i32) -> (i32, i32) {
    %c0_i32 = arith.constant 0 : i32
    %c0_i32_0 = arith.constant 0 : i32
    %c0_i32_1 = arith.constant 0 : i32
    return %c0_i32, %c0_i32_0 : i32, i32
  }
  func.func @transform_7(%arg0: i32) -> (i32, i32) {
    %c0_i32 = arith.constant 0 : i32
    %c0_i32_0 = arith.constant 0 : i32
    %c0_i32_1 = arith.constant 0 : i32
    return %c0_i32, %c0_i32_0 : i32, i32
  }
  func.func @transform_8(%arg0: i32) -> (i32, i32) {
    %c0_i32 = arith.constant 0 : i32
    %c0_i32_0 = arith.constant 0 : i32
    %c0_i32_1 = arith.constant 0 : i32
    return %c0_i32, %c0_i32_0 : i32, i32
  }
  func.func @transform_9(%arg0: i32) -> (i32, i32) {
    %c0_i32 = arith.constant 0 : i32
    %c0_i32_0 = arith.constant 0 : i32
    %c0_i32_1 = arith.constant 0 : i32
    return %c0_i32, %c0_i32_0 : i32, i32
  }
  func.func @transform_10(%arg0: i32) -> (i32, i32) {
    %c0_i32 = arith.constant 0 : i32
    %c0_i32_0 = arith.constant 0 : i32
    %c0_i32_1 = arith.constant 0 : i32
    return %c0_i32, %c0_i32_0 : i32, i32
  }
  func.func @transform_11(%arg0: i32) -> (i32, i32) {
    %c0_i32 = arith.constant 0 : i32
    %c0_i32_0 = arith.constant 0 : i32
    %c0_i32_1 = arith.constant 0 : i32
    return %c0_i32, %c0_i32_0 : i32, i32
  }
  func.func @transform_12(%arg0: i32) -> (i32, i32) {
    %c0_i32 = arith.constant 0 : i32
    %c0_i32_0 = arith.constant 0 : i32
    return %arg0, %c0_i32 : i32, i32
  }
}

module attributes {stable_mosaic.version = 11 : i64} {
  func.func @kernel(%arg0: i32, %arg1: memref<2x16x64xf32, #tpu.memory_space<vmem>>, %arg2: memref<64x10xf32, #tpu.memory_space<vmem>>, %arg3: memref<1x10xf32, #tpu.memory_space<vmem>>, %arg4: memref<2x10xf32, #tpu.memory_space<vmem>>, %arg5: memref<2x64xf32, #tpu.memory_space<vmem>>) attributes {dimension_semantics = [#tpu.dimension_semantics<arbitrary>], iteration_bounds = array<i64: 1>, scalar_prefetch = 0 : i64, scratch_operands = 1 : i64, tpu.core_type = #tpu.core_type<tc>, window_params = [{transform_indices = @transform_0, window_bounds = array<i64: 2, 16, 64>}, {pipeline_mode = #tpu.pipeline_mode<synchronous>, transform_indices = @transform_1, window_bounds = array<i64: 64, 10>}, {pipeline_mode = #tpu.pipeline_mode<synchronous>, transform_indices = @transform_2, window_bounds = array<i64: 1, 10>}, {pipeline_mode = #tpu.pipeline_mode<synchronous>, transform_indices = @transform_3, window_bounds = array<i64: 2, 10>}]} {
    %c0_i32 = arith.constant 0 : i32
    %0 = arith.cmpi eq, %arg0, %c0_i32 : i32
    %1 = arith.extui %0 : i1 to i32
    %c0_i32_0 = arith.constant 0 : i32
    %2 = arith.cmpi ne, %1, %c0_i32_0 : i32
    scf.if %2 {
      %cst_9 = arith.constant 0.000000e+00 : f32
      %11 = vector.broadcast %cst_9 : f32 to vector<2x64xf32>
      %c0_10 = arith.constant 0 : index
      %c0_11 = arith.constant 0 : index
      %12 = vector.load %arg5[%c0_10, %c0_11] : memref<2x64xf32, #tpu.memory_space<vmem>>, vector<2x64xf32>
      tpu.vector_store %arg5[%c0_10, %c0_11], %11 {strides = array<i32>} : memref<2x64xf32, #tpu.memory_space<vmem>>, vector<2x64xf32>,
    } else {
    }
    %c0 = arith.constant 0 : index
    %c0_1 = arith.constant 0 : index
    %3 = vector.load %arg5[%c0, %c0_1] : memref<2x64xf32, #tpu.memory_space<vmem>>, vector<2x64xf32>
    %c0_2 = arith.constant 0 : index
    %c0_3 = arith.constant 0 : index
    %c0_4 = arith.constant 0 : index
    %4 = vector.load %arg1[%c0_2, %c0_3, %c0_4] : memref<2x16x64xf32, #tpu.memory_space<vmem>>, vector<2x16x64xf32>
    %cst = arith.constant dense<0.000000e+00> : vector<2x64xf32>
    %5 = vector.multi_reduction <add>, %4, %cst [1] : vector<2x16x64xf32> to vector<2x64xf32>
    %6 = arith.addf %3, %5 : vector<2x64xf32>
    %c0_5 = arith.constant 0 : index
    %c0_6 = arith.constant 0 : index
    %7 = vector.load %arg5[%c0_5, %c0_6] : memref<2x64xf32, #tpu.memory_space<vmem>>, vector<2x64xf32>
    tpu.vector_store %arg5[%c0_5, %c0_6], %6 {strides = array<i32>} : memref<2x64xf32, #tpu.memory_space<vmem>>, vector<2x64xf32>,
    %c0_i32_7 = arith.constant 0 : i32
    %8 = arith.cmpi eq, %arg0, %c0_i32_7 : i32
    %9 = arith.extui %8 : i1 to i32
    %c0_i32_8 = arith.constant 0 : i32
    %10 = arith.cmpi ne, %9, %c0_i32_8 : i32
    scf.if %10 {
      %c0_9 = arith.constant 0 : index
      %c0_10 = arith.constant 0 : index
      %11 = vector.load %arg5[%c0_9, %c0_10] : memref<2x64xf32, #tpu.memory_space<vmem>>, vector<2x64xf32>
      %cst_11 = arith.constant 6.250000e-02 : f32
      %12 = vector.broadcast %cst_11 : f32 to vector<2x64xf32>
      %13 = arith.mulf %11, %12 : vector<2x64xf32>
      %c0_12 = arith.constant 0 : index
      %c0_13 = arith.constant 0 : index
      %14 = vector.load %arg2[%c0_12, %c0_13] : memref<64x10xf32, #tpu.memory_space<vmem>>, vector<64x10xf32>
      %cst_14 = arith.constant dense<0.000000e+00> : vector<2x10xf32>
      %15 = tpu.matmul %13, %14, %cst_14 {dimension_numbers = #tpu.dot_dimension_numbers<[1], [0], [0], [1], [0, 0, 1, 1], [], []>} : vector<2x64xf32>, vector<64x10xf32>, vector<2x10xf32> -> vector<2x10xf32>
      %c0_15 = arith.constant 0 : index
      %c0_16 = arith.constant 0 : index
      %16 = vector.load %arg3[%c0_15, %c0_16] : memref<1x10xf32, #tpu.memory_space<vmem>>, vector<1x10xf32>
      %17 = vector.broadcast %16 : vector<1x10xf32> to vector<2x10xf32>
      %18 = arith.addf %15, %17 : vector<2x10xf32>
      %c0_17 = arith.constant 0 : index
      %c0_18 = arith.constant 0 : index
      %19 = vector.load %arg4[%c0_17, %c0_18] : memref<2x10xf32, #tpu.memory_space<vmem>>, vector<2x10xf32>
      tpu.vector_store %arg4[%c0_17, %c0_18], %18 {strides = array<i32>} : memref<2x10xf32, #tpu.memory_space<vmem>>, vector<2x10xf32>,
    } else {
    }
    return
  }
  func.func @transform_0(%arg0: i32) -> (i32, i32, i32) {
    %c0_i32 = arith.constant 0 : i32
    %c0_i32_0 = arith.constant 0 : i32
    %c0_i32_1 = arith.constant 0 : i32
    return %c0_i32, %arg0, %c0_i32_0 : i32, i32, i32
  }
  func.func @transform_1(%arg0: i32) -> (i32, i32) {
    %c0_i32 = arith.constant 0 : i32
    %c0_i32_0 = arith.constant 0 : i32
    %c0_i32_1 = arith.constant 0 : i32
    return %c0_i32, %c0_i32_0 : i32, i32
  }
  func.func @transform_2(%arg0: i32) -> (i32, i32) {
    %c0_i32 = arith.constant 0 : i32
    %c0_i32_0 = arith.constant 0 : i32
    %c0_i32_1 = arith.constant 0 : i32
    return %c0_i32, %c0_i32_0 : i32, i32
  }
  func.func @transform_3(%arg0: i32) -> (i32, i32) {
    %c0_i32 = arith.constant 0 : i32
    %c0_i32_0 = arith.constant 0 : i32
    %c0_i32_1 = arith.constant 0 : i32
    return %c0_i32, %c0_i32_0 : i32, i32
  }
}

</mosaic_0001>

<bundles_post_ra>
// kernel: forward.4
= control target key start
LH: loop header
LB: loop body
LE: loop exit
PB: predicated region body
PF: predicated region fallthrough
CT: control target
= control target key end

     0   :  { %s2434_s11 = smov 0   ;;  %s3675_s0 = inlined_call_operand.vmem [shape: f32[512,27], index: 0, kind: input, shape index: {}]   ;;  %s3676_s1 = inlined_call_operand.vmem [shape: f32[27,16], index: 1, kind: input, shape index: {}]   ;;  %s3677_s2 = inlined_call_operand.vmem [shape: f32[1,16], index: 2, kind: input, shape index: {}]   ;;  %s3678_s3 = inlined_call_operand.vmem [shape: f32[27,64], index: 3, kind: input, shape index: {}]   ;;  %s3679_s4 = inlined_call_operand.vmem [shape: f32[1,64], index: 4, kind: input, shape index: {}]   ;;  %s3680_s5 = inlined_call_operand.vmem [shape: f32[1,64], index: 5, kind: input, shape index: {}]   ;;  %s3681_s6 = inlined_call_operand.<no memory space> [shape: f32[1,1], index: 6, kind: input, shape index: {}]   ;;  %s3682_s7 = inlined_call_operand.vmem [shape: f32[27,3], index: 7, kind: input, shape index: {}]   ;;  %s3683_s8 = inlined_call_operand.vmem [shape: f32[512,16], index: 8, kind: output, shape index: {0}]   ;;  %s3684_s9 = inlined_call_operand.vmem [shape: f32[512,3], index: 9, kind: output, shape index: {1}]  }
   0x1   :  { %v15_v0 = vstv %s3681_s6 }
   0x2   :  { %16 = vst [vmem:[#allocation2] sm:$0x1] %v15_v0 }
   0x3 LB: > { %s2039_s12 = sadd.s32 4294967295, %s2378_s11   ;;  %p2043_p0 = scmp.ge.s32.totalorder %s2378_s11, 1  ;;  %s2378_s11 = sphi %s2434_s11, %s22_s11  }
   0x4   : > { %p293_p1 = scmp.lt.s32.totalorder %s2378_s11, 3 }
   0x6   : > { %p294_p2 = pnand %p2043_p0, %p293_p1 }
   0x7   : > { %s2044_s16 = sshll.u32 (!%p294_p2), %s2039_s12, 5 }
   0x8   : > { %297 = sbr.rel (%p294_p2) target bundleno = 716 (0x2cc), region = 52  ;;  %p335_p3 = scmp.lt.s32.totalorder (!%p294_p2), %s2044_s16, 63 }
   0xd   : > { %v387_v1 = vld [vmem:[%s3678_s3 + $0x18] sm:$0x7]  ;;  %vm489_vm0 = vcmask 1042432   ;;  %v386_v2 = vld [vmem:[%s3678_s3 + $0x10] sm:$0xff]  ;;  %v385_v3 = vld [vmem:[%s3678_s3 + $0x8] sm:$0xff]  ;;  %s3720_s16 = smov (!%p335_p3, %s2044_s16), 63 }
   0xe   : > { %2050 = vmatpush.msk.msra.mxu0 %vm489_vm0, %v387_v1  ;;  %2183 = vmatpush.msk.msra.mxu3 %vm489_vm0, %v387_v1  ;;  %v384_v4 = vld [vmem:[%s3678_s3] sm:$0xff]  ;;  %s2456_s21 = sshll.u32 %s3720_s16, 3  ;;  %vm392_vm1 = vcmask 220160   ;;  %vm674_vm2 = vcmask 523264  }
   0xf   : > { %s2462_s24 = scalar_lea.vmem %s3675_s0, %s2456_s21  ;;  %v2587_v29 = vld [vmem:[%s3679_s4] ss:$0 sm:$0xff]  ;;  %s3162_s30 = scalar_lea.vmem %s3683_s8, %s2456_s21 }
  0x10   : > { %506 = vmatpush.msra.mxu0 %v386_v2  ;;  %2184 = vmatpush.msra.mxu3 %v386_v2  ;;  %v2465_v5 = vld [vmem:[%s2462_s24] sm:$0xff]  ;;  %v2475_v7 = vld [vmem:[%s2462_s24 + $0x8] sm:$0xff]  ;;  %v2485_v9 = vld [vmem:[%s2462_s24 + $0x10] sm:$0xff]  ;;  %s3464_s16 = scalar_lea.vmem %s3684_s9, %s2456_s21 }
  0x11   : > { %v2468_v6 = vld [vmem:[%s2462_s24 + $0xc0] sm:$0xff]  ;;  %v2478_v8 = vld [vmem:[%s2462_s24 + $0xc8] sm:$0xff]  ;;  %v2488_v10 = vld [vmem:[%s2462_s24 + $0xd0] sm:$0xff] }
  0x12   : > { %507 = vmatpush.msra.mxu0 %v385_v3  ;;  %2185 = vmatpush.msra.mxu3 %v385_v3  ;;  %v2495_v11 = vld [vmem:[%s2462_s24 + $0x18] sm:$0xff]  ;;  %v2505_v13 = vld [vmem:[%s2462_s24 + $0x20] sm:$0xff]  ;;  %v2515_v15 = vld [vmem:[%s2462_s24 + $0x28] sm:$0xff] }
  0x13   : > { %v2498_v12 = vld [vmem:[%s2462_s24 + $0xd8] sm:$0xff]  ;;  %v2508_v14 = vld [vmem:[%s2462_s24 + $0xe0] sm:$0xff]  ;;  %v2518_v16 = vld [vmem:[%s2462_s24 + $0xe8] sm:$0xff] }
  0x14   : > { %508 = vmatpush.msra.mxu0 %v384_v4  ;;  %2186 = vmatpush.msra.mxu3 %v384_v4  ;;  %v2525_v17 = vld [vmem:[%s2462_s24 + $0x30] sm:$0xff]  ;;  %v2535_v19 = vld [vmem:[%s2462_s24 + $0x38] sm:$0xff]  ;;  %v2545_v21 = vld [vmem:[%s2462_s24 + $0x40] sm:$0xff] }
  0x15   : > { %2051 = vmatmul.msk.f32.vlgmr.msra.gmra.mxu0 %vm392_vm1, %v2465_v5  ;;  %2075 = vmatmul.msk.f32.vlgmr.msra.gmra.mxu3 %vm392_vm1, %v2468_v6  ;;  %v2528_v18 = vld [vmem:[%s2462_s24 + $0xf0] sm:$0xff]  ;;  %v2538_v20 = vld [vmem:[%s2462_s24 + $0xf8] sm:$0xff]  ;;  %v2550_v22 = vld [vmem:[%s2462_s24 + $0x48] sm:$0xff] }
  0x16   : > { %v2555_v23 = vld [vmem:[%s2462_s24 + $0x50] sm:$0xff]  ;;  %v2560_v24 = vld [vmem:[%s2462_s24 + $0x58] sm:$0xff]  ;;  %v2565_v25 = vld [vmem:[%s2462_s24 + $0x60] sm:$0xff] }
  0x17   : > { %v2570_v26 = vld [vmem:[%s2462_s24 + $0x68] sm:$0xff]  ;;  %v2575_v27 = vld [vmem:[%s2462_s24 + $0x70] sm:$0xff]  ;;  %v2580_v28 = vld [vmem:[%s2462_s24 + $0x78] sm:$0xff] }
  0x18   : > { %v2590_v31 = vld [vmem:[%s2462_s24 + $0x80] sm:$0xff]  ;;  %v2604_v40 = vld [vmem:[%s2462_s24 + $0x88] sm:$0xff]  ;;  %v370_v49 = vld [vmem:[%s2462_s24 + $0x90] sm:$0xff] }
  0x19   : > { %v2596_v33 = vld [vmem:[%s3680_s5] ss:$0 sm:$0xff]  ;;  %v371_v60 = vld [vmem:[%s2462_s24 + $0x98] sm:$0xff] }
  0x1d   : > { %2052 = vmatmul.msk.f32.gmra.mxu0 %vm392_vm1, %v2475_v7  ;;  %2076 = vmatmul.msk.f32.gmra.mxu3 %vm392_vm1, %v2478_v8 }
  0x25   : > { %2053 = vmatmul.msk.f32.gmra.mxu0 %vm392_vm1, %v2485_v9  ;;  %2077 = vmatmul.msk.f32.gmra.mxu3 %vm392_vm1, %v2488_v10 }
  0x2d   : > { %2054 = vmatmul.msk.f32.gmra.mxu0 %vm392_vm1, %v2495_v11  ;;  %2078 = vmatmul.msk.f32.gmra.mxu3 %vm392_vm1, %v2498_v12 }
  0x35   : > { %2055 = vmatmul.msk.f32.gmra.mxu0 %vm392_vm1, %v2505_v13  ;;  %2079 = vmatmul.msk.f32.gmra.mxu3 %vm392_vm1, %v2508_v14 }
  0x3d   : > { %2056 = vmatmul.msk.f32.gmra.mxu0 %vm392_vm1, %v2515_v15  ;;  %2080 = vmatmul.msk.f32.gmra.mxu3 %vm392_vm1, %v2518_v16 }
  0x45   : > { %2057 = vmatmul.msk.f32.gmra.mxu0 %vm392_vm1, %v2525_v17  ;;  %2081 = vmatmul.msk.f32.gmra.mxu3 %vm392_vm1, %v2528_v18 }
  0x4d   : > { %2058 = vmatmul.msk.f32.gmra.mxu0 %vm392_vm1, %v2535_v19  ;;  %2082 = vmatmul.msk.f32.gmra.mxu3 %vm392_vm1, %v2538_v20 }
  0x55   : > { %2059 = vmatmul.msk.f32.gmra.mxu0 %vm392_vm1, %v2545_v21 }
  0x5d   : > { %2060 = vmatmul.msk.f32.gmra.mxu0 %vm392_vm1, %v2550_v22 }
  0x65   : > { %2061 = vmatmul.msk.f32.gmra.mxu0 %vm392_vm1, %v2555_v23 }
  0x6d   : > { %2062 = vmatmul.msk.f32.gmra.mxu0 %vm392_vm1, %v2560_v24 }
  0x75   : > { %2063 = vmatmul.msk.f32.gmra.mxu0 %vm392_vm1, %v2565_v25 }
  0x7d   : > { %2064 = vmatmul.msk.f32.gmra.mxu0 %vm392_vm1, %v2570_v26 }
  0x85   : > { %2065 = vmatmul.msk.f32.gmra.mxu0 %vm392_vm1, %v2575_v27 }
  0x8d   : > { %2066 = vmatmul.msk.f32.gmra.mxu0 %vm392_vm1, %v2580_v28 }
  0x92   : > { %v510_v30 = vpop.f32.mrf.mxu0 }
  0x93   : > { %v511_v32 = vadd.f32 %v2587_v29, %v510_v30 }
  0x95   : > { %v606_v34 = vmax.f32 %v511_v32, 0.0  ;;  %2067 = vmatmul.msk.f32.gmra.mxu0 %vm392_vm1, %v2590_v31 }
  0x97   : > { %v642_v35 = vmul.f32 %v2596_v33, %v606_v34 }
  0x98   : > { %v582_v36 = vpop.f32.mrf.mxu3 }
  0x99   : > { %v583_v37 = vadd.f32 %v2587_v29, %v582_v36  ;;  %v675_v38 = vsel %vm674_vm2, %v642_v35, 0.0 }
  0x9a   : > { %v513_v39 = vpop.f32.mrf.mxu0  ;;  %676 = vadd.xlane.f32.xlu0 %v675_v38 }
  0x9b   : > { %v630_v41 = vmax.f32 %v583_v37, 0.0  ;;  %v514_v42 = vadd.f32 %v2587_v29, %v513_v39 }
  0x9d   : > { %2068 = vmatmul.msk.f32.gmra.mxu0 %vm392_vm1, %v2604_v40  ;;  %v666_v43 = vmul.f32 %v2596_v33, %v630_v41  ;;  %v607_v46 = vmax.f32 %v514_v42, 0.0 }
  0x9f   : > { %v747_v44 = vsel %vm674_vm2, %v666_v43, 0.0  ;;  %v643_v53 = vmul.f32 %v2596_v33, %v607_v46 }
  0xa0   : > { %v585_v45 = vpop.f32.mrf.mxu3 }
  0xa1   : > { %v586_v47 = vadd.f32 %v2587_v29, %v585_v45  ;;  %v678_v58 = vsel %vm674_vm2, %v643_v53, 0.0 }
  0xa2   : > { %v516_v48 = vpop.f32.mrf.mxu0  ;;  %748 = vadd.xlane.f32.xlu0 %v747_v44 }
  0xa3   : > { %v631_v50 = vmax.f32 %v586_v47, 0.0  ;;  %v517_v51 = vadd.f32 %v2587_v29, %v516_v48  ;;  %v372_v47 = vld [vmem:[%s2462_s24 + $0xa0] sm:$0xff] }
  0xa5   : > { %2069 = vmatmul.msk.f32.gmra.mxu0 %vm392_vm1, %v370_v49  ;;  %v667_v52 = vmul.f32 %v2596_v33, %v631_v50  ;;  %v608_v54 = vmax.f32 %v517_v51, 0.0 }
  0xa7   : > { %v750_v55 = vsel %vm674_vm2, %v667_v52, 0.0  ;;  %v644_v63 = vmul.f32 %v2596_v33, %v608_v54 }
  0xa8   : > { %751 = vadd.xlane.f32.xlu1 %v750_v55  ;;  %v588_v56 = vpop.f32.mrf.mxu3 }
  0xa9   : > { %v589_v57 = vadd.f32 %v2587_v29, %v588_v56  ;;  %v681_v2 = vsel %vm674_vm2, %v644_v63, 0.0 }
  0xaa   : > { %v519_v59 = vpop.f32.mrf.mxu0  ;;  %679 = vadd.xlane.f32.xlu0 %v678_v58  ;;  %v373_v58 = vld [vmem:[%s2462_s24 + $0xa8] sm:$0xff] }
  0xab   : > { %v520_v61 = vadd.f32 %v2587_v29, %v519_v59  ;;  %v632_v62 = vmax.f32 %v589_v57, 0.0 }
  0xad   : > { %2070 = vmatmul.msk.f32.gmra.mxu0 %vm392_vm1, %v371_v60  ;;  %v668_v0 = vmul.f32 %v2596_v33, %v632_v62  ;;  %v609_v1 = vmax.f32 %v520_v61, 0.0 }
  0xaf   : > { %v753_v3 = vsel %vm674_vm2, %v668_v0, 0.0  ;;  %v645_v35 = vmul.f32 %v2596_v33, %v609_v1 }
  0xb0   : > { %682 = vadd.xlane.f32.xlu1 %v681_v2  ;;  %754 = vadd.xlane.f32.xlu2 %v753_v3  ;;  %v591_v4 = vpop.f32.mrf.mxu3 }
  0xb1   : > { %v592_v30 = vadd.f32 %v2587_v29, %v591_v4  ;;  %v684_v39 = vsel %vm674_vm2, %v645_v35, 0.0 }
  0xb2   : > { %v522_v32 = vpop.f32.mrf.mxu0 }
  0xb3   : > { %v523_v34 = vadd.f32 %v2587_v29, %v522_v32  ;;  %v633_v36 = vmax.f32 %v592_v30, 0.0 }
  0xb5   : > { %v610_v37 = vmax.f32 %v523_v34, 0.0  ;;  %v669_v38 = vmul.f32 %v2596_v33, %v633_v36  ;;  %2071 = vmatmul.msk.f32.gmra.mxu0 %vm392_vm1, %v372_v47  ;;  %v374_v47 = vld [vmem:[%s2462_s24 + $0xb0] sm:$0xff] }
  0xb7   : > { %v646_v41 = vmul.f32 %v2596_v33, %v610_v37  ;;  %v756_v42 = vsel %vm674_vm2, %v669_v38, 0.0 }
  0xb8   : > { %685 = vadd.xlane.f32.xlu1 %v684_v39  ;;  %v594_v43 = vpop.f32.mrf.mxu3  ;;  %757 = vadd.xlane.f32.xlu0 %v756_v42 }
  0xb9   : > { %v687_v44 = vsel %vm674_vm2, %v646_v41, 0.0  ;;  %v595_v45 = vadd.f32 %v2587_v29, %v594_v43 }
  0xba   : > { %v525_v46 = vpop.f32.mrf.mxu0  ;;  %688 = vadd.xlane.f32.xlu2 %v687_v44 }
  0xbb   : > { %v526_v48 = vadd.f32 %v2587_v29, %v525_v46  ;;  %v634_v49 = vmax.f32 %v595_v45, 0.0 }
  0xbd   : > { %v611_v50 = vmax.f32 %v526_v48, 0.0  ;;  %v670_v51 = vmul.f32 %v2596_v33, %v634_v49  ;;  %2072 = vmatmul.msk.f32.gmra.mxu0 %vm392_vm1, %v373_v58 }
  0xbf   : > { %v647_v52 = vmul.f32 %v2596_v33, %v611_v50  ;;  %v759_v53 = vsel %vm674_vm2, %v670_v51, 0.0 }
  0xc0   : > { %v597_v54 = vpop.f32.mrf.mxu3  ;;  %760 = vadd.xlane.f32.xlu1 %v759_v53 }
  0xc1   : > { %v690_v55 = vsel %vm674_vm2, %v647_v52, 0.0  ;;  %v598_v56 = vadd.f32 %v2587_v29, %v597_v54 }
  0xc2   : > { %v528_v57 = vpop.f32.mrf.mxu0  ;;  %691 = vadd.xlane.f32.xlu2 %v690_v55 }
  0xc3   : > { %v529_v59 = vadd.f32 %v2587_v29, %v528_v57  ;;  %v635_v60 = vmax.f32 %v598_v56, 0.0 }
  0xc5   : > { %v612_v61 = vmax.f32 %v529_v59, 0.0  ;;  %v671_v62 = vmul.f32 %v2596_v33, %v635_v60  ;;  %2073 = vmatmul.msk.f32.gmra.mxu0 %vm392_vm1, %v374_v47 }
  0xc7   : > { %v648_v63 = vmul.f32 %v2596_v33, %v612_v61  ;;  %v762_v0 = vsel %vm674_vm2, %v671_v62, 0.0 }
  0xc8   : > { %v600_v1 = vpop.f32.mrf.mxu3 }
  0xc9   : > { %v693_v2 = vsel %vm674_vm2, %v648_v63, 0.0  ;;  %v601_v3 = vadd.f32 %v2587_v29, %v600_v1 }
  0xca   : > { %v531_v4 = vpop.f32.mrf.mxu0  ;;  %694 = vadd.xlane.f32.xlu0 %v693_v2  ;;  %763 = vadd.xlane.f32.xlu2 %v762_v0 }
  0xcb   : > { %v532_v30 = vadd.f32 %v2587_v29, %v531_v4  ;;  %v636_v32 = vmax.f32 %v601_v3, 0.0  ;;  %v1418_v4 = vld [vmem:[%s3676_s1 + $0x18] sm:$0x7] }
  0xcc   : > { %2115 = vmatpush.msk.msra.mxu1 %vm489_vm0, %v1418_v4  ;;  %2187 = vmatpush.msk.msrb.mxu3 %vm489_vm0, %v1418_v4 }
  0xcd   : > { %v613_v34 = vmax.f32 %v532_v30, 0.0  ;;  %v672_v35 = vmul.f32 %v2596_v33, %v636_v32  ;;  %v1417_v32 = vld [vmem:[%s3676_s1 + $0x10] sm:$0xff] }
  0xce   : > { %1439 = vmatpush.msra.mxu1 %v1417_v32  ;;  %2188 = vmatpush.msrb.mxu3 %v1417_v32 }
  0xcf   : > { %v649_v36 = vmul.f32 %v2596_v33, %v613_v34  ;;  %v765_v37 = vsel %vm674_vm2, %v672_v35, 0.0  ;;  %v1416_v35 = vld [vmem:[%s3676_s1 + $0x8] sm:$0xff] }
  0xd0   : > { %v603_v38 = vpop.f32.mrf.mxu3  ;;  %1440 = vmatpush.msra.mxu1 %v1416_v35  ;;  %2189 = vmatpush.msrb.mxu3 %v1416_v35 }
  0xd1   : > { %v696_v39 = vsel %vm674_vm2, %v649_v36, 0.0  ;;  %v604_v41 = vadd.f32 %v2587_v29, %v603_v38  ;;  %v1415_v38 = vld [vmem:[%s3676_s1] sm:$0xff] }
  0xd2   : > { %v534_v42 = vpop.f32.mrf.mxu0  ;;  %697 = vadd.xlane.f32.xlu1 %v696_v39  ;;  %766 = vadd.xlane.f32.xlu0 %v765_v37 }
  0xd3   : > { %v535_v43 = vadd.f32 %v2587_v29, %v534_v42  ;;  %v637_v44 = vmax.f32 %v604_v41, 0.0  ;;  %1441 = vmatpush.msra.mxu1 %v1415_v38  ;;  %2190 = vmatpush.msrb.mxu3 %v1415_v38 }
  0xd4   : > { %2116 = vmatmul.msk.f32.vlgmr.msra.gmra.mxu1 %vm392_vm1, %v2465_v5  ;;  %2140 = vmatmul.msk.f32.vlgmr.msrb.gmra.mxu3 %vm392_vm1, %v2468_v6 }
  0xd5   : > { %v614_v45 = vmax.f32 %v535_v43, 0.0  ;;  %v673_v46 = vmul.f32 %v2596_v33, %v637_v44 }
  0xd7   : > { %v650_v48 = vmul.f32 %v2596_v33, %v614_v45  ;;  %v768_v49 = vsel %vm674_vm2, %v673_v46, 0.0 }
  0xd9   : > { %v699_v50 = vsel %vm674_vm2, %v650_v48, 0.0 }
  0xda   : > { %v537_v51 = vpop.f32.mrf.mxu0  ;;  %700 = vadd.xlane.f32.xlu2 %v699_v50  ;;  %769 = vadd.xlane.f32.xlu1 %v768_v49  ;;  %v2705_v50 = vld [vmem:[#allocation2] ss:$0 sm:$0xff] }
  0xdb   : > { %v538_v52 = vadd.f32 %v2587_v29, %v537_v51 }
  0xdc   : > { %2117 = vmatmul.msk.f32.gmra.mxu1 %vm392_vm1, %v2475_v7  ;;  %2141 = vmatmul.msk.f32.gmra.mxu3 %vm392_vm1, %v2478_v8 }
  0xdd   : > { %v615_v53 = vmax.f32 %v538_v52, 0.0 }
  0xdf   : > { %v651_v54 = vmul.f32 %v2596_v33, %v615_v53 }
  0xe1   : > { %v702_v55 = vsel %vm674_vm2, %v651_v54, 0.0 }
  0xe2   : > { %v540_v56 = vpop.f32.mrf.mxu0  ;;  %703 = vadd.xlane.f32.xlu0 %v702_v55 }
  0xe3   : > { %v541_v57 = vadd.f32 %v2587_v29, %v540_v56 }
  0xe4   : > { %2118 = vmatmul.msk.f32.gmra.mxu1 %vm392_vm1, %v2485_v9  ;;  %2142 = vmatmul.msk.f32.gmra.mxu3 %vm392_vm1, %v2488_v10 }
  0xe5   : > { %v616_v58 = vmax.f32 %v541_v57, 0.0 }
  0xe7   : > { %v652_v59 = vmul.f32 %v2596_v33, %v616_v58 }
  0xe9   : > { %v705_v60 = vsel %vm674_vm2, %v652_v59, 0.0 }
  0xea   : > { %v543_v61 = vpop.f32.mrf.mxu0  ;;  %706 = vadd.xlane.f32.xlu1 %v705_v60  ;;  %v375_v60 = vld [vmem:[%s2462_s24 + $0xb8] sm:$0xff] }
  0xeb   : > { %v544_v62 = vadd.f32 %v2587_v29, %v543_v61  ;;  %2074 = vmatmul.msk.f32.gmra.mxu0 %vm392_vm1, %v375_v60 }
  0xec   : > { %2119 = vmatmul.msk.f32.gmra.mxu1 %vm392_vm1, %v2495_v11  ;;  %2143 = vmatmul.msk.f32.gmra.mxu3 %vm392_vm1, %v2498_v12 }
  0xed   : > { %v617_v63 = vmax.f32 %v544_v62, 0.0 }
  0xef   : > { %v653_v0 = vmul.f32 %v2596_v33, %v617_v63 }
  0xf1   : > { %v708_v1 = vsel %vm674_vm2, %v653_v0, 0.0 }
  0xf2   : > { %v546_v2 = vpop.f32.mrf.mxu0  ;;  %709 = vadd.xlane.f32.xlu2 %v708_v1 }
  0xf3   : > { %v547_v3 = vadd.f32 %v2587_v29, %v546_v2  ;;  %v2380_v2 = vmov 0  }
  0xf4   : > { %2204 = vset.pattern.permute.xlu2 %v2380_v2  ;;  %2205 = vset.pattern.permute.xlu0 %v2380_v2 }
  0xf5   : > { %v618_v30 = vmax.f32 %v547_v3, 0.0  ;;  %2206 = vset.pattern.permute.xlu1 %v2380_v2  ;;  %2120 = vmatmul.msk.f32.gmra.mxu1 %vm392_vm1, %v2505_v13 }
  0xf6   : > { %2144 = vmatmul.msk.f32.gmra.mxu3 %vm392_vm1, %v2508_v14 }
  0xf7   : > { %v654_v34 = vmul.f32 %v2596_v33, %v618_v30 }
  0xf9   : > { %v711_v36 = vsel %vm674_vm2, %v654_v34, 0.0 }
  0xfa   : > { %v549_v37 = vpop.f32.mrf.mxu0  ;;  %712 = vadd.xlane.f32.xlu0 %v711_v36 }
  0xfb   : > { %v550_v39 = vadd.f32 %v2587_v29, %v549_v37 }
  0xfd   : > { %v619_v41 = vmax.f32 %v550_v39, 0.0  ;;  %2121 = vmatmul.msk.f32.gmra.mxu1 %vm392_vm1, %v2515_v15 }
  0xfe   : > { %2145 = vmatmul.msk.f32.gmra.mxu3 %vm392_vm1, %v2518_v16 }
  0xff   : > { %v655_v42 = vmul.f32 %v2596_v33, %v619_v41 }
 0x101   : > { %v714_v43 = vsel %vm674_vm2, %v655_v42, 0.0 }
 0x102   : > { %v552_v44 = vpop.f32.mrf.mxu0  ;;  %715 = vadd.xlane.f32.xlu1 %v714_v43 }
 0x103   : > { %v553_v45 = vadd.f32 %v2587_v29, %v552_v44 }
 0x105   : > { %v620_v46 = vmax.f32 %v553_v45, 0.0  ;;  %2122 = vmatmul.msk.f32.gmra.mxu1 %vm392_vm1, %v2525_v17 }
 0x106   : > { %2146 = vmatmul.msk.f32.gmra.mxu3 %vm392_vm1, %v2528_v18 }
 0x107   : > { %v656_v47 = vmul.f32 %v2596_v33, %v620_v46 }
 0x109   : > { %v717_v48 = vsel %vm674_vm2, %v656_v47, 0.0 }
 0x10a   : > { %v555_v49 = vpop.f32.mrf.mxu0  ;;  %718 = vadd.xlane.f32.xlu2 %v717_v48 }
 0x10b   : > { %v556_v51 = vadd.f32 %v2587_v29, %v555_v49 }
 0x10d   : > { %v621_v52 = vmax.f32 %v556_v51, 0.0  ;;  %v677_v8 = vpop.xlane.xlu0 %676  ;;  %2123 = vmatmul.msk.f32.gmra.mxu1 %vm392_vm1, %v2535_v19 }
 0x10e   : > { %v775_v53 = vadd.f32 %v2705_v50, %v677_v8  ;;  %2147 = vmatmul.msk.f32.gmra.mxu3 %vm392_vm1, %v2538_v20 }
 0x10f   : > { %v657_v54 = vmul.f32 %v2596_v33, %v621_v52 }
 0x110   : > { %v2083_v55 = vmul.f32 -1.442695, %v775_v53 }
 0x111   : > { %v720_v56 = vsel %vm674_vm2, %v657_v54, 0.0 }
 0x112   : > { %2211 = vpow2.f32 %v2083_v55  ;;  %v558_v57 = vpop.f32.mrf.mxu0  ;;  %721 = vadd.xlane.f32.xlu0 %v720_v56 }
 0x113   : > { %v559_v58 = vadd.f32 %v2587_v29, %v558_v57 }
 0x115   : > { %v622_v9 = vmax.f32 %v559_v58, 0.0  ;;  %v749_v10 = vpop.xlane.xlu0 %748  ;;  %2124 = vmatmul.msk.f32.gmra.mxu1 %vm392_vm1, %v2545_v21 }
 0x116   : > { %v799_v59 = vadd.f32 %v2705_v50, %v749_v10 }
 0x117   : > { %v658_v61 = vmul.f32 %v2596_v33, %v622_v9 }
 0x118   : > { %v2212_v62 = vpop.eup %2211  ;;  %v2107_v63 = vmul.f32 -1.442695, %v799_v59 }
 0x119   : > { %v2724_v0 = vadd.f32 1.0, %v2212_v62  ;;  %v723_v1 = vsel %vm674_vm2, %v658_v61, 0.0 }
 0x11a   : > { %2213 = vpow2.f32 %v2107_v63  ;;  %v561_v11 = vpop.f32.mrf.mxu0  ;;  %724 = vadd.xlane.f32.xlu1 %v723_v1 }
 0x11b   : > { %v562_v12 = vadd.f32 %v2587_v29, %v561_v11  ;;  %v752_v3 = vpop.xlane.xlu1 %751  ;;  %2215 = vrcp.f32 %v2724_v0  ;;  %vm940_vm4 = vweird.f32 %v2724_v0  ;;  %v944_v11 = vand.u32 2147483647, %v2724_v0 }
 0x11c   : > { %v800_v4 = vadd.f32 %v2705_v50, %v752_v3 }
 0x11d   : > { %v623_v30 = vmax.f32 %v562_v12, 0.0  ;;  %v680_v32 = vpop.xlane.xlu0 %679  ;;  %v946_v12 = vand.u32 2147483648, %v2724_v0  ;;  %vm945_vm7 = vcmp.eq.f32.partialorder %v944_v11, 8.507059e+37  ;;  %2125 = vmatmul.msk.f32.gmra.mxu1 %vm392_vm1, %v2550_v22 }
 0x11e   : > { %v2108_v34 = vmul.f32 -1.442695, %v800_v4  ;;  %v776_v35 = vadd.f32 %v2705_v50, %v680_v32 }
 0x11f   : > { %v659_v36 = vmul.f32 %v2596_v33, %v623_v30 }
 0x120   : > { %v2214_v37 = vpop.eup %2213  ;;  %2217 = vpow2.f32 %v2108_v34  ;;  %v2084_v38 = vmul.f32 -1.442695, %v776_v35  ;;  %v947_v35 = vor.u32 1.1754944e-38, %v946_v12 }
 0x121   : > { %v2736_v39 = vadd.f32 1.0, %v2214_v37  ;;  %v726_v41 = vsel %vm674_vm2, %v659_v36, 0.0  ;;  %v2739_v42 = vpop.eup %2215 }
 0x122   : > { %2219 = vpow2.f32 %v2084_v38  ;;  %v564_v13 = vpop.f32.mrf.mxu0  ;;  %727 = vadd.xlane.f32.xlu2 %v726_v41  ;;  %v936_v46 = vmul.f32 %v2739_v42, %v2724_v0  ;;  %vm941_vm3 = vweird.f32 %v2739_v42 }
 0x123   : > { %v565_v14 = vadd.f32 %v2587_v29, %v564_v13  ;;  %v683_v43 = vpop.xlane.xlu1 %682  ;;  %2221 = vrcp.f32 %v2736_v39  ;;  %v2753_v53 = vpop.xlane.xlu2 %754  ;;  %vm2780_vm5 = vmor %vm940_vm4, %vm941_vm3  ;;  %vm1300_vm8 = vweird.f32 %v2736_v39  ;;  %v1306_v38 = vand.u32 2147483648, %v2736_v39 }
 0x124   : > { %v777_v44 = vadd.f32 %v2705_v50, %v683_v43  ;;  %v937_v16 = vsub.f32 1.0, %v936_v46 }
 0x125   : > { %v624_v45 = vmax.f32 %v565_v14, 0.0  ;;  %v1304_v14 = vand.u32 2147483647, %v2736_v39  ;;  %2126 = vmatmul.msk.f32.gmra.mxu1 %vm392_vm1, %v2555_v23 }
 0x126   : > { %v2218_v47 = vpop.eup %2217  ;;  %v2085_v48 = vmul.f32 -1.442695, %v777_v44  ;;  %v938_v58 = vmul.f32 %v2739_v42, %v937_v16 }
 0x127   : > { %v660_v49 = vmul.f32 %v2596_v33, %v624_v45  ;;  %v2751_v52 = vadd.f32 1.0, %v2218_v47  ;;  %vm1305_vm14 = vcmp.eq.f32.partialorder %v1304_v14, 8.507059e+37 }
 0x128   : > { %v2220_v51 = vpop.eup %2219  ;;  %2223 = vpow2.f32 %v2085_v48  ;;  %v939_v62 = vadd.f32 %v2739_v42, %v938_v58  ;;  %v1307_v48 = vor.u32 1.1754944e-38, %v1306_v38 }
 0x129   : > { %v904_v8 = vadd.f32 1.0, %v2220_v51  ;;  %v729_v15 = vsel %vm674_vm2, %v660_v49, 0.0  ;;  %v2756_v55 = vpop.eup %2221  ;;  %vm1315_vm15 = vweird.f32 %v2751_v52  ;;  %v1321_v21 = vand.u32 2147483648, %v2751_v52 }
 0x12a   : > { %v567_v54 = vpop.f32.mrf.mxu0  ;;  %730 = vadd.xlane.f32.xlu0 %v729_v15  ;;  %v1296_v9 = vmul.f32 %v2756_v55, %v2736_v39  ;;  %v943_v30 = vsel %vm2780_vm5, %v2739_v42, %v939_v62  ;;  %vm1301_vm10 = vweird.f32 %v2756_v55  ;;  %v1319_v16 = vand.u32 2147483647, %v2751_v52 }
 0x12b   : > { %2225 = vrcp.f32 %v904_v8  ;;  %v568_v56 = vadd.f32 %v2587_v29, %v567_v54  ;;  %v961_v36 = vand.u32 2147483648, %v904_v8  ;;  %vm955_vm9 = vweird.f32 %v904_v8  ;;  %vm2800_vm12 = vmor %vm1300_vm8, %vm1301_vm10 }
 0x12c   : > { %2227 = vrcp.f32 %v2751_v52  ;;  %v1297_v1 = vsub.f32 1.0, %v1296_v9  ;;  %v959_v20 = vand.u32 2147483647, %v904_v8  ;;  %v948_v37 = vsel %vm945_vm7, %v947_v35, %v943_v30  ;;  %v758_v30 = vpop.xlane.xlu0 %757 }
 0x12d   : > { %v625_v57 = vmax.f32 %v568_v56, 0.0  ;;  %v2775_v2 = vpop.xlane.xlu2 %688  ;;  %v962_v43 = vor.u32 1.1754944e-38, %v961_v36  ;;  %v1322_v56 = vor.u32 1.1754944e-38, %v1321_v21  ;;  %vm1320_vm5 = vcmp.eq.f32.partialorder %v1319_v16, 8.507059e+37  ;;  %2127 = vmatmul.msk.f32.gmra.mxu1 %vm392_vm1, %v2560_v24 }
 0x12e   : > { %v2224_v10 = vpop.eup %2223  ;;  %v1298_v34 = vmul.f32 %v2756_v55, %v1297_v1  ;;  %vm960_vm13 = vcmp.eq.f32.partialorder %v959_v20, 8.507059e+37  ;;  %v779_v35 = vadd.f32 %v2705_v50, %v2775_v2 }
 0x12f   : > { %v661_v59 = vmul.f32 %v2596_v33, %v625_v57  ;;  %v2773_v63 = vadd.f32 1.0, %v2224_v10  ;;  %v801_v10 = vadd.f32 %v2705_v50, %v2753_v53 }
 0x130   : > { %v1299_v13 = vadd.f32 %v2756_v55, %v1298_v34  ;;  %v2087_v38 = vmul.f32 -1.442695, %v779_v35 }
 0x131   : > { %v2226_v60 = vpop.eup %2225  ;;  %v732_v61 = vsel %vm674_vm2, %v661_v59, 0.0  ;;  %2229 = vrcp.f32 %v2773_v63  ;;  %vm970_vm7 = vweird.f32 %v2773_v63  ;;  %v974_v22 = vand.u32 2147483647, %v2773_v63 }
 0x132   : > { %v2771_v17 = vpop.eup %2227  ;;  %733 = vadd.xlane.f32.xlu1 %v732_v61  ;;  %v951_v18 = vmul.f32 %v2226_v60, %v904_v8  ;;  %vm956_vm6 = vweird.f32 %v2226_v60  ;;  %v1303_v39 = vsel %vm2800_vm12, %v2756_v55, %v1299_v13  ;;  %v570_v61 = vpop.f32.mrf.mxu0  ;;  %v2109_v62 = vmul.f32 -1.442695, %v801_v10 }
 0x133   : > { %v1311_v32 = vmul.f32 %v2771_v17, %v2751_v52  ;;  %vm957_vm11 = vmor %vm955_vm9, %vm956_vm6  ;;  %vm1316_vm3 = vweird.f32 %v2771_v17  ;;  %v1308_v8 = vsel %vm1305_vm14, %v1307_v48, %v1303_v39  ;;  %v686_v52 = vpop.xlane.xlu1 %685  ;;  %vm975_vm9 = vcmp.eq.f32.partialorder %v974_v22, 8.507059e+37 }
 0x134   : > { %v952_v4 = vsub.f32 1.0, %v951_v18  ;;  %vm1317_vm4 = vmor %vm1315_vm15, %vm1316_vm3  ;;  %2231 = vpow2.f32 %v2109_v62 }
 0x135   : > { %v1312_v41 = vsub.f32 1.0, %v1311_v32  ;;  %v2806_v46 = vpop.xlane.xlu2 %691  ;;  %v802_v32 = vadd.f32 %v2705_v50, %v758_v30  ;;  %2128 = vmatmul.msk.f32.gmra.mxu1 %vm392_vm1, %v2565_v25 }
 0x136   : > { %v953_v0 = vmul.f32 %v2226_v60, %v952_v4 }
 0x137   : > { %v2230_v45 = vpop.eup %2229  ;;  %v1313_v49 = vmul.f32 %v2771_v17, %v1312_v41  ;;  %v2110_v20 = vmul.f32 -1.442695, %v802_v32 }
 0x138   : > { %v954_v19 = vadd.f32 %v2226_v60, %v953_v0  ;;  %v966_v51 = vmul.f32 %v2230_v45, %v2773_v63  ;;  %vm971_vm6 = vweird.f32 %v2230_v45 }
 0x139   : > { %v1314_v15 = vadd.f32 %v2771_v17, %v1313_v49  ;;  %vm972_vm8 = vmor %vm970_vm7, %vm971_vm6 }
 0x13a   : > { %1573 = vperm.xlu2 %2204, %v948_v37   ;;  %v958_v42 = vsel %vm957_vm11, %v2226_v60, %v954_v19  ;;  %v967_v54 = vsub.f32 1.0, %v966_v51  ;;  %v976_v60 = vand.u32 2147483648, %v2773_v63  ;;  %v573_v4 = vpop.f32.mrf.mxu0  ;;  %v2232_v63 = vpop.eup %2231  ;;  %v571_v19 = vadd.f32 %v2587_v29, %v570_v61  ;;  %v1798_v61 = vld [vmem:[%s3682_s7 + $0x10] sm:$0xff] }
 0x13b   : > { %v963_v47 = vsel %vm960_vm13, %v962_v43, %v958_v42  ;;  %v1318_v57 = vsel %vm1317_vm4, %v2771_v17, %v1314_v15  ;;  %v778_v17 = vadd.f32 %v2705_v50, %v686_v52  ;;  %v574_v0 = vadd.f32 %v2587_v29, %v573_v4  ;;  %v761_v36 = vpop.xlane.xlu1 %760 }
 0x13c   : > { %v968_v58 = vmul.f32 %v2230_v45, %v967_v54  ;;  %v1323_v9 = vsel %vm1320_vm5, %v1322_v56, %v1318_v57  ;;  %v977_v1 = vor.u32 1.1754944e-38, %v976_v60  ;;  %v2836_v34 = vadd.f32 1.0, %v2232_v63 }
 0x13d   : > { %v2820_v55 = vpop.xlane.xlu2 %763  ;;  %v2086_v3 = vmul.f32 -1.442695, %v778_v17  ;;  %v627_v37 = vmax.f32 %v574_v0, 0.0  ;;  %v626_v13 = vmax.f32 %v571_v19, 0.0  ;;  %v803_v25 = vadd.f32 %v2705_v50, %v761_v36  ;;  %2129 = vmatmul.msk.f32.gmra.mxu1 %vm392_vm1, %v2570_v26 }
 0x13e   : > { %1578 = vperm.xlu0 %2205, %v963_v47   ;;  %v969_v59 = vadd.f32 %v2230_v45, %v968_v58  ;;  %v780_v51 = vadd.f32 %v2705_v50, %v2806_v46  ;;  %v1799_v46 = vld [vmem:[%s3682_s7 + $0x18] sm:$0x7]  ;;  %v1334_v30 = vand.u32 2147483647, %v2836_v34 }
 0x13f   : > { %2233 = vpow2.f32 %v2086_v3  ;;  %v663_v14 = vmul.f32 %v2596_v33, %v627_v37  ;;  %v662_v43 = vmul.f32 %v2596_v33, %v626_v13  ;;  %v2111_v21 = vmul.f32 -1.442695, %v803_v25  ;;  %2148 = vmatpush.msk.msra.mxu2 %vm489_vm0, %v1799_v46  ;;  %2191 = vmatpush.msk.msra.mxu3 %vm489_vm0, %v1799_v46 }
 0x140   : > { %v973_v53 = vsel %vm972_vm8, %v2230_v45, %v969_v59  ;;  %v2088_v58 = vmul.f32 -1.442695, %v780_v51  ;;  %vm1330_vm0 = vweird.f32 %v2836_v34  ;;  %vm1335_vm13 = vcmp.eq.f32.partialorder %v1334_v30, 8.507059e+37  ;;  %v2340_v30 = vld [vmem:[%s2462_s24 + $0x10] sm:$0xff] }
 0x141   : > { %v978_v12 = vsel %vm975_vm9, %v977_v1, %v973_v53  ;;  %v738_v48 = vsel %vm674_vm2, %v663_v14, 0.0  ;;  %v735_v15 = vsel %vm674_vm2, %v662_v43, 0.0  ;;  %1816 = vmatpush.msra.mxu2 %v1798_v61  ;;  %2192 = vmatpush.msra.mxu3 %v1798_v61 }
 0x142   : > { %1693 = vperm.xlu2 %2204, %v1308_v8   ;;  %v576_v57 = vpop.f32.mrf.mxu0 }
 0x143   : > { %v577_v22 = vadd.f32 %v2587_v29, %v576_v57  ;;  %v1796_v29 = vld [vmem:[%s3682_s7] sm:$0xff]  ;;  %v2339_v57 = vld [vmem:[%s2462_s24 + $0xc8] sm:$0xff] }
 0x145   : > { %v2234_v24 = vpop.eup %2233  ;;  %v698_v45 = vpop.xlane.xlu1 %697  ;;  %2130 = vmatmul.msk.f32.gmra.mxu1 %vm392_vm1, %v2575_v27  ;;  %v1797_v27 = vld [vmem:[%s3682_s7 + $0x8] sm:$0xff] }
 0x146   : > { %v2844_v42 = vadd.f32 1.0, %v2234_v24  ;;  %1817 = vmatpush.msra.mxu2 %v1797_v27  ;;  %2193 = vmatpush.msra.mxu3 %v1797_v27  ;;  %v782_v3 = vadd.f32 %v2705_v50, %v698_v45 }
 0x148   : > { %1818 = vmatpush.msra.mxu2 %v1796_v29  ;;  %2194 = vmatpush.msra.mxu3 %v1796_v29  ;;  %vm985_vm12 = vweird.f32 %v2844_v42  ;;  %v991_v14 = vand.u32 2147483648, %v2844_v42 }
 0x149   : > { %2149 = vmatmul.msk.f32.vlgmr.msra.gmra.mxu2 %vm392_vm1, %v2465_v5  ;;  %2173 = vmatmul.msk.f32.vlgmr.msra.gmra.mxu3 %vm392_vm1, %v2468_v6 }
 0x14b   : > { %1698 = vperm.xlu1 %2206, %v1323_v9  }
 0x14d   : > { %v701_v18 = vpop.xlane.xlu2 %700  ;;  %v2878_v52 = vpop.xlane.xlu1 %769  ;;  %2131 = vmatmul.msk.f32.gmra.mxu1 %vm392_vm1, %v2580_v28 }
 0x14e   : > { %v783_v11 = vadd.f32 %v2705_v50, %v701_v18 }
 0x150   : > { %v2091_v23 = vmul.f32 -1.442695, %v783_v11 }
 0x151   : > { %2150 = vmatmul.msk.f32.gmra.mxu2 %vm392_vm1, %v2475_v7  ;;  %2174 = vmatmul.msk.f32.gmra.mxu3 %vm392_vm1, %v2339_v57 }
 0x152   : > { %2235 = vpow2.f32 %v2091_v23  ;;  %v1336_v23 = vand.u32 2147483648, %v2836_v34 }
 0x153   : > { %1583 = vperm.xlu1 %2206, %v978_v12   ;;  %2237 = vrcp.f32 %v2836_v34  ;;  %v628_v12 = vmax.f32 %v577_v22, 0.0 }
 0x154   : > { %2239 = vpow2.f32 %v2110_v20  ;;  %v2090_v20 = vmul.f32 -1.442695, %v782_v3  ;;  %v1337_v37 = vor.u32 1.1754944e-38, %v1336_v23 }
 0x155   : > { %2241 = vpow2.f32 %v2087_v38  ;;  %v664_v19 = vmul.f32 %v2596_v33, %v628_v12  ;;  %v989_v38 = vand.u32 2147483647, %v2844_v42  ;;  %2132 = vmatmul.msk.f32.gmra.mxu1 %vm392_vm1, %v2590_v31  ;;  %v992_v31 = vor.u32 1.1754944e-38, %v991_v14 }
 0x156   : > { %2243 = vrcp.f32 %v2844_v42 }
 0x157   : > { %v741_v43 = vsel %vm674_vm2, %v664_v19, 0.0  ;;  %vm2968_vm4 = vcmp.eq.f32.partialorder %v989_v38, 8.507059e+37 }
 0x158   : > { %v2236_v41 = vpop.eup %2235 }
 0x159   : > { %v2847_v2 = vadd.f32 1.0, %v2236_v41  ;;  %v2854_v44 = vpop.eup %2237  ;;  %2151 = vmatmul.msk.f32.gmra.mxu2 %vm392_vm1, %v2340_v30 }
 0x15a   : > { %v2240_v39 = vpop.eup %2239  ;;  %v1326_v26 = vmul.f32 %v2854_v44, %v2836_v34  ;;  %vm1331_vm10 = vweird.f32 %v2854_v44 }
 0x15b   : > { %2245 = vrcp.f32 %v2847_v2  ;;  %v2242_v16 = vpop.eup %2241  ;;  %v2866_v56 = vadd.f32 1.0, %v2240_v39  ;;  %vm2919_vm11 = vmor %vm1330_vm0, %vm1331_vm10  ;;  %v2953_v39 = vpop.xlane.xlu0 %694  ;;  %vm1060_vm5 = vweird.f32 %v2847_v2 }
 0x15c   : > { %v2864_v54 = vpop.eup %2243  ;;  %v1327_v9 = vsub.f32 1.0, %v1326_v26  ;;  %v2876_v59 = vadd.f32 1.0, %v2242_v16  ;;  %v1066_v26 = vand.u32 2147483648, %v2847_v2  ;;  %v2973_v16 = vpop.f32.mrf.mxu1 }
 0x15d   : > { %v981_v60 = vmul.f32 %v2864_v54, %v2844_v42  ;;  %v707_v28 = vpop.xlane.xlu1 %706  ;;  %vm986_vm14 = vweird.f32 %v2864_v54  ;;  %vm1345_vm7 = vweird.f32 %v2866_v56  ;;  %2133 = vmatmul.msk.f32.gmra.mxu1 %vm392_vm1, %v2604_v40 }
 0x15e   : > { %v1328_v17 = vmul.f32 %v2854_v44, %v1327_v9  ;;  %vm2957_vm15 = vmor %vm985_vm12, %vm986_vm14  ;;  %v1067_v29 = vor.u32 1.1754944e-38, %v1066_v26  ;;  %v1004_v26 = vand.u32 2147483647, %v2876_v59 }
 0x15f   : > { %v982_v1 = vsub.f32 1.0, %v981_v60 }
 0x160   : > { %v1329_v63 = vadd.f32 %v2854_v44, %v1328_v17 }
 0x161   : > { %v2874_v10 = vpop.eup %2245  ;;  %v983_v35 = vmul.f32 %v2864_v54, %v982_v1 }
 0x162   : > { %v1056_v18 = vmul.f32 %v2874_v10, %v2847_v2  ;;  %v1333_v34 = vsel %vm2919_vm11, %v2854_v44, %v1329_v63  ;;  %vm1061_vm3 = vweird.f32 %v2874_v10  ;;  %v1349_v63 = vand.u32 2147483647, %v2866_v56 }
 0x163   : > { %v984_v13 = vadd.f32 %v2864_v54, %v983_v35  ;;  %vm2985_vm6 = vmor %vm1060_vm5, %vm1061_vm3  ;;  %v3009_v5 = vpop.xlane.xlu0 %766  ;;  %vm1000_vm5 = vweird.f32 %v2876_v59 }
 0x164   : > { %v1057_v32 = vsub.f32 1.0, %v1056_v18  ;;  %vm1350_vm12 = vcmp.eq.f32.partialorder %v1349_v63, 8.507059e+37 }
 0x165   : > { %v710_v47 = vpop.xlane.xlu2 %709  ;;  %v988_v7 = vsel %vm2957_vm15, %v2864_v54, %v984_v13 }
 0x166   : > { %v786_v49 = vadd.f32 %v2705_v50, %v710_v47  ;;  %v1058_v41 = vmul.f32 %v2874_v10, %v1057_v32  ;;  %v785_v47 = vadd.f32 %v2705_v50, %v707_v28 }
 0x168   : > { %v2094_v8 = vmul.f32 -1.442695, %v786_v49  ;;  %739 = vadd.xlane.f32.xlu0 %v738_v48  ;;  %v1338_v48 = vsel %vm1335_vm13, %v1337_v37, %v1333_v34  ;;  %v2093_v54 = vmul.f32 -1.442695, %v785_v47  ;;  %v3026_v37 = vpop.f32.mrf.mxu1  ;;  %v1006_v47 = vand.u32 2147483648, %v2876_v59 }
 0x16a   : > { %2247 = vpow2.f32 %v2094_v8 }
 0x16b   : > { %736 = vadd.xlane.f32.xlu2 %v735_v15  ;;  %2249 = vpow2.f32 %v2111_v21  ;;  %v1059_v21 = vadd.f32 %v2874_v10, %v1058_v41 }
 0x16c   : > { %2251 = vrcp.f32 %v2866_v56 }
 0x16d   : > { %2253 = vpow2.f32 %v2088_v58  ;;  %v1064_v58 = vand.u32 2147483647, %v2847_v2  ;;  %v993_v2 = vsel %vm2968_vm4, %v992_v31, %v988_v7  ;;  %v1063_v17 = vsel %vm2985_vm6, %v2874_v10, %v1059_v21  ;;  %v2342_v21 = vld [vmem:[%s2462_s24 + $0x18] sm:$0xff]  ;;  %v3060_v7 = vld [vmem:[%s2462_s24 + $0x90] sm:$0xff] }
 0x16e   : > { %2255 = vrcp.f32 %v2876_v59  ;;  %2152 = vmatmul.msk.f32.gmra.mxu2 %vm392_vm1, %v2342_v21  ;;  %2134 = vmatmul.msk.f32.gmra.mxu1 %vm392_vm1, %v3060_v7 }
 0x16f   : > { %vm1065_vm9 = vcmp.eq.f32.partialorder %v1064_v58, 8.507059e+37  ;;  %v3071_v58 = vpop.xlane.xlu0 %703 }
 0x170   : > { %v2248_v62 = vpop.eup %2247  ;;  %v1068_v10 = vsel %vm1065_vm9, %v1067_v29, %v1063_v17 }
 0x171   : > { %v2895_v53 = vadd.f32 1.0, %v2248_v62  ;;  %v2250_v11 = vpop.eup %2249 }
 0x172   : > { %v2907_v4 = vpop.eup %2251  ;;  %v2915_v0 = vadd.f32 1.0, %v2250_v11  ;;  %v1351_v11 = vand.u32 2147483648, %v2866_v56 }
 0x173   : > { %2257 = vrcp.f32 %v2895_v53  ;;  %v2254_v36 = vpop.eup %2253  ;;  %v1341_v6 = vmul.f32 %v2907_v4, %v2866_v56  ;;  %vm1346_vm8 = vweird.f32 %v2907_v4  ;;  %v1111_v28 = vand.u32 2147483648, %v2895_v53 }
 0x174   : > { %v2925_v24 = vpop.eup %2255  ;;  %2259 = vrcp.f32 %v2915_v0  ;;  %v2941_v25 = vadd.f32 1.0, %v2254_v36  ;;  %vm3015_vm0 = vmor %vm1345_vm7, %vm1346_vm8  ;;  %vm1105_vm11 = vweird.f32 %v2895_v53  ;;  %v1109_v34 = vand.u32 2147483647, %v2895_v53 }
 0x175   : > { %v2948_v45 = vmul.f32 %v2925_v24, %v2876_v59  ;;  %2261 = vpow2.f32 %v2090_v20  ;;  %v1342_v49 = vsub.f32 1.0, %v1341_v6  ;;  %v716_v60 = vpop.xlane.xlu1 %715  ;;  %v1352_v20 = vor.u32 1.1754944e-38, %v1351_v11  ;;  %v2341_v6 = vld [vmem:[%s2462_s24 + $0xd0] sm:$0xff] }
 0x176   : > { %2263 = vrcp.f32 %v2941_v25  ;;  %v788_v12 = vadd.f32 %v2705_v50, %v716_v60  ;;  %2175 = vmatmul.msk.f32.gmra.mxu3 %vm392_vm1, %v2341_v6  ;;  %vm1110_vm14 = vcmp.eq.f32.partialorder %v1109_v34, 8.507059e+37  ;;  %vm1001_vm15 = vweird.f32 %v2925_v24  ;;  %v2347_v34 = vld [vmem:[%s2462_s24 + $0xe0] sm:$0xff] }
 0x177   : > { %v1343_v22 = vmul.f32 %v2907_v4, %v1342_v49  ;;  %v997_v27 = vsub.f32 1.0, %v2948_v45  ;;  %v1112_v45 = vor.u32 1.1754944e-38, %v1111_v28  ;;  %vm1360_vm3 = vweird.f32 %v2915_v0  ;;  %vm3076_vm6 = vmor %vm1000_vm5, %vm1001_vm15 }
 0x178   : > { %v2096_v56 = vmul.f32 -1.442695, %v788_v12  ;;  %v1366_v57 = vand.u32 2147483648, %v2915_v0  ;;  %v1364_v59 = vand.u32 2147483647, %v2915_v0  ;;  %vm1005_vm8 = vcmp.eq.f32.partialorder %v1004_v26, 8.507059e+37  ;;  %v1515_v26 = vpop.f32.mrf.mxu3 }
 0x179   : > { %v2935_v33 = vpop.eup %2257  ;;  %v1344_v23 = vadd.f32 %v2907_v4, %v1343_v22  ;;  %v998_v13 = vmul.f32 %v2925_v24, %v997_v27  ;;  %v3082_v22 = vpop.f32.mrf.mxu1 }
 0x17a   : > { %v1101_v44 = vmul.f32 %v2935_v33, %v2895_v53  ;;  %v2980_v9 = vpop.eup %2259  ;;  %vm1106_vm10 = vweird.f32 %v2935_v33  ;;  %vm1365_vm9 = vcmp.eq.f32.partialorder %v1364_v59, 8.507059e+37  ;;  %v2350_v59 = vld [vmem:[%s2462_s24 + $0xe8] sm:$0xff] }
 0x17b   : > { %v2262_v1 = vpop.eup %2261  ;;  %v1356_v3 = vmul.f32 %v2980_v9, %v2915_v0  ;;  %v1348_v40 = vsel %vm3015_vm0, %v2907_v4, %v1344_v23  ;;  %vm3035_vm13 = vmor %vm1105_vm11, %vm1106_vm10  ;;  %vm1361_vm4 = vweird.f32 %v2980_v9  ;;  %v3100_v0 = vld [vmem:[%s3677_s2] ss:$0 sm:$0xff]  ;;  %vm1015_vm11 = vweird.f32 %v2941_v25 }
 0x17c   : > { %1703 = vperm.xlu0 %2205, %v1338_v48   ;;  %v1102_v8 = vsub.f32 1.0, %v1101_v44  ;;  %v3007_v32 = vadd.f32 1.0, %v2262_v1  ;;  %v3023_v19 = vpop.eup %2263  ;;  %v1353_v48 = vsel %vm1350_vm12, %v1352_v20, %v1348_v40  ;;  %vm3091_vm7 = vmor %vm1360_vm3, %vm1361_vm4  ;;  %v2345_v23 = vld [vmem:[%s2462_s24 + $0x20] sm:$0xff]  ;;  %v1444_v28 = vadd.f32 %v3100_v0, %v2973_v16  ;;  %v3126_v40 = vpop.xlane.xlu0 %712 }
 0x17d   : > { %v719_v15 = vpop.xlane.xlu2 %718  ;;  %742 = vadd.xlane.f32.xlu1 %v741_v43  ;;  %v1357_v38 = vsub.f32 1.0, %v1356_v3  ;;  %v1011_v43 = vmul.f32 %v3023_v19, %v2941_v25  ;;  %vm1016_vm0 = vweird.f32 %v3023_v19  ;;  %2153 = vmatmul.msk.f32.gmra.mxu2 %vm392_vm1, %v2345_v23  ;;  %v1019_v16 = vand.u32 2147483647, %v2941_v25 }
 0x17e   : > { %v789_v46 = vadd.f32 %v2705_v50, %v719_v15  ;;  %v1103_v18 = vmul.f32 %v2935_v33, %v1102_v8  ;;  %vm1763_vm4 = vcmask 130048  }
 0x17f   : > { %v1358_v49 = vmul.f32 %v2980_v9, %v1357_v38  ;;  %v1012_v15 = vsub.f32 1.0, %v1011_v43  ;;  %v1021_v43 = vand.u32 2147483648, %v2941_v25  ;;  %vm1020_vm3 = vcmp.eq.f32.partialorder %v1019_v16, 8.507059e+37 }
 0x180   : > { %v2097_v62 = vmul.f32 -1.442695, %v789_v46  ;;  %v1104_v36 = vadd.f32 %v2935_v33, %v1103_v18  ;;  %v2344_v46 = vld [vmem:[%s2462_s24 + $0xd8] sm:$0xff]  ;;  %v1007_v18 = vor.u32 1.1754944e-38, %v1006_v47  ;;  %v784_v47 = vadd.f32 %v2705_v50, %v3071_v58  ;;  %v579_v58 = vpop.f32.mrf.mxu0 }
 0x181   : > { %2176 = vmatmul.msk.f32.gmra.mxu3 %vm392_vm1, %v2344_v46  ;;  %v1359_v61 = vadd.f32 %v2980_v9, %v1358_v49  ;;  %v1013_v1 = vmul.f32 %v3023_v19, %v1012_v15 }
 0x182   : > { %2265 = vpow2.f32 %v2097_v62  ;;  %v1108_v53 = vsel %vm3035_vm13, %v2935_v33, %v1104_v36  ;;  %v999_v33 = vadd.f32 %v2925_v24, %v998_v13  ;;  %v3115_v36 = vld [vmem:[%s2462_s24 + $0x98] sm:$0xff]  ;;  %vm3139_vm13 = vmor %vm1015_vm11, %vm1016_vm0 }
 0x183   : > { %2267 = vpow2.f32 %v2093_v54  ;;  %1588 = vperm.xlu2 %2204, %v993_v2   ;;  %v1113_v51 = vsel %vm1110_vm14, %v1112_v45, %v1108_v53  ;;  %v1363_v3 = vsel %vm3091_vm7, %v2980_v9, %v1359_v61  ;;  %v1014_v35 = vadd.f32 %v3023_v19, %v1013_v1  ;;  %2135 = vmatmul.msk.f32.gmra.mxu1 %vm392_vm1, %v3115_v36  ;;  %v3130_v53 = vpop.f32.mrf.mxu1 }
 0x184   : > { %1613 = vperm.xlu0 %2205, %v1068_v10   ;;  %2269 = vrcp.f32 %v3007_v32  ;;  %v1003_v27 = vsel %vm3076_vm6, %v2925_v24, %v999_v33  ;;  %v1367_v24 = vor.u32 1.1754944e-38, %v1366_v57  ;;  %v1539_v33 = vmax.f32 %v1444_v28, 0.0  ;;  %v2348_v57 = vld [vmem:[%s2462_s24 + $0x28] sm:$0xff] }
 0x185   : > { %2271 = vpow2.f32 %v2096_v56  ;;  %v1008_v12 = vsel %vm1005_vm8, %v1007_v18, %v1003_v27  ;;  %v1018_v25 = vsel %vm3139_vm13, %v3023_v19, %v1014_v35  ;;  %2154 = vmatmul.msk.f32.gmra.mxu2 %vm392_vm1, %v2348_v57  ;;  %v3152_v19 = vld [vmem:[%s2462_s24 + $0xa0] sm:$0xff]  ;;  %v3168_v62 = vpop.xlane.xlu0 %721  ;;  %vm1045_vm6 = vweird.f32 %v3007_v32 }
 0x186   : > { %v1368_v20 = vsel %vm1365_vm9, %v1367_v24, %v1363_v3 }
 0x188   : > { %v2266_v14 = vpop.eup %2265 }
 0x189   : > { %v2268_v44 = vpop.eup %2267  ;;  %v3046_v4 = vadd.f32 1.0, %v2266_v14  ;;  %2177 = vmatmul.msk.f32.gmra.mxu3 %vm392_vm1, %v2347_v34 }
 0x18a   : > { %v3055_v8 = vadd.f32 1.0, %v2268_v44  ;;  %v3069_v31 = vpop.eup %2269 }
 0x18b   : > { %2273 = vrcp.f32 %v3046_v4  ;;  %1708 = vperm.xlu2 %2204, %v1353_v48   ;;  %v2272_v2 = vpop.eup %2271  ;;  %v1041_v11 = vmul.f32 %v3069_v31, %v3007_v32  ;;  %v1156_v6 = vand.u32 2147483648, %v3046_v4  ;;  %v1154_v14 = vand.u32 2147483647, %v3046_v4  ;;  %2136 = vmatmul.msk.f32.gmra.mxu1 %vm392_vm1, %v3152_v19  ;;  %v3173_v1 = vpop.f32.mrf.mxu1 }
 0x18c   : > { %1628 = vperm.xlu0 %2205, %v1113_v51   ;;  %2275 = vrcp.f32 %v3055_v8  ;;  %v3111_v63 = vadd.f32 1.0, %v2272_v2  ;;  %vm1150_vm12 = vweird.f32 %v3046_v4  ;;  %vm1046_vm5 = vweird.f32 %v3069_v31 }
 0x18d   : > { %v725_v42 = vpop.xlane.xlu1 %724  ;;  %v1042_v56 = vsub.f32 1.0, %v1041_v11  ;;  %v1157_v48 = vor.u32 1.1754944e-38, %v1156_v6  ;;  %vm1155_vm15 = vcmp.eq.f32.partialorder %v1154_v14, 8.507059e+37  ;;  %v781_v11 = vadd.f32 %v2705_v50, %v2953_v39  ;;  %vm1047_vm7 = vmor %vm1045_vm6, %vm1046_vm5 }
 0x18e   : > { %v791_v54 = vadd.f32 %v2705_v50, %v725_v42  ;;  %v1022_v42 = vor.u32 1.1754944e-38, %v1021_v43  ;;  %v1096_v43 = vand.u32 2147483648, %v3055_v8  ;;  %vm1090_vm0 = vweird.f32 %v3055_v8 }
 0x18f   : > { %v1043_v49 = vmul.f32 %v3069_v31, %v1042_v56 }
 0x190   : > { %v2099_v17 = vmul.f32 -1.442695, %v791_v54  ;;  %v1023_v60 = vsel %vm1020_vm3, %v1022_v42, %v1018_v25  ;;  %v1447_v25 = vadd.f32 %v3100_v0, %v3026_v37  ;;  %v1097_v37 = vor.u32 1.1754944e-38, %v1096_v43  ;;  %v2354_v42 = vld [vmem:[%s2462_s24 + $0x38] sm:$0xff]  ;;  %v2359_v43 = vld [vmem:[%s2462_s24 + $0x40] sm:$0xff] }
 0x191   : > { %v2274_v29 = vpop.eup %2273  ;;  %2178 = vmatmul.msk.f32.gmra.mxu3 %vm392_vm1, %v2350_v59  ;;  %v1044_v18 = vadd.f32 %v3069_v31, %v1043_v49 }
 0x192   : > { %v1146_v10 = vmul.f32 %v2274_v29, %v3046_v4  ;;  %2277 = vpow2.f32 %v2099_v17  ;;  %v3124_v38 = vpop.eup %2275  ;;  %vm1151_vm10 = vweird.f32 %v2274_v29  ;;  %v1516_v17 = vadd.f32 %v3100_v0, %v1515_v26 }
 0x193   : > { %1593 = vperm.xlu2 %2204, %v1008_v12   ;;  %2279 = vrcp.f32 %v3111_v63  ;;  %vm1152_vm14 = vmor %vm1150_vm12, %vm1151_vm10  ;;  %v1086_v51 = vmul.f32 %v3124_v38, %v3055_v8  ;;  %v1049_v12 = vand.u32 2147483647, %v3007_v32  ;;  %v1048_v39 = vsel %vm1047_vm7, %v3069_v31, %v1044_v18 }
 0x194   : > { %v1147_v30 = vsub.f32 1.0, %v1146_v10  ;;  %vm1091_vm9 = vweird.f32 %v3124_v38  ;;  %v1540_v26 = vmax.f32 %v1447_v25, 0.0 }
 0x195   : > { %v728_v9 = vpop.xlane.xlu2 %727  ;;  %v1087_v61 = vsub.f32 1.0, %v1086_v51  ;;  %vm1050_vm8 = vcmp.eq.f32.partialorder %v1049_v12, 8.507059e+37  ;;  %vm3219_vm10 = vmor %vm1090_vm0, %vm1091_vm9  ;;  %v2361_v51 = vld [vmem:[%s3680_s5] ss:$0 sm:$0xff] }
 0x196   : > { %v792_v41 = vadd.f32 %v2705_v50, %v728_v9  ;;  %1713 = vperm.xlu1 %2206, %v1368_v20   ;;  %v1148_v13 = vmul.f32 %v2274_v29, %v1147_v30  ;;  %v1563_v30 = vmax.f32 %v1516_v17, 0.0  ;;  %v2351_v9 = vld [vmem:[%s2462_s24 + $0x30] sm:$0xff]  ;;  %v3193_v20 = vld [vmem:[%s2462_s24 + $0xa8] sm:$0xff]  ;;  %v2357_v17 = vld [vmem:[%s2462_s24 + $0xf8] sm:$0xff] }
 0x197   : > { %v1088_v10 = vmul.f32 %v3124_v38, %v1087_v61  ;;  %2155 = vmatmul.msk.f32.gmra.mxu2 %vm392_vm1, %v2351_v9  ;;  %2137 = vmatmul.msk.f32.gmra.mxu1 %vm392_vm1, %v3193_v20 }
 0x198   : > { %v2100_v44 = vmul.f32 -1.442695, %v792_v41  ;;  %v1149_v45 = vadd.f32 %v2274_v29, %v1148_v13  ;;  %v2278_v4 = vpop.eup %2277  ;;  %v2353_v41 = vld [vmem:[%s2462_s24 + $0xf0] sm:$0xff] }
 0x199   : > { %v3156_v46 = vadd.f32 1.0, %v2278_v4  ;;  %v3166_v27 = vpop.eup %2279  ;;  %v1089_v34 = vadd.f32 %v3124_v38, %v1088_v10  ;;  %2179 = vmatmul.msk.f32.gmra.mxu3 %vm392_vm1, %v2353_v41  ;;  %v1141_v10 = vand.u32 2147483648, %v3111_v63 }
 0x19a   : > { %2281 = vpow2.f32 %v2100_v44  ;;  %v1153_v21 = vsel %vm1152_vm14, %v2274_v29, %v1149_v45  ;;  %v1051_v29 = vand.u32 2147483648, %v3007_v32  ;;  %v1131_v23 = vmul.f32 %v3166_v27, %v3111_v63  ;;  %v3205_v44 = vpop.f32.mrf.mxu1 }
 0x19b   : > { %v1158_v15 = vsel %vm1155_vm15, %v1157_v48, %v1153_v21  ;;  %2283 = vrcp.f32 %v3156_v46  ;;  %v2089_v32 = vmul.f32 -1.442695, %v781_v11  ;;  %v1094_v48 = vand.u32 2147483647, %v3055_v8 }
 0x19c   : > { %1643 = vperm.xlu0 %2205, %v1158_v15   ;;  %v1052_v35 = vor.u32 1.1754944e-38, %v1051_v29  ;;  %v1132_v31 = vsub.f32 1.0, %v1131_v23  ;;  %v2092_v15 = vmul.f32 -1.442695, %v784_v47  ;;  %vm1136_vm12 = vweird.f32 %v3166_v27  ;;  %v1518_v47 = vpop.f32.mrf.mxu3 }
 0x19d   : > { %v1574_v54 = vpop.permute.xlu2 %1573  ;;  %v3202_v16 = vpop.xlane.xlu0 %730  ;;  %vm1095_vm11 = vcmp.eq.f32.partialorder %v1094_v48, 8.507059e+37  ;;  %vm1135_vm14 = vweird.f32 %v3111_v63  ;;  %v3277_v48 = vld [vmem:[%s2462_s24 + $0xb8] sm:$0xff]  ;;  %vm1180_vm9 = vweird.f32 %v3156_v46 }
 0x19e   : > { %v1731_v2 = vmul.f32 %v1574_v54, %v1539_v33  ;;  %1598 = vperm.xlu1 %2206, %v1023_v60   ;;  %v1053_v6 = vsel %vm1050_vm8, %v1052_v35, %v1048_v39  ;;  %v1133_v8 = vmul.f32 %v3166_v27, %v1132_v31  ;;  %v2356_v60 = vld [vmem:[%s3679_s4] ss:$0 sm:$0xff]  ;;  %vm3257_vm3 = vmor %vm1135_vm14, %vm1136_vm12 }
 0x19f   : > { %2156 = vmatmul.msk.f32.gmra.mxu2 %vm392_vm1, %v2354_v42  ;;  %v580_v61 = vadd.f32 %v2356_v60, %v579_v58  ;;  %v1186_v58 = vand.u32 2147483648, %v3156_v46 }
 0x1a0   : > { %v2282_v24 = vpop.eup %2281  ;;  %1764 = vst.msk [vmem:[%s3162_s30] sm:$0xff] %vm1763_vm4, %v1731_v2  ;;  %v1134_v2 = vadd.f32 %v3166_v27, %v1133_v8  ;;  %v1519_v8 = vadd.f32 %v3100_v0, %v1518_v47 }
 0x1a1   : > { %v3183_v3 = vadd.f32 1.0, %v2282_v24  ;;  %v3207_v45 = vpop.eup %2283  ;;  %2180 = vmatmul.msk.f32.gmra.mxu3 %vm392_vm1, %v2357_v17 }
 0x1a2   : > { %v1176_v21 = vmul.f32 %v3207_v45, %v3156_v46  ;;  %v3246_v11 = vpop.f32.mrf.mxu1  ;;  %vm1181_vm8 = vweird.f32 %v3207_v45 }
 0x1a3   : > { %2285 = vrcp.f32 %v3183_v3  ;;  %v1201_v59 = vand.u32 2147483648, %v3183_v3  ;;  %v1199_v29 = vand.u32 2147483647, %v3183_v3  ;;  %vm1195_vm15 = vweird.f32 %v3183_v3  ;;  %vm3294_vm0 = vmor %vm1180_vm9, %vm1181_vm8 }
 0x1a4   : > { %2287 = vpow2.f32 %v2089_v32  ;;  %v1177_v24 = vsub.f32 1.0, %v1176_v21 }
 0x1a5   : > { %v1694_v28 = vpop.permute.xlu2 %1693  ;;  %v734_v56 = vpop.xlane.xlu1 %733  ;;  %vm1200_vm6 = vcmp.eq.f32.partialorder %v1199_v29, 8.507059e+37 }
 0x1a6   : > { %v1755_v13 = vmul.f32 %v1694_v28, %v1563_v30  ;;  %1608 = vperm.xlu1 %2206, %v1053_v6   ;;  %v794_v14 = vadd.f32 %v2705_v50, %v734_v56  ;;  %v1093_v50 = vsel %vm3219_vm10, %v3124_v38, %v1089_v34  ;;  %v3233_v38 = vld [vmem:[%s2462_s24 + $0xb0] sm:$0xff]  ;;  %v3250_v30 = vld [vmem:[#allocation2] ss:$0 sm:$0xff]  ;;  %v1139_v28 = vand.u32 2147483647, %v3111_v63 }
 0x1a7   : > { %v1098_v57 = vsel %vm1095_vm11, %v1097_v37, %v1093_v50  ;;  %2138 = vmatmul.msk.f32.gmra.mxu1 %vm392_vm1, %v3233_v38  ;;  %v787_v39 = vadd.f32 %v3250_v30, %v3126_v40  ;;  %v629_v34 = vmax.f32 %v580_v61, 0.0  ;;  %v1202_v40 = vor.u32 1.1754944e-38, %v1201_v59  ;;  %2157 = vmatmul.msk.f32.gmra.mxu2 %vm392_vm1, %v2359_v43 }
 0x1a8   : > { %1788 = vst.msk [vmem:[%s3162_s30 + $0xc0] sm:$0xff] %vm1763_vm4, %v1755_v13  ;;  %v2102_v49 = vmul.f32 -1.442695, %v794_v14  ;;  %v1178_v41 = vmul.f32 %v3207_v45, %v1177_v24  ;;  %v1142_v14 = vor.u32 1.1754944e-38, %v1141_v10  ;;  %vm1140_vm7 = vcmp.eq.f32.partialorder %v1139_v28, 8.507059e+37 }
 0x1a9   : > { %v2286_v4 = vpop.eup %2285  ;;  %v2095_v25 = vmul.f32 -1.442695, %v787_v39  ;;  %v1184_v37 = vand.u32 2147483647, %v3156_v46  ;;  %v1564_v46 = vmax.f32 %v1519_v8, 0.0  ;;  %v1187_v61 = vor.u32 1.1754944e-38, %v1186_v58 }
 0x1aa   : > { %2289 = vpow2.f32 %v2102_v49  ;;  %v1191_v33 = vmul.f32 %v2286_v4, %v3183_v3  ;;  %vm1196_vm13 = vweird.f32 %v2286_v4  ;;  %v2288_v12 = vpop.eup %2287  ;;  %v1138_v3 = vsel %vm3257_vm3, %v3166_v27, %v1134_v2  ;;  %v2362_v2 = vld [vmem:[%s2462_s24 + $0x48] sm:$0xff] }
 0x1ab   : > { %2291 = vpow2.f32 %v2092_v15  ;;  %vm1197_vm5 = vmor %vm1195_vm15, %vm1196_vm13  ;;  %v3269_v13 = vadd.f32 1.0, %v2288_v12  ;;  %v1143_v49 = vsel %vm1140_vm7, %v1142_v14, %v1138_v3  ;;  %v1179_v50 = vadd.f32 %v3207_v45, %v1178_v41 }
 0x1ac   : > { %v1192_v54 = vsub.f32 1.0, %v1191_v33  ;;  %v3291_v33 = vpop.f32.mrf.mxu1  ;;  %vm1185_vm10 = vcmp.eq.f32.partialorder %v1184_v37, 8.507059e+37  ;;  %v1450_v12 = vadd.f32 %v3100_v0, %v3082_v22  ;;  %v793_v28 = vadd.f32 %v3250_v30, %v3202_v16 }
 0x1ad   : > { %v1036_v37 = vand.u32 2147483648, %v3269_v13  ;;  %vm1030_vm15 = vweird.f32 %v3269_v13  ;;  %v1034_v58 = vand.u32 2147483647, %v3269_v13 }
 0x1ae   : > { %1623 = vperm.xlu1 %2206, %v1098_v57   ;;  %v1193_v18 = vmul.f32 %v2286_v4, %v1192_v54  ;;  %v1183_v57 = vsel %vm3294_vm0, %v3207_v45, %v1179_v50  ;;  %v1541_v22 = vmax.f32 %v1450_v12, 0.0  ;;  %v2101_v14 = vmul.f32 -1.442695, %v793_v28 }
 0x1af   : > { %2139 = vmatmul.msk.f32.gmra.mxu1 %vm392_vm1, %v3277_v48  ;;  %2158 = vmatmul.msk.f32.gmra.mxu2 %vm392_vm1, %v2362_v2  ;;  %v1188_v29 = vsel %vm1185_vm10, %v1187_v61, %v1183_v57  ;;  %v805_v57 = vadd.f32 %v3250_v30, %v3009_v5 }
 0x1b0   : > { %v2290_v23 = vpop.eup %2289  ;;  %v1579_v35 = vpop.permute.xlu0 %1578  ;;  %v1194_v9 = vadd.f32 %v2286_v4, %v1193_v18 }
 0x1b1   : > { %v3262_v6 = vadd.f32 1.0, %v2290_v23  ;;  %v1732_v56 = vmul.f32 %v1579_v35, %v1540_v26  ;;  %v2292_v27 = vpop.eup %2291  ;;  %v790_v26 = vadd.f32 %v3250_v30, %v3168_v62 }
 0x1b2   : > { %v1198_v31 = vsel %vm1197_vm5, %v2286_v4, %v1194_v9  ;;  %v665_v4 = vmul.f32 %v2361_v51, %v629_v34  ;;  %v3304_v60 = vadd.f32 1.0, %v2292_v27  ;;  %vm1035_vm5 = vcmp.eq.f32.partialorder %v1034_v58, 8.507059e+37 }
 0x1b3   : > { %2293 = vrcp.f32 %v3262_v6  ;;  %1765 = vst.msk [vmem:[%s3162_s30 + $0x8] sm:$0xff] %vm1763_vm4, %v1732_v56  ;;  %v1203_v63 = vsel %vm1200_vm6, %v1202_v40, %v1198_v31  ;;  %v1231_v59 = vand.u32 2147483648, %v3262_v6  ;;  %v1229_v62 = vand.u32 2147483647, %v3262_v6  ;;  %v2363_v31 = vld [vmem:[%s2462_s24 + $0x50] sm:$0xff] }
 0x1b4   : > { %1658 = vperm.xlu0 %2205, %v1203_v63   ;;  %2295 = vrcp.f32 %v3269_v13  ;;  %v744_v15 = vsel %vm674_vm2, %v665_v4, 0.0  ;;  %vm1225_vm2 = vweird.f32 %v3262_v6  ;;  %v2098_v24 = vmul.f32 -1.442695, %v790_v26  ;;  %v3319_v56 = vpop.f32.mrf.mxu1 }
 0x1b5   : > { %2297 = vpow2.f32 %v2095_v25  ;;  %v1232_v35 = vor.u32 1.1754944e-38, %v1231_v59  ;;  %vm1230_vm13 = vcmp.eq.f32.partialorder %v1229_v62, 8.507059e+37  ;;  %v2365_v59 = vld [vmem:[%s2462_s24 + $0x60] sm:$0xff]  ;;  %v2113_v62 = vmul.f32 -1.442695, %v805_v57 }
 0x1b6   : > { %1638 = vperm.xlu1 %2206, %v1143_v49   ;;  %2299 = vrcp.f32 %v3304_v60  ;;  %v2364_v49 = vld [vmem:[%s2462_s24 + $0x58] sm:$0xff]  ;;  %vm1075_vm7 = vweird.f32 %v3304_v60  ;;  %v1079_v5 = vand.u32 2147483647, %v3304_v60 }
 0x1b7   : > { %2301 = vpow2.f32 %v2098_v24  ;;  %2159 = vmatmul.msk.f32.gmra.mxu2 %vm392_vm1, %v2363_v31 }
 0x1b8   : > { %vm1080_vm9 = vcmp.eq.f32.partialorder %v1079_v5, 8.507059e+37 }
 0x1b9   : > { %v2294_v21 = vpop.eup %2293 }
 0x1ba   : > { %v1221_v54 = vmul.f32 %v2294_v21, %v3262_v6  ;;  %vm1226_vm11 = vweird.f32 %v2294_v21  ;;  %v2296_v45 = vpop.eup %2295 }
 0x1bb   : > { %v2298_v39 = vpop.eup %2297  ;;  %vm1227_vm12 = vmor %vm1225_vm2, %vm1226_vm11  ;;  %v1026_v32 = vmul.f32 %v2296_v45, %v3269_v13  ;;  %vm1031_vm14 = vweird.f32 %v2296_v45 }
 0x1bc   : > { %745 = vadd.xlane.f32.xlu2 %v744_v15  ;;  %v1222_v17 = vsub.f32 1.0, %v1221_v54  ;;  %v3321_v34 = vadd.f32 1.0, %v2298_v39  ;;  %v2300_v41 = vpop.eup %2299  ;;  %v3333_v50 = vpop.f32.mrf.mxu1  ;;  %vm1032_vm3 = vmor %vm1030_vm15, %vm1031_vm14  ;;  %v1037_v54 = vor.u32 1.1754944e-38, %v1036_v37  ;;  %v2367_v37 = vld [vmem:[%s2462_s24 + $0x70] sm:$0xff] }
 0x1bd   : > { %v1699_v18 = vpop.permute.xlu1 %1698  ;;  %v1027_v3 = vsub.f32 1.0, %v1026_v32  ;;  %v2302_v16 = vpop.eup %2301  ;;  %v1071_v27 = vmul.f32 %v2300_v41, %v3304_v60  ;;  %vm1076_vm6 = vweird.f32 %v2300_v41 }
 0x1be   : > { %1653 = vperm.xlu1 %2206, %v1188_v29   ;;  %v1223_v10 = vmul.f32 %v2294_v21, %v1222_v17  ;;  %v1756_v23 = vmul.f32 %v1699_v18, %v1564_v46  ;;  %2303 = vrcp.f32 %v3321_v34  ;;  %v3329_v25 = vadd.f32 1.0, %v2302_v16  ;;  %vm1077_vm8 = vmor %vm1075_vm7, %vm1076_vm6 }
 0x1bf   : > { %v1028_v47 = vmul.f32 %v2296_v45, %v1027_v3  ;;  %2305 = vpow2.f32 %v2101_v14  ;;  %2160 = vmatmul.msk.f32.gmra.mxu2 %vm392_vm1, %v2364_v49  ;;  %v1072_v4 = vsub.f32 1.0, %v1071_v27  ;;  %vm1120_vm10 = vweird.f32 %v3321_v34 }
 0x1c0   : > { %v1224_v9 = vadd.f32 %v2294_v21, %v1223_v10  ;;  %1789 = vst.msk [vmem:[%s3162_s30 + $0xc8] sm:$0xff] %vm1763_vm4, %v1756_v23  ;;  %2307 = vrcp.f32 %v3329_v25  ;;  %v1521_v23 = vpop.f32.mrf.mxu3  ;;  %v1124_v3 = vand.u32 2147483647, %v3321_v34  ;;  %v1453_v14 = vadd.f32 %v3100_v0, %v3130_v53 }
 0x1c1   : > { %v1029_v51 = vadd.f32 %v2296_v45, %v1028_v47  ;;  %v1073_v42 = vmul.f32 %v2300_v41, %v1072_v4 }
 0x1c2   : > { %v1228_v6 = vsel %vm1227_vm12, %v2294_v21, %v1224_v9  ;;  %v2366_v9 = vld [vmem:[%s2462_s24 + $0x68] sm:$0xff]  ;;  %vm1125_vm11 = vcmp.eq.f32.partialorder %v1124_v3, 8.507059e+37  ;;  %v1542_v4 = vmax.f32 %v1453_v14, 0.0 }
 0x1c3   : > { %v1233_v40 = vsel %vm1230_vm13, %v1232_v35, %v1228_v6  ;;  %v1033_v15 = vsel %vm1032_vm3, %v2296_v45, %v1029_v51  ;;  %v1074_v13 = vadd.f32 %v2300_v41, %v1073_v42  ;;  %v1081_v45 = vand.u32 2147483648, %v3304_v60 }
 0x1c4   : > { %v3335_v8 = vpop.eup %2303  ;;  %v1038_v61 = vsel %vm1035_vm5, %v1037_v54, %v1033_v15  ;;  %v3354_v18 = vpop.f32.mrf.mxu1  ;;  %v1126_v6 = vand.u32 2147483648, %v3321_v34  ;;  %v1171_v42 = vand.u32 2147483648, %v3329_v25  ;;  %vm1165_vm13 = vweird.f32 %v3329_v25 }
 0x1c5   : > { %v1584_v63 = vpop.permute.xlu1 %1583  ;;  %v2306_v21 = vpop.eup %2305  ;;  %v1116_v26 = vmul.f32 %v3335_v8, %v3321_v34  ;;  %v1078_v29 = vsel %vm1077_vm8, %v2300_v41, %v1074_v13  ;;  %v1082_v10 = vor.u32 1.1754944e-38, %v1081_v45  ;;  %vm1121_vm0 = vweird.f32 %v3335_v8 }
 0x1c6   : > { %v1733_v43 = vmul.f32 %v1584_v63, %v1541_v22  ;;  %1668 = vperm.xlu1 %2206, %v1233_v40   ;;  %v3345_v46 = vadd.f32 1.0, %v2306_v21  ;;  %v3349_v17 = vpop.eup %2307  ;;  %v806_v63 = vadd.f32 %v3250_v30, %v2878_v52  ;;  %vm1122_vm2 = vmor %vm1120_vm10, %vm1121_vm0  ;;  %v1127_v51 = vor.u32 1.1754944e-38, %v1126_v6 }
 0x1c7   : > { %2161 = vmatmul.msk.f32.gmra.mxu2 %vm392_vm1, %v2365_v59  ;;  %v1117_v2 = vsub.f32 1.0, %v1116_v26  ;;  %v1161_v12 = vmul.f32 %v3349_v17, %v3329_v25  ;;  %v1083_v39 = vsel %vm1080_vm9, %v1082_v10, %v1078_v29  ;;  %vm1166_vm12 = vweird.f32 %v3349_v17 }
 0x1c8   : > { %1766 = vst.msk [vmem:[%s3162_s30 + $0x10] sm:$0xff] %vm1763_vm4, %v1733_v43  ;;  %2309 = vrcp.f32 %v3345_v46  ;;  %v2114_v58 = vmul.f32 -1.442695, %v806_v63  ;;  %v1169_v54 = vand.u32 2147483647, %v3329_v25  ;;  %v1522_v59 = vadd.f32 %v3100_v0, %v1521_v23  ;;  %vm3395_vm14 = vmor %vm1165_vm13, %vm1166_vm12 }
 0x1c9   : > { %v1118_v24 = vmul.f32 %v3335_v8, %v1117_v2  ;;  %2311 = vpow2.f32 %v2113_v62  ;;  %v1162_v28 = vsub.f32 1.0, %v1161_v12  ;;  %v1172_v29 = vor.u32 1.1754944e-38, %v1171_v42 }
 0x1ca   : > { %vm1170_vm15 = vcmp.eq.f32.partialorder %v1169_v54, 8.507059e+37  ;;  %vm1210_vm3 = vweird.f32 %v3345_v46  ;;  %v1565_v10 = vmax.f32 %v1522_v59, 0.0  ;;  %v1468_v63 = vadd.f32 %v3100_v0, %v3319_v56 }
 0x1cb   : > { %v1119_v32 = vadd.f32 %v3335_v8, %v1118_v24  ;;  %v1163_v47 = vmul.f32 %v3349_v17, %v1162_v28  ;;  %v1456_v28 = vadd.f32 %v3100_v0, %v3173_v1  ;;  %vm1916_vm10 = vcmask 23552  }
 0x1cc   : > { %v3377_v27 = vpop.f32.mrf.mxu1 }
 0x1cd   : > { %v1123_v16 = vsel %vm1122_vm2, %v3335_v8, %v1119_v32  ;;  %v1524_v8 = vpop.f32.mrf.mxu3  ;;  %v1164_v21 = vadd.f32 %v3349_v17, %v1163_v47  ;;  %v1214_v32 = vand.u32 2147483647, %v3345_v46 }
 0x1ce   : > { %v3365_v22 = vpop.eup %2309  ;;  %v1128_v53 = vsel %vm1125_vm11, %v1127_v51, %v1123_v16  ;;  %v1525_v2 = vadd.f32 %v3100_v0, %v1524_v8 }
 0x1cf   : > { %2162 = vmatmul.msk.f32.gmra.mxu2 %vm392_vm1, %v2366_v9  ;;  %v2312_v41 = vpop.eup %2311  ;;  %v1206_v34 = vmul.f32 %v3365_v22, %v3345_v46  ;;  %v1168_v45 = vsel %vm3395_vm14, %v3349_v17, %v1164_v21  ;;  %vm1211_vm5 = vweird.f32 %v3365_v22  ;;  %vm1215_vm7 = vcmp.eq.f32.partialorder %v1214_v32, 8.507059e+37 }
 0x1d0   : > { %v3381_v52 = vadd.f32 1.0, %v2312_v41  ;;  %v1566_v23 = vmax.f32 %v1525_v2, 0.0  ;;  %v1173_v17 = vsel %vm1170_vm15, %v1172_v29, %v1168_v45  ;;  %vm3424_vm6 = vmor %vm1210_vm3, %vm1211_vm5 }
 0x1d1   : > { %v1207_v15 = vsub.f32 1.0, %v1206_v34 }
 0x1d2   : > { %vm1390_vm14 = vweird.f32 %v3381_v52 }
 0x1d3   : > { %v1208_v5 = vmul.f32 %v3365_v22, %v1207_v15  ;;  %v2369_v15 = vld [vmem:[%s2462_s24 + $0x80] sm:$0xff] }
 0x1d4   : > { %1603 = vperm.xlu2 %2204, %v1038_v61   ;;  %v3410_v12 = vpop.f32.mrf.mxu1 }
 0x1d7   : > { %2163 = vmatmul.msk.f32.gmra.mxu2 %vm392_vm1, %v2367_v37  ;;  %v1547_v37 = vmax.f32 %v1468_v63, 0.0 }
 0x1db   : > { %v740_v35 = vpop.xlane.xlu0 %739 }
 0x1dc   : > { %1618 = vperm.xlu2 %2204, %v1083_v39   ;;  %v796_v60 = vadd.f32 %v3250_v30, %v740_v35  ;;  %v1216_v39 = vand.u32 2147483648, %v3345_v46  ;;  %v2368_v35 = vld [vmem:[%s2462_s24 + $0x78] sm:$0xff]  ;;  %v3451_v54 = vpop.f32.mrf.mxu1 }
 0x1de   : > { %v2104_v40 = vmul.f32 -1.442695, %v796_v60  ;;  %v737_v31 = vpop.xlane.xlu2 %736  ;;  %v1209_v60 = vadd.f32 %v3365_v22, %v1208_v5  ;;  %v1217_v16 = vor.u32 1.1754944e-38, %v1216_v39 }
 0x1df   : > { %v795_v43 = vadd.f32 %v3250_v30, %v737_v31  ;;  %2164 = vmatmul.msk.f32.gmra.mxu2 %vm392_vm1, %v2368_v35 }
 0x1e0   : > { %2313 = vpow2.f32 %v2104_v40  ;;  %v1213_v1 = vsel %vm3424_vm6, %v3365_v22, %v1209_v60 }
 0x1e1   : > { %v2103_v49 = vmul.f32 -1.442695, %v795_v43  ;;  %v1218_v8 = vsel %vm1215_vm7, %v1217_v16, %v1213_v1  ;;  %v1527_v16 = vpop.f32.mrf.mxu3 }
 0x1e3   : > { %2315 = vpow2.f32 %v2103_v49  ;;  %v1543_v49 = vmax.f32 %v1456_v28, 0.0 }
 0x1e4   : > { %1633 = vperm.xlu2 %2204, %v1128_v53   ;;  %2317 = vrcp.f32 %v3381_v52  ;;  %v1485_v1 = vpop.f32.mrf.mxu1 }
 0x1e5   : > { %2319 = vpow2.f32 %v2114_v58 }
 0x1e6   : > { %v2314_v26 = vpop.eup %2313  ;;  %v1589_v57 = vpop.permute.xlu2 %1588 }
 0x1e7   : > { %v3391_v61 = vadd.f32 1.0, %v2314_v26  ;;  %v1734_v13 = vmul.f32 %v1589_v57, %v1542_v4  ;;  %2165 = vmatmul.msk.f32.gmra.mxu2 %vm392_vm1, %v2369_v15  ;;  %v1477_v26 = vadd.f32 %v3100_v0, %v3377_v27 }
 0x1e9   : > { %v2316_v25 = vpop.eup %2315  ;;  %2321 = vrcp.f32 %v3391_v61  ;;  %1767 = vst.msk [vmem:[%s3162_s30 + $0x18] sm:$0xff] %vm1763_vm4, %v1734_v13  ;;  %v1261_v51 = vand.u32 2147483648, %v3391_v61  ;;  %vm1255_vm8 = vweird.f32 %v3391_v61  ;;  %v1259_v22 = vand.u32 2147483647, %v3391_v61 }
 0x1ea   : > { %v3406_v24 = vadd.f32 1.0, %v2316_v25  ;;  %v3415_v9 = vpop.eup %2317 }
 0x1eb   : > { %v2320_v40 = vpop.eup %2319  ;;  %v1386_v34 = vmul.f32 %v3415_v9, %v3381_v52  ;;  %v1262_v2 = vor.u32 1.1754944e-38, %v1261_v51  ;;  %vm1260_vm2 = vcmp.eq.f32.partialorder %v1259_v22, 8.507059e+37  ;;  %vm1391_vm15 = vweird.f32 %v3415_v9 }
 0x1ec   : > { %2323 = vrcp.f32 %v3406_v24  ;;  %1648 = vperm.xlu2 %2204, %v1173_v17   ;;  %v3447_v42 = vadd.f32 1.0, %v2320_v40  ;;  %v1246_v25 = vand.u32 2147483648, %v3406_v24  ;;  %v1820_v17 = vpop.f32.mrf.mxu2  ;;  %vm1240_vm12 = vweird.f32 %v3406_v24  ;;  %vm1392_vm5 = vmor %vm1390_vm14, %vm1391_vm15  ;;  %v3503_v13 = vpop.f32.mrf.mxu1 }
 0x1ed   : > { %v1387_v59 = vsub.f32 1.0, %v1386_v34  ;;  %1917 = vst.msk [vmem:[%s3464_s16] sm:$0xff] %vm1916_vm10, %v1820_v17  ;;  %v1550_v40 = vmax.f32 %v1477_v26, 0.0 }
 0x1ee   : > { %v1709_v31 = vpop.permute.xlu2 %1708  ;;  %v1704_v3 = vpop.permute.xlu0 %1703  ;;  %v1247_v28 = vor.u32 1.1754944e-38, %v1246_v25 }
 0x1ef   : > { %v2322_v41 = vpop.eup %2321  ;;  %v1758_v14 = vmul.f32 %v1709_v31, %v1566_v23  ;;  %v1757_v43 = vmul.f32 %v1704_v3, %v1565_v10  ;;  %v1388_v35 = vmul.f32 %v3415_v9, %v1387_v59  ;;  %v1396_v3 = vand.u32 2147483648, %v3381_v52 }
 0x1f0   : > { %v743_v47 = vpop.xlane.xlu1 %742  ;;  %v1251_v46 = vmul.f32 %v2322_v41, %v3391_v61  ;;  %vm1256_vm9 = vweird.f32 %v2322_v41  ;;  %v1244_v61 = vand.u32 2147483647, %v3406_v24 }
 0x1f1   : > { %1791 = vst.msk [vmem:[%s3162_s30 + $0xd8] sm:$0xff] %vm1763_vm4, %v1758_v14  ;;  %v797_v56 = vadd.f32 %v3250_v30, %v743_v47  ;;  %vm3456_vm0 = vmor %vm1255_vm8, %vm1256_vm9  ;;  %v1389_v14 = vadd.f32 %v3415_v9, %v1388_v35  ;;  %v1409_v35 = vand.u32 2147483647, %v3447_v42 }
 0x1f2   : > { %v2324_v4 = vpop.eup %2323  ;;  %1790 = vst.msk [vmem:[%s3162_s30 + $0xd0] sm:$0xff] %vm1763_vm4, %v1757_v43  ;;  %v1252_v53 = vsub.f32 1.0, %v1251_v46  ;;  %vm1245_vm3 = vcmp.eq.f32.partialorder %v1244_v61, 8.507059e+37  ;;  %v1394_v43 = vand.u32 2147483647, %v3381_v52 }
 0x1f3   : > { %v2105_v58 = vmul.f32 -1.442695, %v797_v56  ;;  %v1236_v21 = vmul.f32 %v2324_v4, %v3406_v24  ;;  %vm1241_vm11 = vweird.f32 %v2324_v4  ;;  %v1393_v51 = vsel %vm1392_vm5, %v3415_v9, %v1389_v14 }
 0x1f4   : > { %1663 = vperm.xlu2 %2204, %v1218_v8   ;;  %v1253_v57 = vmul.f32 %v2322_v41, %v1252_v53  ;;  %vm1242_vm13 = vmor %vm1240_vm12, %vm1241_vm11  ;;  %v1823_v56 = vpop.f32.mrf.mxu2  ;;  %vm1395_vm6 = vcmp.eq.f32.partialorder %v1394_v43, 8.507059e+37  ;;  %v1486_v9 = vadd.f32 %v3100_v0, %v1485_v1 }
 0x1f5   : > { %2325 = vpow2.f32 %v2105_v58  ;;  %v1237_v62 = vsub.f32 1.0, %v1236_v21  ;;  %1918 = vst.msk [vmem:[%s3464_s16 + $0x8] sm:$0xff] %vm1916_vm10, %v1823_v56 }
 0x1f6   : > { %v1594_v27 = vpop.permute.xlu2 %1593  ;;  %v1614_v45 = vpop.permute.xlu0 %1613  ;;  %v1254_v5 = vadd.f32 %v2322_v41, %v1253_v57  ;;  %2327 = vrcp.f32 %v3447_v42 }
 0x1f7   : > { %v1735_v29 = vmul.f32 %v1594_v27, %v1543_v49  ;;  %v1739_v10 = vmul.f32 %v1614_v45, %v1547_v37  ;;  %v1238_v23 = vmul.f32 %v2324_v4, %v1237_v62  ;;  %v1397_v49 = vor.u32 1.1754944e-38, %v1396_v3 }
 0x1f8   : > { %v1258_v39 = vsel %vm3456_vm0, %v2322_v41, %v1254_v5  ;;  %v2370_v41 = vld [vmem:[%s2462_s24 + $0x88] sm:$0xff]  ;;  %v1553_v45 = vmax.f32 %v1486_v9, 0.0 }
 0x1f9   : > { %1768 = vst.msk [vmem:[%s3162_s30 + $0x20] sm:$0xff] %vm1763_vm4, %v1735_v29  ;;  %v1263_v60 = vsel %vm1260_vm2, %v1262_v2, %v1258_v39  ;;  %v1239_v32 = vadd.f32 %v2324_v4, %v1238_v23  ;;  %2166 = vmatmul.msk.f32.gmra.mxu2 %vm392_vm1, %v2370_v41  ;;  %v1398_v53 = vsel %vm1395_vm6, %v1397_v49, %v1393_v51  ;;  %vm1405_vm2 = vweird.f32 %v3447_v42 }
 0x1fa   : > { %1772 = vst.msk [vmem:[%s3162_s30 + $0x40] sm:$0xff] %vm1763_vm4, %v1739_v10  ;;  %v1411_v23 = vand.u32 2147483648, %v3447_v42 }
 0x1fb   : > { %v2326_v6 = vpop.eup %2325  ;;  %v1243_v31 = vsel %vm1242_vm13, %v2324_v4, %v1239_v32  ;;  %v1528_v4 = vadd.f32 %v3100_v0, %v1527_v16  ;;  %v1465_v32 = vadd.f32 %v3100_v0, %v3291_v33  ;;  %vm1410_vm13 = vcmp.eq.f32.partialorder %v1409_v35, 8.507059e+37 }
 0x1fc   : > { %v925_v63 = vadd.f32 1.0, %v2326_v6  ;;  %1678 = vperm.xlu2 %2204, %v1263_v60   ;;  %v1248_v24 = vsel %vm1245_vm3, %v1247_v28, %v1243_v31  ;;  %v3490_v46 = vpop.eup %2327  ;;  %v1826_v57 = vpop.f32.mrf.mxu2  ;;  %v1412_v6 = vor.u32 1.1754944e-38, %v1411_v23  ;;  %v1474_v33 = vadd.f32 %v3100_v0, %v3354_v18 }
 0x1fd   : > { %1673 = vperm.xlu0 %2205, %v1248_v24   ;;  %v1401_v52 = vmul.f32 %v3490_v46, %v3447_v42  ;;  %v1567_v37 = vmax.f32 %v1528_v4, 0.0  ;;  %1919 = vst.msk [vmem:[%s3464_s16 + $0x10] sm:$0xff] %vm1916_vm10, %v1826_v57  ;;  %vm1406_vm11 = vweird.f32 %v3490_v46  ;;  %v1546_v42 = vmax.f32 %v1465_v32, 0.0  ;;  %v3554_v4 = vld [vmem:[%s3677_s2] ss:$0 sm:$0xff] }
 0x1fe   : > { %2329 = vrcp.f32 %v925_v63  ;;  %v1629_v47 = vpop.permute.xlu0 %1628  ;;  %v1276_v8 = vand.u32 2147483648, %v925_v63  ;;  %vm1270_vm7 = vweird.f32 %v925_v63  ;;  %v1274_v26 = vand.u32 2147483647, %v925_v63  ;;  %vm1407_vm12 = vmor %vm1405_vm2, %vm1406_vm11 }
 0x1ff   : > { %v1742_v34 = vmul.f32 %v1629_v47, %v1550_v40  ;;  %v1402_v21 = vsub.f32 1.0, %v1401_v52  ;;  %v1491_v40 = vpop.f32.mrf.mxu1  ;;  %v1549_v14 = vmax.f32 %v1474_v33, 0.0  ;;  %v1483_v47 = vadd.f32 %v3100_v0, %v3451_v54 }
 0x200   : > { %v1277_v27 = vor.u32 1.1754944e-38, %v1276_v8  ;;  %vm1275_vm0 = vcmp.eq.f32.partialorder %v1274_v26, 8.507059e+37 }
 0x201   : > { %1775 = vst.msk [vmem:[%s3162_s30 + $0x58] sm:$0xff] %vm1763_vm4, %v1742_v34  ;;  %2167 = vmatmul.msk.f32.gmra.mxu2 %vm392_vm1, %v3060_v7  ;;  %v1459_v7 = vadd.f32 %v3100_v0, %v3205_v44  ;;  %v1403_v61 = vmul.f32 %v3490_v46, %v1402_v21  ;;  %v1552_v34 = vmax.f32 %v1483_v47, 0.0 }
 0x203   : > { %v1544_v25 = vmax.f32 %v1459_v7, 0.0  ;;  %v1404_v39 = vadd.f32 %v3490_v46, %v1403_v61 }
 0x204   : > { %v2330_v22 = vpop.eup %2329  ;;  %1723 = vperm.xlu2 %2204, %v1398_v53   ;;  %v1829_v60 = vpop.f32.mrf.mxu2 }
 0x205   : > { %v1266_v58 = vmul.f32 %v2330_v22, %v925_v63  ;;  %vm1271_vm8 = vweird.f32 %v2330_v22  ;;  %1920 = vst.msk [vmem:[%s3464_s16 + $0x18] sm:$0xff] %vm1916_vm10, %v1829_v60  ;;  %v1408_v31 = vsel %vm1407_vm12, %v3490_v46, %v1404_v39 }
 0x206   : > { %vm1272_vm9 = vmor %vm1270_vm7, %vm1271_vm8  ;;  %v1413_v3 = vsel %vm1410_vm13, %v1412_v6, %v1408_v31  ;;  %v1489_v6 = vadd.f32 %v3554_v4, %v3503_v13 }
 0x207   : > { %v1267_v15 = vsub.f32 1.0, %v1266_v58  ;;  %v1494_v24 = vpop.f32.mrf.mxu1  ;;  %v1462_v58 = vadd.f32 %v3554_v4, %v3246_v11 }
 0x208   : > { %v1714_v59 = vpop.permute.xlu1 %1713 }
 0x209   : > { %v1759_v2 = vmul.f32 %v1714_v59, %v1567_v37  ;;  %v1268_v62 = vmul.f32 %v2330_v22, %v1267_v15  ;;  %2168 = vmatmul.msk.f32.gmra.mxu2 %vm392_vm1, %v3115_v36  ;;  %v1545_v57 = vmax.f32 %v1462_v58, 0.0 }
 0x20b   : > { %1792 = vst.msk [vmem:[%s3162_s30 + $0xe0] sm:$0xff] %vm1763_vm4, %v1759_v2  ;;  %v1269_v5 = vadd.f32 %v2330_v22, %v1268_v62 }
 0x20c   : > { %v1832_v43 = vpop.f32.mrf.mxu2 }
 0x20d   : > { %v1273_v29 = vsel %vm1272_vm9, %v2330_v22, %v1269_v5  ;;  %1921 = vst.msk [vmem:[%s3464_s16 + $0x20] sm:$0xff] %vm1916_vm10, %v1832_v43 }
 0x20e   : > { %v1644_v44 = vpop.permute.xlu0 %1643  ;;  %v1278_v10 = vsel %vm1275_vm0, %v1277_v27, %v1273_v29 }
 0x20f   : > { %v1745_v17 = vmul.f32 %v1644_v44, %v1553_v45  ;;  %1683 = vperm.xlu1 %2206, %v1278_v10   ;;  %v3547_v46 = vpop.f32.mrf.mxu1  ;;  %v1480_v10 = vadd.f32 %v3554_v4, %v3410_v12 }
 0x210   : > { %v1599_v36 = vpop.permute.xlu1 %1598 }
 0x211   : > { %1778 = vst.msk [vmem:[%s3162_s30 + $0x70] sm:$0xff] %vm1763_vm4, %v1745_v17  ;;  %v1736_v28 = vmul.f32 %v1599_v36, %v1544_v25  ;;  %2169 = vmatmul.msk.f32.gmra.mxu2 %vm392_vm1, %v3152_v19  ;;  %v1495_v19 = vadd.f32 %v3100_v0, %v1494_v24  ;;  %v1551_v35 = vmax.f32 %v1480_v10, 0.0 }
 0x213   : > { %1769 = vst.msk [vmem:[%s3162_s30 + $0x28] sm:$0xff] %vm1763_vm4, %v1736_v28  ;;  %v1556_v1 = vmax.f32 %v1495_v19, 0.0 }
 0x214   : > { %v1835_v49 = vpop.f32.mrf.mxu2 }
 0x215   : > { %1922 = vst.msk [vmem:[%s3464_s16 + $0x28] sm:$0xff] %vm1916_vm10, %v1835_v49 }
 0x217   : > { %1728 = vperm.xlu1 %2206, %v1413_v3   ;;  %v1500_v22 = vpop.f32.mrf.mxu1 }
 0x218   : > { %v1609_v41 = vpop.permute.xlu1 %1608  ;;  %v1501_v15 = vadd.f32 %v3554_v4, %v1500_v22 }
 0x219   : > { %v1738_v63 = vmul.f32 %v1609_v41, %v1546_v42  ;;  %2170 = vmatmul.msk.f32.gmra.mxu2 %vm392_vm1, %v3193_v20  ;;  %v804_v20 = vadd.f32 %v3250_v30, %v2820_v55 }
 0x21a   : > { %v1558_v7 = vmax.f32 %v1501_v15, 0.0 }
 0x21b   : > { %1771 = vst.msk [vmem:[%s3162_s30 + $0x38] sm:$0xff] %vm1763_vm4, %v1738_v63  ;;  %v2112_v54 = vmul.f32 -1.442695, %v804_v20  ;;  %v1498_v20 = vadd.f32 %v3554_v4, %v3547_v46 }
 0x21c   : > { %v1838_v53 = vpop.f32.mrf.mxu2 }
 0x21d   : > { %2331 = vpow2.f32 %v2112_v54  ;;  %1923 = vst.msk [vmem:[%s3464_s16 + $0x30] sm:$0xff] %vm1916_vm10, %v1838_v53  ;;  %v1557_v54 = vmax.f32 %v1498_v20, 0.0 }
 0x21f   : > { %v1503_v24 = vpop.f32.mrf.mxu1 }
 0x220   : > { %v1624_v16 = vpop.permute.xlu1 %1623 }
 0x221   : > { %v1741_v18 = vmul.f32 %v1624_v16, %v1549_v14  ;;  %2171 = vmatmul.msk.f32.gmra.mxu2 %vm392_vm1, %v3233_v38  ;;  %v1492_v38 = vadd.f32 %v3554_v4, %v1491_v40  ;;  %v1554_v14 = vmax.f32 %v1489_v6, 0.0 }
 0x223   : > { %1774 = vst.msk [vmem:[%s3162_s30 + $0x50] sm:$0xff] %vm1763_vm4, %v1741_v18  ;;  %v1555_v52 = vmax.f32 %v1492_v38, 0.0  ;;  %v2332_v26 = vpop.eup %2331 }
 0x224   : > { %v3571_v59 = vadd.f32 1.0, %v2332_v26  ;;  %v1841_v2 = vpop.f32.mrf.mxu2 }
 0x225   : > { %1924 = vst.msk [vmem:[%s3464_s16 + $0x38] sm:$0xff] %vm1916_vm10, %v1841_v2 }
 0x226   : > { %v1659_v56 = vpop.permute.xlu0 %1658  ;;  %vm1375_vm3 = vweird.f32 %v3571_v59  ;;  %v1381_v19 = vand.u32 2147483648, %v3571_v59  ;;  %v1379_v18 = vand.u32 2147483647, %v3571_v59 }
 0x227   : > { %v1748_v0 = vmul.f32 %v1659_v56, %v1556_v1  ;;  %v1506_v38 = vpop.f32.mrf.mxu1 }
 0x228   : > { %v1639_v51 = vpop.permute.xlu1 %1638  ;;  %v1382_v49 = vor.u32 1.1754944e-38, %v1381_v19  ;;  %vm1380_vm8 = vcmp.eq.f32.partialorder %v1379_v18, 8.507059e+37  ;;  %v1507_v53 = vadd.f32 %v3554_v4, %v1506_v38 }
 0x229   : > { %1781 = vst.msk [vmem:[%s3162_s30 + $0x88] sm:$0xff] %vm1763_vm4, %v1748_v0  ;;  %v1744_v55 = vmul.f32 %v1639_v51, %v1552_v34  ;;  %2172 = vmatmul.msk.f32.gmra.mxu2 %vm392_vm1, %v3277_v48  ;;  %v3604_v0 = vpop.f32.mrf.mxu3 }
 0x22a   : > { %v1560_v22 = vmax.f32 %v1507_v53, 0.0 }
 0x22b   : > { %1777 = vst.msk [vmem:[%s3162_s30 + $0x68] sm:$0xff] %vm1763_vm4, %v1744_v55 }
 0x22c   : > { %v1844_v29 = vpop.f32.mrf.mxu2 }
 0x22d   : > { %1925 = vst.msk [vmem:[%s3464_s16 + $0x40] sm:$0xff] %vm1916_vm10, %v1844_v29 }
 0x22f   : > { %v746_v37 = vpop.xlane.xlu2 %745 }
 0x230   : > { %v798_v9 = vadd.f32 %v3250_v30, %v746_v37  ;;  %v1654_v8 = vpop.permute.xlu1 %1653  ;;  %v1471_v30 = vadd.f32 %v3554_v4, %v3333_v50 }
 0x231   : > { %v1747_v21 = vmul.f32 %v1654_v8, %v1555_v52  ;;  %v1533_v37 = vpop.f32.mrf.mxu3 }
 0x232   : > { %v2106_v48 = vmul.f32 -1.442695, %v798_v9  ;;  %v1548_v25 = vmax.f32 %v1471_v30, 0.0 }
 0x233   : > { %1780 = vst.msk [vmem:[%s3162_s30 + $0x80] sm:$0xff] %vm1763_vm4, %v1747_v21  ;;  %v1534_v21 = vadd.f32 %v3554_v4, %v1533_v37 }
 0x234   : > { %2333 = vpow2.f32 %v2106_v48  ;;  %v1847_v36 = vpop.f32.mrf.mxu2 }
 0x235   : > { %2335 = vrcp.f32 %v3571_v59  ;;  %1926 = vst.msk [vmem:[%s3464_s16 + $0x48] sm:$0xff] %vm1916_vm10, %v1847_v36  ;;  %v1569_v15 = vmax.f32 %v1534_v21, 0.0 }
 0x237   : > { %v1604_v11 = vpop.permute.xlu2 %1603 }
 0x238   : > { %v1737_v62 = vmul.f32 %v1604_v11, %v1545_v57  ;;  %v1669_v27 = vpop.permute.xlu1 %1668 }
 0x239   : > { %v1750_v45 = vmul.f32 %v1669_v27, %v1558_v7  ;;  %v1536_v26 = vpop.f32.mrf.mxu3 }
 0x23a   : > { %v2334_v5 = vpop.eup %2333  ;;  %1770 = vst.msk [vmem:[%s3162_s30 + $0x30] sm:$0xff] %vm1763_vm4, %v1737_v62 }
 0x23b   : > { %v926_v61 = vadd.f32 1.0, %v2334_v5  ;;  %1783 = vst.msk [vmem:[%s3162_s30 + $0x98] sm:$0xff] %vm1763_vm4, %v1750_v45  ;;  %v2336_v44 = vpop.eup %2335 }
 0x23c   : > { %v1371_v17 = vmul.f32 %v2336_v44, %v3571_v59  ;;  %vm1376_vm6 = vweird.f32 %v2336_v44  ;;  %v1850_v16 = vpop.f32.mrf.mxu2  ;;  %v1504_v59 = vadd.f32 %v3554_v4, %v1503_v24 }
 0x23d   : > { %2337 = vrcp.f32 %v926_v61  ;;  %v1291_v31 = vand.u32 2147483648, %v926_v61  ;;  %v1289_v3 = vand.u32 2147483647, %v926_v61  ;;  %vm1285_vm14 = vweird.f32 %v926_v61  ;;  %1927 = vst.msk [vmem:[%s3464_s16 + $0x50] sm:$0xff] %vm1916_vm10, %v1850_v16  ;;  %vm1377_vm7 = vmor %vm1375_vm3, %vm1376_vm6 }
 0x23e   : > { %v1372_v28 = vsub.f32 1.0, %v1371_v17  ;;  %v1559_v2 = vmax.f32 %v1504_v59, 0.0  ;;  %v1537_v17 = vadd.f32 %v3554_v4, %v1536_v26  ;;  %v1531_v16 = vadd.f32 %v3554_v4, %v3604_v0 }
 0x23f   : > { %v1619_v50 = vpop.permute.xlu2 %1618  ;;  %v1292_v63 = vor.u32 1.1754944e-38, %v1291_v31  ;;  %vm1290_vm5 = vcmp.eq.f32.partialorder %v1289_v3, 8.507059e+37 }
 0x240   : > { %v1740_v23 = vmul.f32 %v1619_v50, %v1548_v25  ;;  %v1373_v33 = vmul.f32 %v2336_v44, %v1372_v28 }
 0x241   : > { %v1892_v11 = vpop.f32.mrf.mxu3 }
 0x242   : > { %1773 = vst.msk [vmem:[%s3162_s30 + $0x48] sm:$0xff] %vm1763_vm4, %v1740_v23  ;;  %v1374_v47 = vadd.f32 %v2336_v44, %v1373_v33 }
 0x243   : > { %v2338_v39 = vpop.eup %2337  ;;  %1941 = vst.msk [vmem:[%s3464_s16 + $0xc0] sm:$0xff] %vm1916_vm10, %v1892_v11 }
 0x244   : > { %v1281_v60 = vmul.f32 %v2338_v39, %v926_v61  ;;  %vm1286_vm1 = vweird.f32 %v2338_v39  ;;  %v1378_v56 = vsel %vm1377_vm7, %v2336_v44, %v1374_v47  ;;  %v1853_v55 = vpop.f32.mrf.mxu2  ;;  %v1509_v61 = vpop.f32.mrf.mxu1  ;;  %v1568_v47 = vmax.f32 %v1531_v16, 0.0 }
 0x245   : > { %vm1287_vm15 = vmor %vm1285_vm14, %vm1286_vm1  ;;  %v1383_v51 = vsel %vm1380_vm8, %v1382_v49, %v1378_v56  ;;  %1928 = vst.msk [vmem:[%s3464_s16 + $0x58] sm:$0xff] %vm1916_vm10, %v1853_v55  ;;  %v1510_v25 = vadd.f32 %v3554_v4, %v1509_v61 }
 0x246   : > { %v1282_v32 = vsub.f32 1.0, %v1281_v60  ;;  %v1570_v60 = vmax.f32 %v1537_v17, 0.0 }
 0x247   : > { %v1634_v40 = vpop.permute.xlu2 %1633  ;;  %v1561_v50 = vmax.f32 %v1510_v25, 0.0 }
 0x248   : > { %v1743_v12 = vmul.f32 %v1634_v40, %v1551_v35  ;;  %v1283_v42 = vmul.f32 %v2338_v39, %v1282_v32 }
 0x249   : > { %v1895_v45 = vpop.f32.mrf.mxu3 }
 0x24a   : > { %1776 = vst.msk [vmem:[%s3162_s30 + $0x60] sm:$0xff] %vm1763_vm4, %v1743_v12  ;;  %v1284_v41 = vadd.f32 %v2338_v39, %v1283_v42 }
 0x24b   : > { %1942 = vst.msk [vmem:[%s3464_s16 + $0xc8] sm:$0xff] %vm1916_vm10, %v1895_v45 }
 0x24c   : > { %v1288_v13 = vsel %vm1287_vm15, %v2338_v39, %v1284_v41  ;;  %v1856_v58 = vpop.f32.mrf.mxu2  ;;  %v1512_v24 = vpop.f32.mrf.mxu1 }
 0x24d   : > { %v1293_v43 = vsel %vm1290_vm5, %v1292_v63, %v1288_v13  ;;  %1929 = vst.msk [vmem:[%s3464_s16 + $0x60] sm:$0xff] %vm1916_vm10, %v1856_v58 }
 0x24e   : > { %1688 = vperm.xlu0 %2205, %v1293_v43  }
 0x24f   : > { %v1649_v1 = vpop.permute.xlu2 %1648 }
 0x250   : > { %v1746_v34 = vmul.f32 %v1649_v1, %v1554_v14  ;;  %v1513_v14 = vadd.f32 %v3554_v4, %v1512_v24 }
 0x251   : > { %v1898_v29 = vpop.f32.mrf.mxu3 }
 0x252   : > { %1779 = vst.msk [vmem:[%s3162_s30 + $0x78] sm:$0xff] %vm1763_vm4, %v1746_v34  ;;  %v1562_v13 = vmax.f32 %v1513_v14, 0.0 }
 0x253   : > { %1943 = vst.msk [vmem:[%s3464_s16 + $0xd0] sm:$0xff] %vm1916_vm10, %v1898_v29 }
 0x254   : > { %v1859_v48 = vpop.f32.mrf.mxu2 }
 0x255   : > { %1930 = vst.msk [vmem:[%s3464_s16 + $0x68] sm:$0xff] %vm1916_vm10, %v1859_v48 }
 0x256   : > { %1718 = vperm.xlu0 %2205, %v1383_v51  }
 0x257   : > { %v1664_v46 = vpop.permute.xlu2 %1663 }
 0x258   : > { %v1749_v52 = vmul.f32 %v1664_v46, %v1557_v54 }
 0x259   : > { %v1901_v39 = vpop.f32.mrf.mxu3 }
 0x25a   : > { %1782 = vst.msk [vmem:[%s3162_s30 + $0x90] sm:$0xff] %vm1763_vm4, %v1749_v52 }
 0x25b   : > { %1944 = vst.msk [vmem:[%s3464_s16 + $0xd8] sm:$0xff] %vm1916_vm10, %v1901_v39 }
 0x25c   : > { %v1862_v30 = vpop.f32.mrf.mxu2 }
 0x25d   : > { %1931 = vst.msk [vmem:[%s3464_s16 + $0x70] sm:$0xff] %vm1916_vm10, %v1862_v30 }
 0x25f   : > { %v1679_v9 = vpop.permute.xlu2 %1678 }
 0x260   : > { %v1752_v8 = vmul.f32 %v1679_v9, %v1560_v22 }
 0x261   : > { %v1904_v28 = vpop.f32.mrf.mxu3 }
 0x262   : > { %1785 = vst.msk [vmem:[%s3162_s30 + $0xa8] sm:$0xff] %vm1763_vm4, %v1752_v8 }
 0x263   : > { %1945 = vst.msk [vmem:[%s3464_s16 + $0xe0] sm:$0xff] %vm1916_vm10, %v1904_v28 }
 0x264   : > { %v1865_v5 = vpop.f32.mrf.mxu2 }
 0x265   : > { %1932 = vst.msk [vmem:[%s3464_s16 + $0x78] sm:$0xff] %vm1916_vm10, %v1865_v5 }
 0x267   : > { %v1724_v57 = vpop.permute.xlu2 %1723 }
 0x268   : > { %v1761_v7 = vmul.f32 %v1724_v57, %v1569_v15 }
 0x269   : > { %v1907_v40 = vpop.f32.mrf.mxu3 }
 0x26a   : > { %1794 = vst.msk [vmem:[%s3162_s30 + $0xf0] sm:$0xff] %vm1763_vm4, %v1761_v7 }
 0x26b   : > { %1946 = vst.msk [vmem:[%s3464_s16 + $0xe8] sm:$0xff] %vm1916_vm10, %v1907_v40 }
 0x26c   : > { %v1868_v44 = vpop.f32.mrf.mxu2 }
 0x26d   : > { %1933 = vst.msk [vmem:[%s3464_s16 + $0x80] sm:$0xff] %vm1916_vm10, %v1868_v44 }
 0x26f   : > { %v1674_v62 = vpop.permute.xlu0 %1673 }
 0x270   : > { %v1751_v27 = vmul.f32 %v1674_v62, %v1559_v2 }
 0x271   : > { %v1910_v42 = vpop.f32.mrf.mxu3 }
 0x272   : > { %1784 = vst.msk [vmem:[%s3162_s30 + $0xa0] sm:$0xff] %vm1763_vm4, %v1751_v27 }
 0x273   : > { %1947 = vst.msk [vmem:[%s3464_s16 + $0xf0] sm:$0xff] %vm1916_vm10, %v1910_v42 }
 0x279   : > { %v1913_v41 = vpop.f32.mrf.mxu3 }
 0x27a   : > { %1948 = vst.msk [vmem:[%s3464_s16 + $0xf8] sm:$0xff] %vm1916_vm10, %v1913_v41 }
 0x27c   : > { %v1871_v35 = vpop.f32.mrf.mxu2 }
 0x27d   : > { %1934 = vst.msk [vmem:[%s3464_s16 + $0x88] sm:$0xff] %vm1916_vm10, %v1871_v35 }
 0x281   : > { %v1684_v10 = vpop.permute.xlu1 %1683 }
 0x282   : > { %v1753_v23 = vmul.f32 %v1684_v10, %v1561_v50 }
 0x284   : > { %1786 = vst.msk [vmem:[%s3162_s30 + $0xb0] sm:$0xff] %vm1763_vm4, %v1753_v23  ;;  %v1874_v6 = vpop.f32.mrf.mxu2 }
 0x285   : > { %1935 = vst.msk [vmem:[%s3464_s16 + $0x90] sm:$0xff] %vm1916_vm10, %v1874_v6 }
 0x289   : > { %v1729_v36 = vpop.permute.xlu1 %1728 }
 0x28a   : > { %v1762_v32 = vmul.f32 %v1729_v36, %v1570_v60 }
 0x28c   : > { %1795 = vst.msk [vmem:[%s3162_s30 + $0xf8] sm:$0xff] %vm1763_vm4, %v1762_v32  ;;  %v1877_v31 = vpop.f32.mrf.mxu2 }
 0x28d   : > { %1936 = vst.msk [vmem:[%s3464_s16 + $0x98] sm:$0xff] %vm1916_vm10, %v1877_v31 }
 0x294   : > { %v1880_v12 = vpop.f32.mrf.mxu2 }
 0x295   : > { %1937 = vst.msk [vmem:[%s3464_s16 + $0xa0] sm:$0xff] %vm1916_vm10, %v1880_v12 }
 0x29c   : > { %v1883_v3 = vpop.f32.mrf.mxu2 }
 0x29d   : > { %1938 = vst.msk [vmem:[%s3464_s16 + $0xa8] sm:$0xff] %vm1916_vm10, %v1883_v3 }
 0x2a4   : > { %v1886_v33 = vpop.f32.mrf.mxu2 }
 0x2a5   : > { %1939 = vst.msk [vmem:[%s3464_s16 + $0xb0] sm:$0xff] %vm1916_vm10, %v1886_v33 }
 0x2ac   : > { %v1889_v63 = vpop.f32.mrf.mxu2 }
 0x2ad   : > { %1940 = vst.msk [vmem:[%s3464_s16 + $0xb8] sm:$0xff] %vm1916_vm10, %v1889_v63 }
 0x2c0   : > { %v1689_v43 = vpop.permute.xlu0 %1688 }
 0x2c1   : > { %v1754_v19 = vmul.f32 %v1689_v43, %v1562_v13 }
 0x2c3   : > { %1787 = vst.msk [vmem:[%s3162_s30 + $0xb8] sm:$0xff] %vm1763_vm4, %v1754_v19 }
 0x2c8   : > { %v1719_v18 = vpop.permute.xlu0 %1718 }
 0x2c9   : > { %v1760_v1 = vmul.f32 %v1719_v18, %v1568_v47 }
 0x2cb   : > { %1793 = vst.msk [vmem:[%s3162_s30 + $0xe8] sm:$0xff] %vm1763_vm4, %v1760_v1 }
 0x2cc PF: > { %s22_s11 = sadd.s32 1, %s2378_s11  }
 0x2cd   : > { %p19_p4 = scmp.ge.s32.totalorder %s22_s11, 4  }
 0x2cf   :  { %21 = sbr.rel (!%p19_p4) target bundleno = 3 (0x3), region = 94 }

// kernel: forward.5
= control target key start
LH: loop header
LB: loop body
LE: loop exit
PB: predicated region body
PF: predicated region fallthrough
CT: control target
= control target key end

     0   :  { %s1378_s23 = smov 0   ;;  %s1721_s0 = inlined_call_operand.vmem [shape: f32[128,144], index: 0, kind: input, shape index: {}]   ;;  %s1722_s1 = inlined_call_operand.vmem [shape: f32[144,16], index: 1, kind: input, shape index: {}]   ;;  %s1723_s2 = inlined_call_operand.vmem [shape: f32[1,16], index: 2, kind: input, shape index: {}]   ;;  %s1724_s3 = inlined_call_operand.vmem [shape: f32[16,24], index: 3, kind: input, shape index: {}]   ;;  %s1725_s4 = inlined_call_operand.vmem [shape: f32[1,24], index: 4, kind: input, shape index: {}]   ;;  %s1726_s5 = inlined_call_operand.vmem [shape: f32[128,12], index: 5, kind: input, shape index: {}]   ;;  %s1727_s6 = inlined_call_operand.vmem [shape: f32[12,64], index: 6, kind: input, shape index: {}]   ;;  %s1728_s7 = inlined_call_operand.vmem [shape: f32[1,64], index: 7, kind: input, shape index: {}]   ;;  %s1729_s8 = inlined_call_operand.vmem [shape: f32[1,64], index: 8, kind: input, shape index: {}]   ;;  %s1730_s9 = inlined_call_operand.<no memory space> [shape: f32[1,1], index: 9, kind: input, shape index: {}]   ;;  %s1731_s10 = inlined_call_operand.vmem [shape: f32[12,3], index: 10, kind: input, shape index: {}]   ;;  %s1732_s11 = inlined_call_operand.vmem [shape: f32[128,24], index: 11, kind: output, shape index: {0}]   ;;  %s1733_s12 = inlined_call_operand.vmem [shape: f32[128,3], index: 12, kind: output, shape index: {1}]  }
   0x1   :  { %v18_v0 = vstv %s1730_s9 }
   0x2   :  { %19 = vst [vmem:[#allocation2] sm:$0x1] %v18_v0 }
   0x3 LB: > { %s1189_s24 = sadd.s32 4294967295, %s1307_s23   ;;  %p1193_p0 = scmp.ge.s32.totalorder %s1307_s23, 1  ;;  %s1307_s23 = sphi %s1378_s23, %s25_s23  }
   0x4   : > { %p380_p1 = scmp.lt.s32.totalorder %s1307_s23, 3 }
   0x6   : > { %p381_p2 = pnand %p1193_p0, %p380_p1 }
   0x7   : > { %s1194_s28 = sshll.u32 (!%p381_p2), %s1189_s24, 3 }
   0x8   : > { %384 = sbr.rel (%p381_p2) target bundleno = 448 (0x1c0), region = 64  ;;  %p434_p3 = scmp.lt.s32.totalorder (!%p381_p2), %s1194_s28, 15 }
   0xd   : > { %v467_v1 = vld [vmem:[%s1727_s6 + $0x8] sm:$0xf]  ;;  %vm497_vm0 = vcmask 1043456   ;;  %v466_v2 = vld [vmem:[%s1727_s6] sm:$0xff]  ;;  %v782_v3 = vld [vmem:[%s1722_s1 + $0x78] sm:$0xff]  ;;  %s1741_s28 = smov (!%p434_p3, %s1194_s28), 15 }
   0xe   : > { %1203 = vmatpush.msk.msra.mxu0 %vm497_vm0, %v467_v1  ;;  %1248 = vmatpush.msk.msra.mxu2 %vm497_vm0, %v467_v1  ;;  %v781_v4 = vld [vmem:[%s1722_s1 + $0x70] sm:$0xff]  ;;  %v780_v5 = vld [vmem:[%s1722_s1 + $0x68] sm:$0xff]  ;;  %s1407_s17 = sshll.u32 %s1741_s28, 3  ;;  %vm472_vm1 = vcmask 97280   ;;  %v779_v7 = vld [vmem:[%s1722_s1 + $0x60] sm:$0xff]  ;;  %s1247_s29 = sshll.u32 %s1741_s28, 4 }
   0xf   : > { %1249 = vmatpush.msk.msra.mxu3 %vm497_vm0, %v467_v1  ;;  %814 = vmatpush.msra.mxu1 %v782_v3  ;;  %v784_v6 = vld [vmem:[%s1722_s1 + $0x88] sm:$0xff]  ;;  %s1416_s22 = scalar_lea.vmem %s1726_s5, %s1407_s17  ;;  %v783_v10 = vld [vmem:[%s1722_s1 + $0x80] sm:$0xff]  ;;  %v778_v12 = vld [vmem:[%s1722_s1 + $0x58] sm:$0xff]  ;;  %s1495_s15 = scalar_lea.vmem %s1721_s0, %s1247_s29  ;;  %vm789_vm2 = vcmask 130048   ;;  %vm562_vm3 = vcmask 523264  }
  0x10   : > { %516 = vmatpush.msra.mxu0 %v466_v2  ;;  %1250 = vmatpush.msra.mxu2 %v466_v2  ;;  %v1422_v8 = vld [vmem:[%s1416_s22] sm:$0xff]  ;;  %v1425_v9 = vld [vmem:[%s1416_s22 + $0x18] sm:$0xff]  ;;  %v1435_v11 = vld [vmem:[%s1416_s22 + $0x30] sm:$0xff]  ;;  %s1675_s21 = scalar_lea.vmem %s1733_s12, %s1407_s17  ;;  %s1692_s27 = scalar_lea.vmem %s1732_s11, %s1407_s17 }
  0x11   : > { %1251 = vmatpush.msra.mxu3 %v466_v2  ;;  %815 = vmatpush.msra.mxu1 %v781_v4  ;;  %v777_v13 = vld [vmem:[%s1722_s1 + $0x50] sm:$0xff]  ;;  %v776_v14 = vld [vmem:[%s1722_s1 + $0x48] sm:$0xff]  ;;  %v1452_v16 = vld [vmem:[%s1416_s22 + $0x20] sm:$0xff] }
  0x12   : > { %869 = vmatpush.msrb.mxu2 %v784_v6  ;;  %1204 = vmatmul.msk.f32.vlgmr.msra.gmra.mxu0 %vm472_vm1, %v1422_v8  ;;  %v1449_v15 = vld [vmem:[%s1416_s22 + $0x8] sm:$0xff]  ;;  %v1455_v17 = vld [vmem:[%s1416_s22 + $0x38] sm:$0xff]  ;;  %v775_v18 = vld [vmem:[%s1722_s1 + $0x40] sm:$0xff] }
  0x13   : > { %816 = vmatpush.msra.mxu1 %v780_v5  ;;  %1207 = vmatmul.msk.f32.vlgmr.msra.gmra.mxu2 %vm472_vm1, %v1425_v9  ;;  %v774_v19 = vld [vmem:[%s1722_s1 + $0x38] sm:$0xff]  ;;  %v773_v20 = vld [vmem:[%s1722_s1 + $0x30] sm:$0xff]  ;;  %v772_v21 = vld [vmem:[%s1722_s1 + $0x28] sm:$0xff] }
  0x14   : > { %1210 = vmatmul.msk.f32.vlgmr.msra.gmra.mxu3 %vm472_vm1, %v1435_v11  ;;  %870 = vmatpush.msrb.mxu2 %v783_v10  ;;  %v1476_v22 = vld [vmem:[%s1416_s22 + $0x10] sm:$0xff]  ;;  %v1479_v23 = vld [vmem:[%s1416_s22 + $0x28] sm:$0xff]  ;;  %v771_v24 = vld [vmem:[%s1722_s1 + $0x20] sm:$0xff] }
  0x15   : > { %817 = vmatpush.msra.mxu1 %v779_v7  ;;  %v770_v25 = vld [vmem:[%s1722_s1 + $0x18] sm:$0xff]  ;;  %v769_v26 = vld [vmem:[%s1722_s1 + $0x10] sm:$0xff]  ;;  %v768_v27 = vld [vmem:[%s1722_s1 + $0x8] sm:$0xff] }
  0x16   : > { %v752_v28 = vld [vmem:[%s1495_s15 + $0x8] sm:$0xff]  ;;  %v767_v29 = vld [vmem:[%s1722_s1] sm:$0xff]  ;;  %v754_v31 = vld [vmem:[%s1495_s15 + $0x18] sm:$0xff] }
  0x17   : > { %818 = vmatpush.msra.mxu1 %v778_v12  ;;  %v751_v30 = vld [vmem:[%s1495_s15] sm:$0xff]  ;;  %v753_v32 = vld [vmem:[%s1495_s15 + $0x10] sm:$0xff]  ;;  %v756_v33 = vld [vmem:[%s1495_s15 + $0x28] sm:$0xff] }
  0x18   : > { %v755_v34 = vld [vmem:[%s1495_s15 + $0x20] sm:$0xff]  ;;  %v758_v35 = vld [vmem:[%s1495_s15 + $0x38] sm:$0xff]  ;;  %v757_v36 = vld [vmem:[%s1495_s15 + $0x30] sm:$0xff] }
  0x19   : > { %819 = vmatpush.msra.mxu1 %v777_v13  ;;  %v760_v37 = vld [vmem:[%s1495_s15 + $0x48] sm:$0xff]  ;;  %v759_v38 = vld [vmem:[%s1495_s15 + $0x40] sm:$0xff]  ;;  %v762_v39 = vld [vmem:[%s1495_s15 + $0x58] sm:$0xff] }
  0x1a   : > { %1205 = vmatmul.msk.f32.gmra.mxu0 %vm472_vm1, %v1449_v15  ;;  %v761_v40 = vld [vmem:[%s1495_s15 + $0x50] sm:$0xff]  ;;  %v764_v41 = vld [vmem:[%s1495_s15 + $0x68] sm:$0xff]  ;;  %v763_v42 = vld [vmem:[%s1495_s15 + $0x60] sm:$0xff] }
  0x1b   : > { %820 = vmatpush.msra.mxu1 %v776_v14  ;;  %1208 = vmatmul.msk.f32.gmra.mxu2 %vm472_vm1, %v1452_v16  ;;  %v1264_v43 = vld [vmem:[%s1728_s7] ss:$0 sm:$0xff]  ;;  %v766_v44 = vld [vmem:[%s1495_s15 + $0x78] sm:$0xff]  ;;  %v765_v46 = vld [vmem:[%s1495_s15 + $0x70] sm:$0xff] }
  0x1c   : > { %1211 = vmatmul.msk.f32.gmra.mxu3 %vm472_vm1, %v1455_v17  ;;  %v1265_v48 = vld [vmem:[%s1729_s8] ss:$0 sm:$0xff]  ;;  %v905_v49 = vld [vmem:[%s1724_s3 + $0x8] sm:$0xff] }
  0x1d   : > { %821 = vmatpush.msra.mxu1 %v775_v18  ;;  %v904_v50 = vld [vmem:[%s1724_s3] sm:$0xff]  ;;  %948 = vmatpush.msrb.mxu3 %v905_v49  ;;  %v1033_v63 = vld [vmem:[%s1731_s10 + $0x8] sm:$0xf] }
  0x1e   : > { %1236 = vmatpush.msk.msrb.mxu0 %vm497_vm0, %v1033_v63 }
  0x1f   : > { %822 = vmatpush.msra.mxu1 %v774_v19  ;;  %949 = vmatpush.msrb.mxu3 %v904_v50 }
  0x21   : > { %823 = vmatpush.msra.mxu1 %v773_v20 }
  0x22   : > { %1206 = vmatmul.msk.f32.gmra.mxu0 %vm472_vm1, %v1476_v22 }
  0x23   : > { %824 = vmatpush.msra.mxu1 %v772_v21  ;;  %1209 = vmatmul.msk.f32.gmra.mxu2 %vm472_vm1, %v1479_v23 }
  0x25   : > { %825 = vmatpush.msra.mxu1 %v771_v24 }
  0x27   : > { %826 = vmatpush.msra.mxu1 %v770_v25 }
  0x29   : > { %827 = vmatpush.msra.mxu1 %v769_v26 }
  0x2b   : > { %828 = vmatpush.msra.mxu1 %v768_v27  ;;  %1220 = vmatmul.msk.f32.vlgmr.msrb.gmra.mxu2 %vm789_vm2, %v752_v28 }
  0x2d   : > { %829 = vmatpush.msra.mxu1 %v767_v29  ;;  %v1555_v29 = vld [vmem:[%s1723_s2] ss:$0 sm:$0xff] }
  0x2e   : > { %830 = vmatmul.f32.vlgmr.msra.gmra.mxu1 %v751_v30 }
  0x33   : > { %1221 = vmatmul.msk.f32.gmra.mxu2 %vm789_vm2, %v754_v31 }
  0x36   : > { %833 = vmatmul.f32.gmra.mxu1 %v753_v32  ;;  %v1032_v32 = vld [vmem:[%s1731_s10] sm:$0xff] }
  0x37   : > { %1052 = vmatpush.msrb.mxu0 %v1032_v32 }
  0x38   : > { %1237 = vmatmul.msk.f32.vlgmr.msrb.gmra.mxu0 %vm472_vm1, %v1422_v8 }
  0x3b   : > { %1222 = vmatmul.msk.f32.gmra.mxu2 %vm789_vm2, %v756_v33 }
  0x3e   : > { %836 = vmatmul.f32.gmra.mxu1 %v755_v34 }
  0x40   : > { %1238 = vmatmul.msk.f32.gmra.mxu0 %vm472_vm1, %v1449_v15 }
  0x43   : > { %1223 = vmatmul.msk.f32.gmra.mxu2 %vm789_vm2, %v758_v35 }
  0x46   : > { %839 = vmatmul.f32.gmra.mxu1 %v757_v36 }
  0x48   : > { %1239 = vmatmul.msk.f32.gmra.mxu0 %vm472_vm1, %v1476_v22 }
  0x4b   : > { %1224 = vmatmul.msk.f32.gmra.mxu2 %vm789_vm2, %v760_v37 }
  0x4e   : > { %842 = vmatmul.f32.gmra.mxu1 %v759_v38 }
  0x50   : > { %1240 = vmatmul.msk.f32.gmra.mxu0 %vm472_vm1, %v1425_v9 }
  0x53   : > { %1225 = vmatmul.msk.f32.gmra.mxu2 %vm789_vm2, %v762_v39 }
  0x56   : > { %845 = vmatmul.f32.gmra.mxu1 %v761_v40 }
  0x58   : > { %1241 = vmatmul.msk.f32.gmra.mxu0 %vm472_vm1, %v1452_v16 }
  0x5b   : > { %1226 = vmatmul.msk.f32.gmra.mxu2 %vm789_vm2, %v764_v41 }
  0x5e   : > { %848 = vmatmul.f32.gmra.mxu1 %v763_v42 }
  0x60   : > { %1242 = vmatmul.msk.f32.gmra.mxu0 %vm472_vm1, %v1479_v23  ;;  %v1267_v23 = vld [vmem:[#allocation2] ss:$0 sm:$0xff] }
  0x63   : > { %1227 = vmatmul.msk.f32.gmra.mxu2 %vm789_vm2, %v766_v44 }
  0x66   : > { %851 = vmatmul.f32.gmra.mxu1 %v765_v46 }
  0x68   : > { %1243 = vmatmul.msk.f32.gmra.mxu0 %vm472_vm1, %v1435_v11 }
  0x70   : > { %1244 = vmatmul.msk.f32.gmra.mxu0 %vm472_vm1, %v1455_v17 }
  0x8f   : > { %v518_v45 = vpop.f32.mrf.mxu0 }
  0x90   : > { %v519_v47 = vadd.f32 %v1264_v43, %v518_v45 }
  0x92   : > { %v542_v51 = vmax.f32 %v519_v47, 0.0 }
  0x94   : > { %v554_v52 = vmul.f32 %v1265_v48, %v542_v51 }
  0x96   : > { %v527_v53 = vpop.f32.mrf.mxu2  ;;  %v563_v55 = vsel %vm562_vm3, %v554_v52, 0.0 }
  0x97   : > { %v528_v54 = vadd.f32 %v1264_v43, %v527_v53  ;;  %v536_v56 = vpop.f32.mrf.mxu3  ;;  %v521_v57 = vpop.f32.mrf.mxu0  ;;  %564 = vadd.xlane.f32.xlu0 %v563_v55 }
  0x98   : > { %v522_v59 = vadd.f32 %v1264_v43, %v521_v57  ;;  %v537_v60 = vadd.f32 %v1264_v43, %v536_v56 }
  0x99   : > { %v545_v58 = vmax.f32 %v528_v54, 0.0 }
  0x9a   : > { %v543_v61 = vmax.f32 %v522_v59, 0.0  ;;  %v548_v1 = vmax.f32 %v537_v60, 0.0 }
  0x9b   : > { %v557_v62 = vmul.f32 %v1265_v48, %v545_v58 }
  0x9c   : > { %v555_v2 = vmul.f32 %v1265_v48, %v543_v61  ;;  %v560_v14 = vmul.f32 %v1265_v48, %v548_v1 }
  0x9d   : > { %v572_v0 = vsel %vm562_vm3, %v557_v62, 0.0 }
  0x9e   : > { %v530_v3 = vpop.f32.mrf.mxu2  ;;  %573 = vadd.xlane.f32.xlu1 %v572_v0  ;;  %v566_v5 = vsel %vm562_vm3, %v555_v2, 0.0  ;;  %v581_v25 = vsel %vm562_vm3, %v560_v14, 0.0 }
  0x9f   : > { %v531_v4 = vadd.f32 %v1264_v43, %v530_v3  ;;  %v539_v6 = vpop.f32.mrf.mxu3  ;;  %v524_v7 = vpop.f32.mrf.mxu0  ;;  %567 = vadd.xlane.f32.xlu0 %v566_v5  ;;  %v1309_v3 = vmov 0  }
  0xa0   : > { %v525_v12 = vadd.f32 %v1264_v43, %v524_v7  ;;  %v540_v13 = vadd.f32 %v1264_v43, %v539_v6  ;;  %1261 = vset.pattern.permute.xlu2 %v1309_v3  ;;  %1262 = vset.pattern.permute.xlu0 %v1309_v3 }
  0xa1   : > { %v546_v10 = vmax.f32 %v531_v4, 0.0  ;;  %1263 = vset.pattern.permute.xlu1 %v1309_v3 }
  0xa2   : > { %v544_v18 = vmax.f32 %v525_v12, 0.0  ;;  %v549_v21 = vmax.f32 %v540_v13, 0.0 }
  0xa3   : > { %v558_v19 = vmul.f32 %v1265_v48, %v546_v10 }
  0xa4   : > { %v556_v24 = vmul.f32 %v1265_v48, %v544_v18  ;;  %v561_v31 = vmul.f32 %v1265_v48, %v549_v21 }
  0xa5   : > { %v575_v20 = vsel %vm562_vm3, %v558_v19, 0.0 }
  0xa6   : > { %v533_v26 = vpop.f32.mrf.mxu2  ;;  %576 = vadd.xlane.f32.xlu2 %v575_v20  ;;  %v569_v28 = vsel %vm562_vm3, %v556_v24, 0.0  ;;  %v584_v37 = vsel %vm562_vm3, %v561_v31, 0.0 }
  0xa7   : > { %v534_v27 = vadd.f32 %v1264_v43, %v533_v26  ;;  %570 = vadd.xlane.f32.xlu1 %v569_v28  ;;  %582 = vadd.xlane.f32.xlu0 %v581_v25 }
  0xa9   : > { %v547_v30 = vmax.f32 %v534_v27, 0.0 }
  0xab   : > { %v831_v33 = vpop.f32.mrf.mxu1  ;;  %v559_v34 = vmul.f32 %v1265_v48, %v547_v30 }
  0xac   : > { %v832_v35 = vadd.f32 %v1555_v29, %v831_v33 }
  0xad   : > { %v578_v36 = vsel %vm562_vm3, %v559_v34, 0.0 }
  0xae   : > { %579 = vadd.xlane.f32.xlu2 %v578_v36  ;;  %v872_v38 = vpop.f32.mrf.mxu2 }
  0xaf   : > { %v873_v39 = vadd.f32 %v872_v38, %v832_v35  ;;  %585 = vadd.xlane.f32.xlu1 %v584_v37 }
  0xb1   : > { %v896_v40 = vmax.f32 %v873_v39, 0.0 }
  0xb3   : > { %v834_v41 = vpop.f32.mrf.mxu1  ;;  %1228 = vmatmul.msk.f32.vlgmr.msrb.gmra.mxu3 %vm789_vm2, %v896_v40 }
  0xb4   : > { %v835_v42 = vadd.f32 %v1555_v29, %v834_v41 }
  0xb6   : > { %v875_v43 = vpop.f32.mrf.mxu2 }
  0xb7   : > { %v876_v44 = vadd.f32 %v875_v43, %v835_v42 }
  0xb9   : > { %v897_v8 = vmax.f32 %v876_v44, 0.0 }
  0xbb   : > { %v837_v45 = vpop.f32.mrf.mxu1  ;;  %1229 = vmatmul.msk.f32.gmra.mxu3 %vm789_vm2, %v897_v8 }
  0xbc   : > { %v838_v46 = vadd.f32 %v1555_v29, %v837_v45 }
  0xbe   : > { %v878_v47 = vpop.f32.mrf.mxu2 }
  0xbf   : > { %v879_v48 = vadd.f32 %v878_v47, %v838_v46 }
  0xc1   : > { %v898_v49 = vmax.f32 %v879_v48, 0.0 }
  0xc3   : > { %v840_v50 = vpop.f32.mrf.mxu1  ;;  %1230 = vmatmul.msk.f32.gmra.mxu3 %vm789_vm2, %v898_v49 }
  0xc4   : > { %v841_v51 = vadd.f32 %v1555_v29, %v840_v50 }
  0xc6   : > { %v881_v15 = vpop.f32.mrf.mxu2 }
  0xc7   : > { %v882_v52 = vadd.f32 %v881_v15, %v841_v51 }
  0xc9   : > { %v899_v53 = vmax.f32 %v882_v52, 0.0 }
  0xcb   : > { %v843_v54 = vpop.f32.mrf.mxu1  ;;  %1231 = vmatmul.msk.f32.gmra.mxu3 %vm789_vm2, %v899_v53 }
  0xcc   : > { %v844_v55 = vadd.f32 %v1555_v29, %v843_v54 }
  0xce   : > { %v884_v22 = vpop.f32.mrf.mxu2 }
  0xcf   : > { %v885_v56 = vadd.f32 %v884_v22, %v844_v55 }
  0xd1   : > { %v900_v57 = vmax.f32 %v885_v56, 0.0 }
  0xd3   : > { %v846_v58 = vpop.f32.mrf.mxu1  ;;  %1232 = vmatmul.msk.f32.gmra.mxu3 %vm789_vm2, %v900_v57 }
  0xd4   : > { %v847_v59 = vadd.f32 %v1555_v29, %v846_v58 }
  0xd6   : > { %v887_v9 = vpop.f32.mrf.mxu2 }
  0xd7   : > { %v888_v60 = vadd.f32 %v887_v9, %v847_v59 }
  0xd9   : > { %v901_v61 = vmax.f32 %v888_v60, 0.0 }
  0xdb   : > { %1233 = vmatmul.msk.f32.gmra.mxu3 %vm789_vm2, %v901_v61  ;;  %v849_v16 = vpop.f32.mrf.mxu1 }
  0xdc   : > { %v850_v62 = vadd.f32 %v1555_v29, %v849_v16 }
  0xde   : > { %v890_v63 = vpop.f32.mrf.mxu2 }
  0xdf   : > { %v891_v0 = vadd.f32 %v890_v63, %v850_v62 }
  0xe1   : > { %v902_v1 = vmax.f32 %v891_v0, 0.0 }
  0xe3   : > { %1234 = vmatmul.msk.f32.gmra.mxu3 %vm789_vm2, %v902_v1  ;;  %v852_v6 = vpop.f32.mrf.mxu1 }
  0xe4   : > { %v853_v7 = vadd.f32 %v1555_v29, %v852_v6 }
  0xe6   : > { %v893_v10 = vpop.f32.mrf.mxu2 }
  0xe7   : > { %v894_v18 = vadd.f32 %v893_v10, %v853_v7 }
  0xe9   : > { %v903_v21 = vmax.f32 %v894_v18, 0.0 }
  0xeb   : > { %1235 = vmatmul.msk.f32.gmra.mxu3 %vm789_vm2, %v903_v21 }
 0x10a   : > { %v565_v2 = vpop.xlane.xlu0 %564 }
 0x10b   : > { %v591_v4 = vadd.f32 %v1267_v23, %v565_v2 }
 0x10d   : > { %v1212_v5 = vmul.f32 -1.442695, %v591_v4 }
 0x10f   : > { %1269 = vpow2.f32 %v1212_v5 }
 0x111   : > { %v574_v11 = vpop.xlane.xlu1 %573 }
 0x112   : > { %v594_v17 = vadd.f32 %v1267_v23, %v574_v11  ;;  %v568_v12 = vpop.xlane.xlu0 %567 }
 0x113   : > { %v592_v14 = vadd.f32 %v1267_v23, %v568_v12 }
 0x114   : > { %v1215_v13 = vmul.f32 -1.442695, %v594_v17 }
 0x115   : > { %v1270_v19 = vpop.eup %1269  ;;  %v1213_v20 = vmul.f32 -1.442695, %v592_v14 }
 0x116   : > { %1271 = vpow2.f32 %v1215_v13  ;;  %v623_v24 = vadd.f32 1.0, %v1270_v19 }
 0x117   : > { %1273 = vpow2.f32 %v1213_v20 }
 0x118   : > { %1275 = vrcp.f32 %v623_v24  ;;  %v640_v44 = vand.u32 2147483647, %v623_v24  ;;  %v642_v8 = vand.u32 2147483648, %v623_v24  ;;  %vm636_vm5 = vweird.f32 %v623_v24 }
 0x119   : > { %v577_v25 = vpop.xlane.xlu2 %576 }
 0x11a   : > { %v595_v26 = vadd.f32 %v1267_v23, %v577_v25  ;;  %v571_v27 = vpop.xlane.xlu1 %570  ;;  %v583_v28 = vpop.xlane.xlu0 %582  ;;  %vm641_vm7 = vcmp.eq.f32.partialorder %v640_v44, 8.507059e+37  ;;  %v643_v22 = vor.u32 1.1754944e-38, %v642_v8 }
 0x11b   : > { %v593_v31 = vadd.f32 %v1267_v23, %v571_v27  ;;  %v597_v32 = vadd.f32 %v1267_v23, %v583_v28 }
 0x11c   : > { %v1272_v30 = vpop.eup %1271  ;;  %v1216_v29 = vmul.f32 -1.442695, %v595_v26 }
 0x11d   : > { %v1594_v33 = vadd.f32 1.0, %v1272_v30  ;;  %v1274_v34 = vpop.eup %1273  ;;  %v1214_v35 = vmul.f32 -1.442695, %v593_v31  ;;  %v1218_v36 = vmul.f32 -1.442695, %v597_v32 }
 0x11e   : > { %1277 = vpow2.f32 %v1216_v29  ;;  %v1276_v37 = vpop.eup %1275  ;;  %v1597_v38 = vadd.f32 1.0, %v1274_v34 }
 0x11f   : > { %1279 = vrcp.f32 %v1594_v33  ;;  %v632_v39 = vmul.f32 %v1276_v37, %v623_v24  ;;  %vm637_vm4 = vweird.f32 %v1276_v37  ;;  %v685_v61 = vand.u32 2147483647, %v1594_v33 }
 0x120   : > { %1281 = vpow2.f32 %v1214_v35  ;;  %vm638_vm6 = vmor %vm636_vm5, %vm637_vm4  ;;  %vm681_vm9 = vweird.f32 %v1594_v33  ;;  %v687_v63 = vand.u32 2147483648, %v1594_v33  ;;  %v657_v0 = vand.u32 2147483648, %v1597_v38 }
 0x121   : > { %1283 = vrcp.f32 %v1597_v38  ;;  %v580_v40 = vpop.xlane.xlu2 %579  ;;  %v633_v42 = vsub.f32 1.0, %v632_v39  ;;  %v655_v3 = vand.u32 2147483647, %v1597_v38  ;;  %vm1622_vm12 = vcmp.eq.f32.partialorder %v685_v61, 8.507059e+37 }
 0x122   : > { %1285 = vpow2.f32 %v1218_v36  ;;  %v596_v41 = vadd.f32 %v1267_v23, %v580_v40  ;;  %v586_v43 = vpop.xlane.xlu1 %585  ;;  %vm651_vm13 = vweird.f32 %v1597_v38  ;;  %v688_v18 = vor.u32 1.1754944e-38, %v687_v63 }
 0x123   : > { %v598_v47 = vadd.f32 %v1267_v23, %v586_v43  ;;  %v634_v48 = vmul.f32 %v1276_v37, %v633_v42  ;;  %v658_v19 = vor.u32 1.1754944e-38, %v657_v0  ;;  %vm656_vm15 = vcmp.eq.f32.partialorder %v655_v3, 8.507059e+37 }
 0x124   : > { %v1278_v45 = vpop.eup %1277  ;;  %v1217_v46 = vmul.f32 -1.442695, %v596_v41 }
 0x125   : > { %v1280_v49 = vpop.eup %1279  ;;  %v1600_v50 = vadd.f32 1.0, %v1278_v45  ;;  %v1219_v15 = vmul.f32 -1.442695, %v598_v47  ;;  %v635_v52 = vadd.f32 %v1276_v37, %v634_v48 }
 0x126   : > { %v1282_v51 = vpop.eup %1281  ;;  %1287 = vpow2.f32 %v1217_v46  ;;  %v677_v53 = vmul.f32 %v1280_v49, %v1594_v33  ;;  %vm682_vm8 = vweird.f32 %v1280_v49 }
 0x127   : > { %v1284_v54 = vpop.eup %1283  ;;  %1289 = vrcp.f32 %v1600_v50  ;;  %v1604_v55 = vadd.f32 1.0, %v1282_v51  ;;  %v639_v57 = vsel %vm638_vm6, %v1276_v37, %v635_v52  ;;  %vm1618_vm11 = vmor %vm681_vm9, %vm682_vm8  ;;  %vm696_vm0 = vweird.f32 %v1600_v50 }
 0x128   : > { %v1286_v56 = vpop.eup %1285  ;;  %1291 = vpow2.f32 %v1219_v15  ;;  %v678_v58 = vsub.f32 1.0, %v677_v53  ;;  %v647_v59 = vmul.f32 %v1284_v54, %v1597_v38  ;;  %v644_v60 = vsel %vm641_vm7, %v643_v22, %v639_v57 }
 0x129   : > { %1293 = vrcp.f32 %v1604_v55  ;;  %v1608_v9 = vadd.f32 1.0, %v1286_v56  ;;  %977 = vperm.xlu2 %1261, %v644_v60   ;;  %vm652_vm10 = vweird.f32 %v1284_v54  ;;  %v670_v31 = vand.u32 2147483647, %v1604_v55 }
 0x12a   : > { %v679_v16 = vmul.f32 %v1280_v49, %v678_v58  ;;  %v648_v62 = vsub.f32 1.0, %v647_v59  ;;  %vm653_vm14 = vmor %vm651_vm13, %vm652_vm10  ;;  %v672_v32 = vand.u32 2147483648, %v1604_v55  ;;  %v700_v33 = vand.u32 2147483647, %v1600_v50 }
 0x12b   : > { %1295 = vrcp.f32 %v1608_v9  ;;  %v702_v34 = vand.u32 2147483648, %v1600_v50  ;;  %vm666_vm4 = vweird.f32 %v1604_v55  ;;  %vm671_vm6 = vcmp.eq.f32.partialorder %v670_v31, 8.507059e+37 }
 0x12c   : > { %v1288_v1 = vpop.eup %1287  ;;  %v680_v23 = vadd.f32 %v1280_v49, %v679_v16  ;;  %v649_v2 = vmul.f32 %v1284_v54, %v648_v62  ;;  %v673_v44 = vor.u32 1.1754944e-38, %v672_v32  ;;  %vm701_vm7 = vcmp.eq.f32.partialorder %v700_v33, 8.507059e+37 }
 0x12d   : > { %v1290_v4 = vpop.eup %1289  ;;  %v1616_v5 = vadd.f32 1.0, %v1288_v1  ;;  %v703_v8 = vor.u32 1.1754944e-38, %v702_v34  ;;  %vm726_vm8 = vweird.f32 %v1608_v9  ;;  %v730_v56 = vand.u32 2147483647, %v1608_v9 }
 0x12e   : > { %v1292_v17 = vpop.eup %1291  ;;  %v684_v7 = vsel %vm1618_vm11, %v1280_v49, %v680_v23  ;;  %v650_v10 = vadd.f32 %v1284_v54, %v649_v2  ;;  %v692_v12 = vmul.f32 %v1290_v4, %v1600_v50  ;;  %vm697_vm1 = vweird.f32 %v1290_v4 }
 0x12f   : > { %v1294_v13 = vpop.eup %1293  ;;  %1297 = vrcp.f32 %v1616_v5  ;;  %v1631_v14 = vadd.f32 1.0, %v1292_v17  ;;  %v689_v26 = vsel %vm1622_vm12, %v688_v18, %v684_v7  ;;  %vm1649_vm3 = vmor %vm696_vm0, %vm697_vm1  ;;  %v717_v53 = vand.u32 2147483648, %v1616_v5 }
 0x130   : > { %v654_v20 = vsel %vm653_vm14, %v1284_v54, %v650_v10  ;;  %v662_v21 = vmul.f32 %v1294_v13, %v1604_v55  ;;  %v693_v24 = vsub.f32 1.0, %v692_v12  ;;  %vm667_vm2 = vweird.f32 %v1294_v13  ;;  %v1268_v10 = vld [vmem:[%s1725_s4] ss:$0 sm:$0xff] }
 0x131   : > { %v1635_v25 = vpop.eup %1295  ;;  %1299 = vrcp.f32 %v1631_v14  ;;  %v659_v27 = vsel %vm656_vm15, %v658_v19, %v654_v20  ;;  %992 = vperm.xlu2 %1261, %v689_v26   ;;  %vm668_vm5 = vmor %vm666_vm4, %vm667_vm2  ;;  %v732_v54 = vand.u32 2147483648, %v1608_v9  ;;  %vm711_vm11 = vweird.f32 %v1616_v5 }
 0x132   : > { %982 = vperm.xlu0 %1262, %v659_v27   ;;  %v663_v28 = vsub.f32 1.0, %v662_v21  ;;  %v694_v30 = vmul.f32 %v1290_v4, %v693_v24  ;;  %v722_v29 = vmul.f32 %v1635_v25, %v1608_v9  ;;  %vm727_vm9 = vweird.f32 %v1635_v25 }
 0x133   : > { %v715_v22 = vand.u32 2147483647, %v1616_v5  ;;  %vm728_vm12 = vmor %vm726_vm8, %vm727_vm9  ;;  %v718_v60 = vor.u32 1.1754944e-38, %v717_v53  ;;  %v733_v61 = vor.u32 1.1754944e-38, %v732_v54  ;;  %vm731_vm15 = vcmp.eq.f32.partialorder %v730_v56, 8.507059e+37 }
 0x134   : > { %v664_v35 = vmul.f32 %v1294_v13, %v663_v28  ;;  %v695_v36 = vadd.f32 %v1290_v4, %v694_v30  ;;  %v723_v37 = vsub.f32 1.0, %v722_v29  ;;  %vm741_vm0 = vweird.f32 %v1631_v14 }
 0x135   : > { %v1298_v38 = vpop.eup %1297  ;;  %vm716_vm14 = vcmp.eq.f32.partialorder %v715_v22, 8.507059e+37  ;;  %v747_v9 = vand.u32 2147483648, %v1631_v14  ;;  %v745_v0 = vand.u32 2147483647, %v1631_v14  ;;  %vm1078_vm4 = vcmask 23552  }
 0x136   : > { %v665_v40 = vadd.f32 %v1294_v13, %v664_v35  ;;  %v699_v41 = vsel %vm1649_vm3, %v1290_v4, %v695_v36  ;;  %v707_v42 = vmul.f32 %v1298_v38, %v1616_v5  ;;  %v724_v45 = vmul.f32 %v1635_v25, %v723_v37  ;;  %v951_v3 = vpop.f32.mrf.mxu3  ;;  %v1054_v5 = vpop.f32.mrf.mxu0 }
 0x137   : > { %v1300_v43 = vpop.eup %1299  ;;  %v704_v50 = vsel %vm701_vm7, %v703_v8, %v699_v41  ;;  %vm712_vm10 = vweird.f32 %v1298_v38  ;;  %v748_v23 = vor.u32 1.1754944e-38, %v747_v9  ;;  %vm746_vm3 = vcmp.eq.f32.partialorder %v745_v0, 8.507059e+37  ;;  %1079 = vst.msk [vmem:[%s1675_s21] sm:$0xff] %vm1078_vm4, %v1054_v5 }
 0x138   : > { %v669_v46 = vsel %vm668_vm5, %v1294_v13, %v665_v40  ;;  %v708_v47 = vsub.f32 1.0, %v707_v42  ;;  %v737_v48 = vmul.f32 %v1300_v43, %v1631_v14  ;;  %v725_v15 = vadd.f32 %v1635_v25, %v724_v45  ;;  %vm713_vm13 = vmor %vm711_vm11, %vm712_vm10 }
 0x139   : > { %v674_v49 = vsel %vm671_vm6, %v673_v44, %v669_v46  ;;  %997 = vperm.xlu2 %1261, %v704_v50   ;;  %vm742_vm1 = vweird.f32 %v1300_v43  ;;  %v952_v13 = vadd.f32 %v1268_v10, %v951_v3  ;;  %vm1023_vm5 = vcmask 195584  }
 0x13a   : > { %987 = vperm.xlu1 %1263, %v674_v49   ;;  %v709_v51 = vmul.f32 %v1298_v38, %v708_v47  ;;  %v738_v52 = vsub.f32 1.0, %v737_v48  ;;  %v729_v58 = vsel %vm728_vm12, %v1635_v25, %v725_v15  ;;  %vm743_vm2 = vmor %vm741_vm0, %vm742_vm1 }
 0x13b   : > { %v734_v62 = vsel %vm731_vm15, %v733_v61, %v729_v58 }
 0x13c   : > { %v710_v55 = vadd.f32 %v1298_v38, %v709_v51  ;;  %v739_v59 = vmul.f32 %v1300_v43, %v738_v52 }
 0x13e   : > { %v714_v57 = vsel %vm713_vm13, %v1298_v38, %v710_v55  ;;  %v740_v63 = vadd.f32 %v1300_v43, %v739_v59  ;;  %v954_v4 = vpop.f32.mrf.mxu3  ;;  %v1057_v6 = vpop.f32.mrf.mxu0 }
 0x13f   : > { %v719_v16 = vsel %vm716_vm14, %v718_v60, %v714_v57  ;;  %1080 = vst.msk [vmem:[%s1675_s21 + $0x8] sm:$0xff] %vm1078_vm4, %v1057_v6  ;;  %v955_v37 = vadd.f32 %v1268_v10, %v954_v4 }
 0x140   : > { %v744_v1 = vsel %vm743_vm2, %v1300_v43, %v740_v63 }
 0x141   : > { %1007 = vperm.xlu2 %1261, %v734_v62   ;;  %v749_v2 = vsel %vm746_vm3, %v748_v23, %v744_v1 }
 0x142   : > { %1002 = vperm.xlu1 %1263, %v719_v16  }
 0x146   : > { %v957_v11 = vpop.f32.mrf.mxu3  ;;  %v1060_v17 = vpop.f32.mrf.mxu0 }
 0x147   : > { %1081 = vst.msk [vmem:[%s1675_s21 + $0x10] sm:$0xff] %vm1078_vm4, %v1060_v17  ;;  %v958_v40 = vadd.f32 %v1268_v10, %v957_v11 }
 0x14a   : > { %1012 = vperm.xlu1 %1263, %v749_v2  }
 0x14e   : > { %v960_v7 = vpop.f32.mrf.mxu3  ;;  %v1063_v12 = vpop.f32.mrf.mxu0 }
 0x14f   : > { %1082 = vst.msk [vmem:[%s1675_s21 + $0x18] sm:$0xff] %vm1078_vm4, %v1063_v12  ;;  %v961_v21 = vadd.f32 %v1268_v10, %v960_v7 }
 0x156   : > { %v963_v14 = vpop.f32.mrf.mxu3  ;;  %v1066_v20 = vpop.f32.mrf.mxu0 }
 0x157   : > { %1083 = vst.msk [vmem:[%s1675_s21 + $0x20] sm:$0xff] %vm1078_vm4, %v1066_v20  ;;  %v964_v28 = vadd.f32 %v1268_v10, %v963_v14 }
 0x15e   : > { %v966_v25 = vpop.f32.mrf.mxu3  ;;  %v1069_v27 = vpop.f32.mrf.mxu0 }
 0x15f   : > { %1084 = vst.msk [vmem:[%s1675_s21 + $0x28] sm:$0xff] %vm1078_vm4, %v1069_v27  ;;  %v967_v43 = vadd.f32 %v1268_v10, %v966_v25 }
 0x166   : > { %v969_v31 = vpop.f32.mrf.mxu3  ;;  %v1072_v32 = vpop.f32.mrf.mxu0 }
 0x167   : > { %1085 = vst.msk [vmem:[%s1675_s21 + $0x30] sm:$0xff] %vm1078_vm4, %v1072_v32  ;;  %v970_v33 = vadd.f32 %v1268_v10, %v969_v31 }
 0x16e   : > { %v1075_v36 = vpop.f32.mrf.mxu0  ;;  %v972_v45 = vpop.f32.mrf.mxu3 }
 0x16f   : > { %1086 = vst.msk [vmem:[%s1675_s21 + $0x38] sm:$0xff] %vm1078_vm4, %v1075_v36  ;;  %v973_v46 = vadd.f32 %v1268_v10, %v972_v45 }
 0x183   : > { %v978_v18 = vpop.permute.xlu2 %977 }
 0x184   : > { %v1015_v19 = vmul.f32 %v978_v18, %v952_v13 }
 0x186   : > { %1024 = vst.msk [vmem:[%s1692_s27] sm:$0xff] %vm1023_vm5, %v1015_v19 }
 0x18b   : > { %v993_v24 = vpop.permute.xlu2 %992 }
 0x18c   : > { %v1018_v26 = vmul.f32 %v993_v24, %v961_v21 }
 0x18e   : > { %1027 = vst.msk [vmem:[%s1692_s27 + $0x18] sm:$0xff] %vm1023_vm5, %v1018_v26 }
 0x193   : > { %v998_v30 = vpop.permute.xlu2 %997 }
 0x194   : > { %v1019_v29 = vmul.f32 %v998_v30, %v964_v28 }
 0x196   : > { %1028 = vst.msk [vmem:[%s1692_s27 + $0x20] sm:$0xff] %vm1023_vm5, %v1019_v29 }
 0x19b   : > { %v1008_v34 = vpop.permute.xlu2 %1007 }
 0x19c   : > { %v1021_v35 = vmul.f32 %v1008_v34, %v970_v33 }
 0x19e   : > { %1030 = vst.msk [vmem:[%s1692_s27 + $0x30] sm:$0xff] %vm1023_vm5, %v1021_v35 }
 0x1a4   : > { %v983_v38 = vpop.permute.xlu0 %982 }
 0x1a5   : > { %v1016_v39 = vmul.f32 %v983_v38, %v955_v37 }
 0x1a7   : > { %1025 = vst.msk [vmem:[%s1692_s27 + $0x8] sm:$0xff] %vm1023_vm5, %v1016_v39 }
 0x1ac   : > { %v988_v41 = vpop.permute.xlu1 %987 }
 0x1ad   : > { %v1017_v42 = vmul.f32 %v988_v41, %v958_v40 }
 0x1af   : > { %1026 = vst.msk [vmem:[%s1692_s27 + $0x10] sm:$0xff] %vm1023_vm5, %v1017_v42 }
 0x1b4   : > { %v1003_v44 = vpop.permute.xlu1 %1002 }
 0x1b5   : > { %v1020_v8 = vmul.f32 %v1003_v44, %v967_v43 }
 0x1b7   : > { %1029 = vst.msk [vmem:[%s1692_s27 + $0x28] sm:$0xff] %vm1023_vm5, %v1020_v8 }
 0x1bc   : > { %v1013_v47 = vpop.permute.xlu1 %1012 }
 0x1bd   : > { %v1022_v48 = vmul.f32 %v1013_v47, %v973_v46 }
 0x1bf   : > { %1031 = vst.msk [vmem:[%s1692_s27 + $0x38] sm:$0xff] %vm1023_vm5, %v1022_v48 }
 0x1c0 PF: > { %s25_s23 = sadd.s32 1, %s1307_s23  }
 0x1c1   : > { %p22_p4 = scmp.ge.s32.totalorder %s25_s23, 4  }
 0x1c3   :  { %24 = sbr.rel (!%p22_p4) target bundleno = 3 (0x3), region = 109 }

// kernel: forward.6
= control target key start
LH: loop header
LB: loop body
LE: loop exit
PB: predicated region body
PF: predicated region fallthrough
CT: control target
= control target key end

     0   :  { %s923_s23 = smov 0   ;;  %s1085_s0 = inlined_call_operand.vmem [shape: f32[32,216], index: 0, kind: input, shape index: {}]   ;;  %s1086_s1 = inlined_call_operand.vmem [shape: f32[216,24], index: 1, kind: input, shape index: {}]   ;;  %s1087_s2 = inlined_call_operand.vmem [shape: f32[1,24], index: 2, kind: input, shape index: {}]   ;;  %s1088_s3 = inlined_call_operand.vmem [shape: f32[24,40], index: 3, kind: input, shape index: {}]   ;;  %s1089_s4 = inlined_call_operand.vmem [shape: f32[1,40], index: 4, kind: input, shape index: {}]   ;;  %s1090_s5 = inlined_call_operand.vmem [shape: f32[32,12], index: 5, kind: input, shape index: {}]   ;;  %s1091_s6 = inlined_call_operand.vmem [shape: f32[12,64], index: 6, kind: input, shape index: {}]   ;;  %s1092_s7 = inlined_call_operand.vmem [shape: f32[1,64], index: 7, kind: input, shape index: {}]   ;;  %s1093_s8 = inlined_call_operand.vmem [shape: f32[1,64], index: 8, kind: input, shape index: {}]   ;;  %s1094_s9 = inlined_call_operand.<no memory space> [shape: f32[1,1], index: 9, kind: input, shape index: {}]   ;;  %s1095_s10 = inlined_call_operand.vmem [shape: f32[40,64], index: 10, kind: input, shape index: {}]   ;;  %s1096_s11 = inlined_call_operand.vmem [shape: f32[1,64], index: 11, kind: input, shape index: {}]   ;;  %s1097_s12 = inlined_call_operand.vmem [shape: f32[32,64], index: 12, kind: output, shape index: {}]  }
   0x1   :  { %v17_v0 = vstv %s1094_s9 }
   0x2   :  { %18 = vst [vmem:[#allocation2] sm:$0x1] %v17_v0 }
   0x3 LB: > { %s795_s24 = sadd.s32 4294967295, %s852_s23   ;;  %p799_p0 = scmp.ge.s32.totalorder %s852_s23, 1  ;;  %s852_s23 = sphi %s923_s23, %s24_s23  }
   0x4   : > { %p377_p1 = scmp.lt.s32.totalorder %s852_s23, 3 }
   0x6   : > { %p378_p2 = pnand %p799_p0, %p377_p1 }
   0x7   : > { %s800_s28 = sshll.u32 (!%p378_p2), %s795_s24, 1 }
   0x8   : > { %381 = sbr.rel (%p378_p2) target bundleno = 552 (0x228), region = 68  ;;  %p426_p3 = scmp.lt.s32.totalorder (!%p378_p2), %s800_s28, 3 }
   0xd   : > { %v447_v1 = vld [vmem:[%s1091_s6 + $0x8] sm:$0xf]  ;;  %vm459_vm0 = vcmask 1043456   ;;  %v446_v2 = vld [vmem:[%s1091_s6] sm:$0xff]  ;;  %v564_v3 = vld [vmem:[%s1086_s1 + $0x78] sm:$0xff]  ;;  %s1099_s28 = smov (!%p426_p3, %s800_s28), 3 }
   0xe   : > { %807 = vmatpush.msk.msra.mxu0 %vm459_vm0, %v447_v1  ;;  %v563_v4 = vld [vmem:[%s1086_s1 + $0x70] sm:$0xff]  ;;  %587 = vmatpush.msra.mxu1 %v564_v3  ;;  %v562_v6 = vld [vmem:[%s1086_s1 + $0x68] sm:$0xff]  ;;  %v573_v8 = vld [vmem:[%s1086_s1 + $0xc0] sm:$0xff]  ;;  %s804_s24 = sshll.u32 %s1099_s28, 3  ;;  %vm452_vm1 = vcmask 97280   ;;  %s820_s17 = sshll.u32 %s1099_s28, 4 }
   0xf   : > { %v575_v5 = vld [vmem:[%s1086_s1 + $0xd0] sm:$0xff]  ;;  %v574_v7 = vld [vmem:[%s1086_s1 + $0xc8] sm:$0xff]  ;;  %v561_v9 = vld [vmem:[%s1086_s1 + $0x60] sm:$0xff]  ;;  %s436_s29 = scalar_lea.vmem %s1090_s5, %s804_s24  ;;  %s430_s9 = scalar_lea.vmem %s1085_s0, %s820_s17  ;;  %vm580_vm2 = vcmask 719872   ;;  %vm494_vm3 = vcmask 523264   ;;  %vm642_vm4 = vcmask 195584  }
  0x10   : > { %478 = vmatpush.msra.mxu0 %v446_v2  ;;  %615 = vmatpush.msra.mxu2 %v575_v5  ;;  %v572_v10 = vld [vmem:[%s1086_s1 + $0xb8] sm:$0xff]  ;;  %v444_v11 = vld [vmem:[%s436_s29] sm:$0xff]  ;;  %v571_v13 = vld [vmem:[%s1086_s1 + $0xb0] sm:$0xff]  ;;  %v854_v62 = vmov 0   ;;  %vm693_vm13 = vcmask 326656   ;;  %s442_s20 = scalar_lea.vmem %s1097_s12, %s804_s24 }
  0x11   : > { %588 = vmatpush.msra.mxu1 %v563_v4  ;;  %v560_v12 = vld [vmem:[%s1086_s1 + $0x58] sm:$0xff]  ;;  %808 = vmatmul.msk.f32.vlgmr.msra.gmra.mxu0 %vm452_vm1, %v444_v11  ;;  %v559_v14 = vld [vmem:[%s1086_s1 + $0x50] sm:$0xff]  ;;  %v558_v15 = vld [vmem:[%s1086_s1 + $0x48] sm:$0xff] }
  0x12   : > { %616 = vmatpush.msra.mxu2 %v574_v7  ;;  %v570_v16 = vld [vmem:[%s1086_s1 + $0xa8] sm:$0xff]  ;;  %v569_v17 = vld [vmem:[%s1086_s1 + $0xa0] sm:$0xff]  ;;  %v568_v20 = vld [vmem:[%s1086_s1 + $0x98] sm:$0xff]  ;;  %830 = vset.pattern.permute.xlu1 %v854_v62 }
  0x13   : > { %589 = vmatpush.msra.mxu1 %v562_v6  ;;  %v445_v18 = vld [vmem:[%s436_s29 + $0x8] sm:$0xff]  ;;  %v557_v19 = vld [vmem:[%s1086_s1 + $0x40] sm:$0xff]  ;;  %v556_v21 = vld [vmem:[%s1086_s1 + $0x38] sm:$0xff]  ;;  %831 = vset.pattern.permute.xlu0 %v854_v62 }
  0x14   : > { %617 = vmatpush.msra.mxu2 %v573_v8  ;;  %v567_v22 = vld [vmem:[%s1086_s1 + $0x90] sm:$0xff]  ;;  %v566_v24 = vld [vmem:[%s1086_s1 + $0x88] sm:$0xff]  ;;  %v565_v26 = vld [vmem:[%s1086_s1 + $0x80] sm:$0xff] }
  0x15   : > { %590 = vmatpush.msra.mxu1 %v561_v9  ;;  %v555_v23 = vld [vmem:[%s1086_s1 + $0x30] sm:$0xff]  ;;  %v554_v25 = vld [vmem:[%s1086_s1 + $0x28] sm:$0xff]  ;;  %v553_v27 = vld [vmem:[%s1086_s1 + $0x20] sm:$0xff] }
  0x16   : > { %618 = vmatpush.msra.mxu2 %v572_v10  ;;  %v546_v28 = vld [vmem:[%s430_s9 + $0x8] sm:$0xff]  ;;  %v552_v29 = vld [vmem:[%s1086_s1 + $0x18] sm:$0xff]  ;;  %v551_v30 = vld [vmem:[%s1086_s1 + $0x10] sm:$0xff] }
  0x17   : > { %591 = vmatpush.msra.mxu1 %v560_v12  ;;  %v550_v31 = vld [vmem:[%s1086_s1 + $0x8] sm:$0xff]  ;;  %v549_v32 = vld [vmem:[%s1086_s1] sm:$0xff]  ;;  %v548_v34 = vld [vmem:[%s430_s9 + $0x18] sm:$0xff] }
  0x18   : > { %619 = vmatpush.msra.mxu2 %v571_v13  ;;  %v545_v33 = vld [vmem:[%s430_s9] sm:$0xff]  ;;  %v547_v35 = vld [vmem:[%s430_s9 + $0x10] sm:$0xff]  ;;  %v636_v54 = vld [vmem:[%s1088_s3 + $0x8] sm:$0xff] }
  0x19   : > { %592 = vmatpush.msra.mxu1 %v559_v14  ;;  %809 = vmatmul.msk.f32.gmra.mxu0 %vm452_vm1, %v445_v18  ;;  %v832_v36 = vld [vmem:[%s1092_s7] ss:$0 sm:$0xff]  ;;  %v637_v51 = vld [vmem:[%s1088_s3 + $0x10] sm:$0xff]  ;;  %v687_v4 = vld [vmem:[%s1095_s10 + $0x18] sm:$0xff] }
  0x1a   : > { %620 = vmatpush.msra.mxu2 %v570_v16  ;;  %v833_v39 = vld [vmem:[%s1093_s8] ss:$0 sm:$0xff]  ;;  %662 = vmatpush.msra.mxu3 %v637_v51  ;;  %v686_v7 = vld [vmem:[%s1095_s10 + $0x10] sm:$0xff]  ;;  %v685_v10 = vld [vmem:[%s1095_s10 + $0x8] sm:$0xff] }
  0x1b   : > { %593 = vmatpush.msra.mxu1 %v558_v15  ;;  %v835_v48 = vld [vmem:[%s1087_s2] ss:$0 sm:$0xff] }
  0x1c   : > { %621 = vmatpush.msra.mxu2 %v569_v17  ;;  %663 = vmatpush.msra.mxu3 %v636_v54  ;;  %v635_v56 = vld [vmem:[%s1088_s3] sm:$0xff] }
  0x1d   : > { %594 = vmatpush.msra.mxu1 %v557_v19  ;;  %v834_v63 = vld [vmem:[#allocation2] ss:$0 sm:$0xff] }
  0x1e   : > { %622 = vmatpush.msra.mxu2 %v568_v20  ;;  %664 = vmatpush.msra.mxu3 %v635_v56  ;;  %v688_v3 = vld [vmem:[%s1095_s10 + $0x20] sm:$0xff] }
  0x1f   : > { %595 = vmatpush.msra.mxu1 %v556_v21  ;;  %711 = vmatpush.msrb.mxu0 %v688_v3 }
  0x20   : > { %623 = vmatpush.msra.mxu2 %v567_v22 }
  0x21   : > { %596 = vmatpush.msra.mxu1 %v555_v23  ;;  %712 = vmatpush.msrb.mxu0 %v687_v4 }
  0x22   : > { %624 = vmatpush.msra.mxu2 %v566_v24 }
  0x23   : > { %597 = vmatpush.msra.mxu1 %v554_v25  ;;  %713 = vmatpush.msrb.mxu0 %v686_v7 }
  0x24   : > { %625 = vmatpush.msra.mxu2 %v565_v26 }
  0x25   : > { %598 = vmatpush.msra.mxu1 %v553_v27  ;;  %812 = vmatmul.msk.f32.vlgmr.msra.gmra.mxu2 %vm580_vm2, %v546_v28 }
  0x26   : > { %714 = vmatpush.msrb.mxu0 %v685_v10 }
  0x27   : > { %599 = vmatpush.msra.mxu1 %v552_v29 }
  0x29   : > { %600 = vmatpush.msra.mxu1 %v551_v30 }
  0x2b   : > { %601 = vmatpush.msra.mxu1 %v550_v31 }
  0x2d   : > { %602 = vmatpush.msra.mxu1 %v549_v32  ;;  %813 = vmatmul.msk.f32.gmra.mxu2 %vm580_vm2, %v548_v34  ;;  %v684_v34 = vld [vmem:[%s1095_s10] sm:$0xff] }
  0x2e   : > { %603 = vmatmul.f32.vlgmr.msra.gmra.mxu1 %v545_v33  ;;  %715 = vmatpush.msrb.mxu0 %v684_v34 }
  0x36   : > { %606 = vmatmul.f32.gmra.mxu1 %v547_v35 }
  0x8e   : > { %v480_v37 = vpop.f32.mrf.mxu0 }
  0x8f   : > { %v481_v38 = vadd.f32 %v832_v36, %v480_v37 }
  0x91   : > { %v486_v40 = vmax.f32 %v481_v38, 0.0 }
  0x93   : > { %v492_v41 = vmul.f32 %v833_v39, %v486_v40 }
  0x95   : > { %v495_v42 = vsel %vm494_vm3, %v492_v41, 0.0 }
  0x96   : > { %v483_v43 = vpop.f32.mrf.mxu0  ;;  %496 = vadd.xlane.f32.xlu0 %v495_v42 }
  0x97   : > { %v484_v44 = vadd.f32 %v832_v36, %v483_v43  ;;  %v836_v36 = vld [vmem:[%s1089_s4] ss:$0 sm:$0xff] }
  0x99   : > { %v487_v45 = vmax.f32 %v484_v44, 0.0  ;;  %v837_v44 = vld [vmem:[%s1096_s11] ss:$0 sm:$0xff] }
  0x9b   : > { %v493_v46 = vmul.f32 %v833_v39, %v487_v45 }
  0x9d   : > { %v498_v47 = vsel %vm494_vm3, %v493_v46, 0.0 }
  0x9e   : > { %499 = vadd.xlane.f32.xlu0 %v498_v47 }
  0xa8   : > { %v627_v52 = vpop.f32.mrf.mxu2 }
  0xab   : > { %v604_v49 = vpop.f32.mrf.mxu1 }
  0xac   : > { %v605_v50 = vadd.f32 %v835_v48, %v604_v49 }
  0xae   : > { %v628_v53 = vadd.f32 %v627_v52, %v605_v50 }
  0xb0   : > { %v633_v55 = vmax.f32 %v628_v53, 0.0  ;;  %v630_v59 = vpop.f32.mrf.mxu2 }
  0xb2   : > { %814 = vmatmul.msk.f32.vlgmr.msra.gmra.mxu3 %vm642_vm4, %v633_v55 }
  0xb3   : > { %v607_v57 = vpop.f32.mrf.mxu1 }
  0xb4   : > { %v608_v58 = vadd.f32 %v835_v48, %v607_v57 }
  0xb6   : > { %v631_v60 = vadd.f32 %v630_v59, %v608_v58 }
  0xb8   : > { %v634_v61 = vmax.f32 %v631_v60, 0.0 }
  0xba   : > { %815 = vmatmul.msk.f32.gmra.mxu3 %vm642_vm4, %v634_v61 }
 0x109   : > { %v497_v0 = vpop.xlane.xlu0 %496 }
 0x10a   : > { %v505_v1 = vadd.f32 %v834_v63, %v497_v0 }
 0x10c   : > { %v810_v2 = vmul.f32 -1.442695, %v505_v1 }
 0x10e   : > { %838 = vpow2.f32 %v810_v2 }
 0x111   : > { %v500_v5 = vpop.xlane.xlu0 %499 }
 0x112   : > { %v506_v6 = vadd.f32 %v834_v63, %v500_v5 }
 0x114   : > { %v839_v8 = vpop.eup %838  ;;  %v811_v9 = vmul.f32 -1.442695, %v506_v6 }
 0x115   : > { %v513_v11 = vadd.f32 1.0, %v839_v8 }
 0x116   : > { %840 = vpow2.f32 %v811_v9 }
 0x117   : > { %842 = vrcp.f32 %v513_v11  ;;  %v526_v17 = vand.u32 2147483648, %v513_v11  ;;  %v524_v19 = vand.u32 2147483647, %v513_v11  ;;  %vm520_vm6 = vweird.f32 %v513_v11 }
 0x119   : > { %v527_v22 = vor.u32 1.1754944e-38, %v526_v17  ;;  %vm525_vm8 = vcmp.eq.f32.partialorder %v524_v19, 8.507059e+37 }
 0x11c   : > { %v841_v12 = vpop.eup %840 }
 0x11d   : > { %v843_v13 = vpop.eup %842  ;;  %v514_v14 = vadd.f32 1.0, %v841_v12 }
 0x11e   : > { %v516_v15 = vmul.f32 %v843_v13, %v513_v11  ;;  %vm521_vm5 = vweird.f32 %v843_v13 }
 0x11f   : > { %844 = vrcp.f32 %v514_v14  ;;  %vm522_vm7 = vmor %vm520_vm6, %vm521_vm5  ;;  %v541_v27 = vand.u32 2147483648, %v514_v14  ;;  %v539_v29 = vand.u32 2147483647, %v514_v14  ;;  %vm535_vm10 = vweird.f32 %v514_v14 }
 0x120   : > { %v517_v16 = vsub.f32 1.0, %v516_v15 }
 0x121   : > { %v542_v31 = vor.u32 1.1754944e-38, %v541_v27  ;;  %vm540_vm12 = vcmp.eq.f32.partialorder %v539_v29, 8.507059e+37 }
 0x122   : > { %v518_v18 = vmul.f32 %v843_v13, %v517_v16 }
 0x124   : > { %v519_v20 = vadd.f32 %v843_v13, %v518_v18 }
 0x125   : > { %v845_v21 = vpop.eup %844 }
 0x126   : > { %v523_v23 = vsel %vm522_vm7, %v843_v13, %v519_v20  ;;  %v531_v24 = vmul.f32 %v845_v21, %v514_v14  ;;  %vm536_vm9 = vweird.f32 %v845_v21 }
 0x127   : > { %v528_v25 = vsel %vm525_vm8, %v527_v22, %v523_v23  ;;  %vm537_vm11 = vmor %vm535_vm10, %vm536_vm9 }
 0x128   : > { %674 = vperm.xlu1 %830, %v528_v25   ;;  %v532_v26 = vsub.f32 1.0, %v531_v24 }
 0x12a   : > { %v533_v28 = vmul.f32 %v845_v21, %v532_v26 }
 0x12c   : > { %v534_v30 = vadd.f32 %v845_v21, %v533_v28 }
 0x12e   : > { %v538_v32 = vsel %vm537_vm11, %v845_v21, %v534_v30 }
 0x12f   : > { %v543_v33 = vsel %vm540_vm12, %v542_v31, %v538_v32 }
 0x130   : > { %679 = vperm.xlu1 %830, %v543_v33  }
 0x135   : > { %v666_v35 = vpop.f32.mrf.mxu3 }
 0x136   : > { %v667_v37 = vadd.f32 %v836_v36, %v666_v35 }
 0x13d   : > { %v669_v40 = vpop.f32.mrf.mxu3 }
 0x13e   : > { %v670_v41 = vadd.f32 %v836_v36, %v669_v40 }
 0x19a   : > { %v675_v38 = vpop.permute.xlu1 %674 }
 0x19b   : > { %v682_v39 = vmul.f32 %v675_v38, %v667_v37 }
 0x19d   : > { %816 = vmatmul.msk.f32.vlgmr.msrb.gmra.mxu0 %vm693_vm13, %v682_v39 }
 0x1a2   : > { %v680_v42 = vpop.permute.xlu1 %679 }
 0x1a3   : > { %v683_v43 = vmul.f32 %v680_v42, %v670_v41 }
 0x1a5   : > { %817 = vmatmul.msk.f32.gmra.mxu0 %vm693_vm13, %v683_v43 }
 0x21a   : > { %v717_v45 = vpop.f32.mrf.mxu0 }
 0x21b   : > { %v718_v46 = vadd.f32 %v837_v44, %v717_v45 }
 0x21d   : > { %v723_v47 = vmax.f32 %v718_v46, 0.0 }
 0x21f   : > { %725 = vst.msk [vmem:[%s442_s20] sm:$0xff] %vm494_vm3, %v723_v47 }
 0x222   : > { %v720_v48 = vpop.f32.mrf.mxu0 }
 0x223   : > { %v721_v49 = vadd.f32 %v837_v44, %v720_v48 }
 0x225   : > { %v724_v50 = vmax.f32 %v721_v49, 0.0 }
 0x227   : > { %726 = vst.msk [vmem:[%s442_s20 + $0x8] sm:$0xff] %vm494_vm3, %v724_v50 }
 0x228 PF: > { %s24_s23 = sadd.s32 1, %s852_s23  }
 0x229   : > { %p21_p4 = scmp.ge.s32.totalorder %s24_s23, 4  }
 0x22b   :  { %23 = sbr.rel (!%p21_p4) target bundleno = 3 (0x3), region = 101 }

// kernel: forward.7
= control target key start
LH: loop header
LB: loop body
LE: loop exit
PB: predicated region body
PF: predicated region fallthrough
CT: control target
= control target key end

     0   :  { %vm19_vm0 = vcmask 517120   ;;  %vm26_vm1 = vcmask 523264   ;;  %v141_v2 = vmov 0.0   ;;  %s212_s0 = inlined_call_operand.vmem [shape: f32[2,16,64], index: 0, kind: input, shape index: {}]   ;;  %s213_s1 = inlined_call_operand.vmem [shape: f32[64,10], index: 1, kind: input, shape index: {}]   ;;  %s214_s2 = inlined_call_operand.vmem [shape: f32[1,10], index: 2, kind: input, shape index: {}]   ;;  %s215_s3 = inlined_call_operand.hbm [shape: f32[2,10], index: 3, kind: output, shape index: {}]  }
   0x1   :  { %v65_v0 = vld [vmem:[%s213_s1 + $0x38] sm:$0xff]  ;;  %v64_v1 = vld [vmem:[%s213_s1 + $0x30] sm:$0xff]  ;;  %20 = vst.msk [vmem:[#allocation2] sm:$0x3] %vm19_vm0, %v141_v2  ;;  %v63_v3 = vld [vmem:[%s213_s1 + $0x28] sm:$0xff] }
   0x2   :  { %81 = vmatpush.msra.mxu0 %v65_v0  ;;  %v22_v4 = vld [vmem:[%s212_s0] sm:$0xff]  ;;  %v23_v5 = vld [vmem:[%s212_s0 + $0x8] sm:$0xff]  ;;  %v24_v6 = vld [vmem:[%s212_s0 + $0x10] sm:$0xff] }
   0x3   :  { %v25_v7 = vld [vmem:[%s212_s0 + $0x18] sm:$0xff]  ;;  %v27_v8 = vsel %vm26_vm1, %v22_v4, 0.0  ;;  %v62_v9 = vld [vmem:[%s213_s1 + $0x20] sm:$0xff]  ;;  %v28_v10 = vsel %vm26_vm1, %v23_v5, 0.0  ;;  %v36_v11 = vsel %vm26_vm1, %v24_v6, 0.0 }
   0x4   :  { %82 = vmatpush.msra.mxu0 %v64_v1  ;;  %v37_v12 = vsel %vm26_vm1, %v25_v7, 0.0  ;;  %v29_v13 = vadd.f32 %v28_v10, %v27_v8 }
   0x5   :  { %v38_v14 = vadd.f32 %v37_v12, %v36_v11 }
   0x6   :  { %83 = vmatpush.msra.mxu0 %v63_v3 }
   0x7   :  { %8 = vsyncpa [#allocation4], 0  ;;  %v61_v15 = vld [vmem:[%s213_s1 + $0x18] sm:$0xff]  ;;  %v30_v16 = vrot.slane %v29_v13, 4  ;;  %v39_v17 = vrot.slane %v38_v14, 4  ;;  %v60_v18 = vld [vmem:[%s213_s1 + $0x10] sm:$0xff] }
   0x8   :  { %84 = vmatpush.msra.mxu0 %v62_v9  ;;  %v59_v21 = vld [vmem:[%s213_s1 + $0x8] sm:$0xff]  ;;  %v58_v24 = vld [vmem:[%s213_s1] sm:$0xff]  ;;  %vm47_vm2 = vcmask 1041409   ;;  %s142_s9 = smov [#allocation3]   ;;  %s102_s13 = sshll.u32 %s215_s3, 4  ;;  %vm93_vm3 = vcmask 74752   ;;  %s103_s13 = int_to_ptr.hbm [resolvable:$true] %s102_s13 }
   0x9   :  { %v31_v19 = vadd.f32 %v30_v16, %v29_v13  ;;  %v40_v20 = vadd.f32 %v39_v17, %v38_v14  ;;  %v21_v29 = vld [vmem:[#allocation2] sm:$0x3]  ;;  %s100_s10 = sshll.u32 %s142_s9, 4  ;;  %s101_s10 = int_to_ptr.vmem [resolvable:$true] %s100_s10 }
   0xa   :  { %85 = vmatpush.msra.mxu0 %v61_v15  ;;  %v114_v36 = vld [vmem:[%s214_s2] ss:$0 sm:$0xff] }
   0xb   :  { %v32_v22 = vrot.slane %v31_v19, 2  ;;  %v41_v23 = vrot.slane %v40_v20, 2 }
   0xc   :  { %86 = vmatpush.msra.mxu0 %v60_v18 }
   0xd   :  { %v33_v25 = vadd.f32 %v32_v22, %v31_v19  ;;  %v42_v26 = vadd.f32 %v41_v23, %v40_v20 }
   0xe   :  { %87 = vmatpush.msra.mxu0 %v59_v21 }
   0xf   :  { %v34_v27 = vrot.slane %v33_v25, 1  ;;  %v43_v28 = vrot.slane %v42_v26, 1 }
  0x10   :  { %88 = vmatpush.msra.mxu0 %v58_v24 }
  0x11   :  { %v35_v30 = vadd.f32 %v34_v27, %v33_v25  ;;  %v44_v31 = vadd.f32 %v43_v28, %v42_v26 }
  0x13   :  { %v48_v32 = vsel %vm47_vm2, %v44_v31, %v35_v30 }
  0x14   :  { %v50_v33 = vadd.f32 %v48_v32, %v21_v29 }
  0x16   :  { %52 = vst.msk [vmem:[#allocation2] sm:$0x3] %vm19_vm0, %v50_v33 }
  0x1d   :  { %v56_v34 = vld [vmem:[#allocation2] sm:$0x3] }
  0x1e   :  { %v57_v35 = vmul.f32 0.0625, %v56_v34 }
  0x20   :  { %111 = vmatmul.msk.f32.vlgmr.msra.gmra.mxu0 %vm26_vm1, %v57_v35 }
  0x9d   :  { %v90_v37 = vpop.f32.mrf.mxu0 }
  0x9e   :  { %v91_v38 = vadd.f32 %v114_v36, %v90_v37 }
  0xa0   :  { %94 = vst.msk [vmem:[#allocation3] sm:$0x3] %vm93_vm3, %v91_v38 }
  0xa1   :  { %105 = dma.vmem_to_hbm [thread:$0]  %s101_s10, 32, %s103_s13, [#allocation4]  }
  0xa2   :  { %139 = dma.done.wait [#allocation4], 32  }
  0xa3   :  { %140 = vsyncadd [#allocation4], 4294967264 }
  0xa4   :  { %110 = vsyncpa [#allocation4], 1 }

</bundles_post_ra>
